<compile_context>
chip_gen: v7x
topology: tpu7x:2x2x1
jax: 0.10.0
libtpu: 0.0.40
codegen_flags: <defaults>
</compile_context>

<pallas_src>
import functools

import jax
import jax.numpy as jnp
from jax import lax
from jax.experimental import pallas as pl
from jax.experimental.pallas import tpu as pltpu

HID = 64     # real hidden channels
PAD = 128    # lane-padded channel count (zero-padded, mathematically inert)
NCONC = 10   # concepts per digit (latent_dim // 2)
NCLS = 19    # nr_classes

_DN = ("NHWC", "HWIO", "NHWC")   # patches dimension numbers (no transposes)


# ----------------------------------------------------------------------------
# Pallas kernels
# ----------------------------------------------------------------------------
def _conv_mm_kernel(a_ref, w_ref, b_ref, o_ref):
    """o = relu(a @ w + b); a:(M,K), w:(K,N), b:(1,N)."""
    acc = jnp.dot(a_ref[...], w_ref[...], preferred_element_type=jnp.float32)
    acc = acc + b_ref[...]
    o_ref[...] = jnp.maximum(acc, 0.0).astype(o_ref.dtype)


def conv_matmul_relu(a, w, b):
    """im2col conv == matmul + bias + ReLU. Tiles M across the grid when the
    block stays a multiple of 8 (parallel semantics -> both cores on v7x)."""
    M, K = a.shape
    K2, N = w.shape
    assert K == K2, (K, K2)
    mb = 2 if (M % 16 == 0) else 1
    bm = M // mb
    return pl.pallas_call(
        _conv_mm_kernel,
        out_shape=jax.ShapeDtypeStruct((M, N), jnp.float32),
        grid=(mb,),
        in_specs=[
            pl.BlockSpec((bm, K), lambda i: (i, 0)),
            pl.BlockSpec((K, N), lambda i: (0, 0)),
            pl.BlockSpec((1, N), lambda i: (0, 0)),
        ],
        out_specs=pl.BlockSpec((bm, N), lambda i: (i, 0)),
        compiler_params=pltpu.CompilerParams(
            dimension_semantics=("parallel",)),
        cost_estimate=pl.CostEstimate(
            flops=2 * M * K * N, transcendentals=0,
            bytes_accessed=4 * (M * K + K * N + N + M * N)),
    )(a, w, b.reshape(1, N))


def _fc_head_kernel(h_ref, fcw_ref, fcb_ref, w2d_ref, sums_ref, conc_ref, *,
                    batch, n_conc):
    """Fused: fc logits -> softmax concepts -> concat + bilinear sums.

    h    : (2B, F)  flattened conv features (digit-1 rows then digit-2 rows)
    fcw  : (F, C)   fc weight;  fcb: (1, C)
    w2d  : (C*C, K) bilinear W reshaped with row index i*C + j
    sums : (B, K)   einsum('bi,ijk,bj->bk', z1, W, z2)
    conc : (B, 2C)  concat([z1, z2], axis=1)
    """
    C = n_conc
    logits = jnp.dot(h_ref[...], fcw_ref[...],
                     preferred_element_type=jnp.float32) + fcb_ref[...]
    # softmax over the concept axis for both digits at once
    m = jnp.max(logits, axis=-1, keepdims=True)
    e = jnp.exp(logits - m)
    z = e / jnp.sum(e, axis=-1, keepdims=True)               # (2B, C)
    z1 = z[0:batch, :]
    z2 = z[batch:2 * batch, :]

    conc_ref[...] = jnp.concatenate([z1, z2], axis=1)         # single store

    # outer[b, i*C+j] = z1[b,i] * z2[b,j], without a loop of tiny matmuls:
    #   zl[b,c] = z1[b, c // C]  via a constant 0/1 selection matmul (no div)
    #   zr[b,c] = z2[b, c %  C]  via lane concatenation (tile)
    rows = lax.broadcasted_iota(jnp.int32, (C, C * C), 0)
    cols = lax.broadcasted_iota(jnp.int32, (C, C * C), 1)
    sel_l = ((cols >= rows * C) & (cols < (rows + 1) * C)).astype(jnp.float32)
    zl = jnp.dot(z1, sel_l, preferred_element_type=jnp.float32)   # (B, C*C)
    zr = jnp.concatenate([z2] * C, axis=1)                         # (B, C*C)
    outer = zl * zr
    sums_ref[...] = jnp.dot(outer, w2d_ref[...],
                            preferred_element_type=jnp.float32)


def fc_head(hflat, fc_w, fc_b, w2d):
    twoB, F = hflat.shape
    B = twoB // 2
    F2, C = fc_w.shape
    assert F == F2, (F, F2)
    CC, K = w2d.shape
    assert CC == C * C, (CC, C)
    kern = functools.partial(_fc_head_kernel, batch=B, n_conc=C)
    flops = 2 * (twoB * F * C + B * C * C * C + B * C * C * K)
    bytes_acc = 4 * (twoB * F + F * C + C + CC * K + B * K + B * 2 * C)
    return pl.pallas_call(
        kern,
        out_shape=(
            jax.ShapeDtypeStruct((B, K), jnp.float32),        # sums
            jax.ShapeDtypeStruct((B, 2 * C), jnp.float32),    # concepts
        ),
        grid=(1,),
        in_specs=[
            pl.BlockSpec((twoB, F), lambda i: (0, 0)),
            pl.BlockSpec((F, C), lambda i: (0, 0)),
            pl.BlockSpec((1, C), lambda i: (0, 0)),
            pl.BlockSpec((CC, K), lambda i: (0, 0)),
        ],
        out_specs=(
            pl.BlockSpec((B, K), lambda i: (0, 0)),
            pl.BlockSpec((B, 2 * C), lambda i: (0, 0)),
        ),
        compiler_params=pltpu.CompilerParams(
            dimension_semantics=("arbitrary",)),
        cost_estimate=pl.CostEstimate(
            flops=flops, transcendentals=twoB * C, bytes_accessed=bytes_acc),
    )(hflat, fc_w, fc_b.reshape(1, C), w2d)


# ----------------------------------------------------------------------------
# Parameters (pre-laid-out once for the kernels) and forward pass
# ----------------------------------------------------------------------------
def init_params(key, hidden=HID, latent_dim=2 * NCONC, nr_classes=NCLS):
    c = latent_dim // 2
    ks = jax.random.split(key, 7)
    # synthetic torch-layout weights
    w1 = 0.10 * jax.random.normal(ks[0], (hidden, 1, 3, 3), jnp.float32)     # (O,C,kh,kw)
    b1 = 0.10 * jax.random.normal(ks[1], (hidden,), jnp.float32)
    w2 = 0.05 * jax.random.normal(ks[2], (hidden, hidden, 3, 3), jnp.float32)
    b2 = 0.05 * jax.random.normal(ks[3], (hidden,), jnp.float32)
    fc_w = 0.02 * jax.random.normal(ks[4], (c, hidden, 7, 7), jnp.float32)   # (out,C,H,W)
    fc_b = 0.02 * jax.random.normal(ks[5], (c,), jnp.float32)
    W = jax.random.uniform(ks[6], (c, c, nr_classes), jnp.float32)           # torch.rand

    # conv1: (O,1,3,3) -> (kh*kw, O), zero-pad O: 64 -> PAD
    w1m = w1.reshape(hidden, 9).T
    w1p = jnp.zeros((9, PAD), jnp.float32).at[:, :hidden].set(w1m)
    b1p = jnp.zeros((PAD,), jnp.float32).at[:hidden].set(b1)
    # conv2: (O,C,3,3) -> (C*kh*kw, O), feature order (c,kh,kw); pad 576 -> 9*PAD rows
    # (padded input channels) and 64 -> PAD output columns.
    w2m = w2.reshape(hidden, hidden * 9).T                                   # (576, 64)
    w2p = jnp.zeros((PAD * 9, PAD), jnp.float32).at[:hidden * 9, :hidden].set(w2m)
    b2p = jnp.zeros((PAD,), jnp.float32).at[:hidden].set(b2)
    # fc: torch flattens (C,H,W); our activations are (H,W,Cpad) -> permute + pad once.
    fc_hwc = jnp.transpose(fc_w, (2, 3, 1, 0))                               # (H,W,C,out)
    fc_p = jnp.zeros((7, 7, PAD, c), jnp.float32).at[:, :, :hidden, :].set(fc_hwc)
    fc_p = fc_p.reshape(7 * 7 * PAD, c)                                      # (6272, 10)
    return {
        "w1": w1p, "b1": b1p, "w2": w2p, "b2": b2p,
        "fc_w": fc_p, "fc_b": fc_b,
        "W2d": W.reshape(c * c, nr_classes),                                 # (100, 19)
    }


def mnist_cbm_forward(params, x):
    """x: (B,1,28,56) NCHW pair of digits -> (sums (B,19), concepts (B,20))."""
    B = x.shape[0]
    # stack both digits along batch so the shared encoder runs once (2B images)
    xb = jnp.concatenate([x[..., :28], x[..., 28:]], axis=0)                 # (2B,1,28,28)
    xb = xb.reshape(2 * B, 28, 28, 1)                                        # NHWC (C=1: free)

    # conv1 (k=3, s=2, p=1): im2col patches (XLA) + Pallas matmul+bias+relu
    p1 = lax.conv_general_dilated_patches(
        xb, (3, 3), (2, 2), ((1, 1), (1, 1)), dimension_numbers=_DN)         # (2B,14,14,9)
    h1 = conv_matmul_relu(p1.reshape(2 * B * 14 * 14, 9),
                          params["w1"], params["b1"])                        # (2B*196, PAD)

    # conv2 (k=3, s=2, p=1)
    p2 = lax.conv_general_dilated_patches(
        h1.reshape(2 * B, 14, 14, PAD), (3, 3), (2, 2), ((1, 1), (1, 1)),
        dimension_numbers=_DN)                                               # (2B,7,7,9*PAD)
    h2 = conv_matmul_relu(p2.reshape(2 * B * 7 * 7, 9 * PAD),
                          params["w2"], params["b2"])                        # (2B*49, PAD)

    # fused fc + softmax + concat + bilinear head (contiguous reshape is free)
    hflat = h2.reshape(2 * B, 7 * 7 * PAD)
    return fc_head(hflat, params["fc_w"], params["fc_b"], params["W2d"])


def mnist_cbm_reference(params, x):
    """Pure-JAX reference of the same math (no Pallas), for a numerical check."""
    B = x.shape[0]
    hp = lax.Precision.HIGHEST
    xb = jnp.concatenate([x[..., :28], x[..., 28:]], axis=0).reshape(2 * B, 28, 28, 1)
    p1 = lax.conv_general_dilated_patches(
        xb, (3, 3), (2, 2), ((1, 1), (1, 1)), dimension_numbers=_DN)
    h1 = jax.nn.relu(jnp.dot(p1.reshape(2 * B * 196, 9), params["w1"],
                             precision=hp) + params["b1"])
    p2 = lax.conv_general_dilated_patches(
        h1.reshape(2 * B, 14, 14, PAD), (3, 3), (2, 2), ((1, 1), (1, 1)),
        dimension_numbers=_DN)
    h2 = jax.nn.relu(jnp.dot(p2.reshape(2 * B * 49, 9 * PAD), params["w2"],
                             precision=hp) + params["b2"])
    logits = jnp.dot(h2.reshape(2 * B, 49 * PAD), params["fc_w"],
                     precision=hp) + params["fc_b"]
    z = jax.nn.softmax(logits, axis=-1)
    z1, z2 = z[:B], z[B:]
    concepts = jnp.concatenate([z1, z2], axis=1)
    W3 = params["W2d"].reshape(NCONC, NCONC, NCLS)
    sums = jnp.einsum("bi,ijk,bj->bk", z1, W3, z2, precision=hp)
    return sums, concepts


# ----------------------------------------------------------------------------
if __name__ == "__main__":
    key = jax.random.PRNGKey(0)
    k_param, k_x = jax.random.split(key)

    params = init_params(k_param)
    x = jax.random.uniform(k_x, (2, 1, 28, 56), jnp.float32)  # batch of 2 digit pairs

    sums, concepts = jax.jit(mnist_cbm_forward)(params, x)
    jax.block_until_ready((sums, concepts))

    assert sums.shape == (2, NCLS), sums.shape
    assert concepts.shape == (2, 2 * NCONC), concepts.shape
    assert bool(jnp.all(jnp.isfinite(sums))) and bool(jnp.all(jnp.isfinite(concepts)))

    # numerical sanity check against the pure-JAX reference
    ref_sums, ref_conc = jax.jit(mnist_cbm_reference)(params, x)
    assert bool(jnp.allclose(sums, ref_sums, rtol=5e-2, atol=1e-2)), "sums mismatch"
    assert bool(jnp.allclose(concepts, ref_conc, rtol=5e-2, atol=1e-2)), "concepts mismatch"

    print("KERNEL_OK")
</pallas_src>

<mosaic_0001>
module attributes {stable_mosaic.version = 11 : i64} {
  func.func @_conv_mm_kernel(%arg0: i32, %arg1: memref<392x9xf32, #tpu.memory_space<vmem>>, %arg2: memref<9x128xf32, #tpu.memory_space<vmem>>, %arg3: memref<1x128xf32, #tpu.memory_space<vmem>>, %arg4: memref<392x128xf32, #tpu.memory_space<vmem>>) attributes {dimension_semantics = [#tpu.dimension_semantics<parallel>], iteration_bounds = array<i64: 2>, scalar_prefetch = 0 : i64, scratch_operands = 0 : i64, tpu.core_type = #tpu.core_type<tc>, window_params = [{transform_indices = @transform_0, window_bounds = array<i64: 392, 9>}, {pipeline_mode = #tpu.pipeline_mode<synchronous>, transform_indices = @transform_1, window_bounds = array<i64: 9, 128>}, {pipeline_mode = #tpu.pipeline_mode<synchronous>, transform_indices = @transform_2, window_bounds = array<i64: 1, 128>}, {transform_indices = @transform_3, window_bounds = array<i64: 392, 128>}]} {
    %c0 = arith.constant 0 : index
    %c0_0 = arith.constant 0 : index
    %0 = vector.load %arg1[%c0, %c0_0] : memref<392x9xf32, #tpu.memory_space<vmem>>, vector<392x9xf32>
    %c0_1 = arith.constant 0 : index
    %c0_2 = arith.constant 0 : index
    %1 = vector.load %arg2[%c0_1, %c0_2] : memref<9x128xf32, #tpu.memory_space<vmem>>, vector<9x128xf32>
    %cst = arith.constant dense<0.000000e+00> : vector<392x128xf32>
    %2 = tpu.matmul %0, %1, %cst {dimension_numbers = #tpu.dot_dimension_numbers<[1], [0], [0], [1], [0, 0, 1, 1], [], []>} : vector<392x9xf32>, vector<9x128xf32>, vector<392x128xf32> -> vector<392x128xf32>
    %c0_3 = arith.constant 0 : index
    %c0_4 = arith.constant 0 : index
    %3 = vector.load %arg3[%c0_3, %c0_4] : memref<1x128xf32, #tpu.memory_space<vmem>>, vector<1x128xf32>
    %4 = vector.broadcast %3 : vector<1x128xf32> to vector<392x128xf32>
    %5 = arith.addf %2, %4 : vector<392x128xf32>
    %cst_5 = arith.constant 0.000000e+00 : f32
    %6 = vector.broadcast %cst_5 : f32 to vector<392x128xf32>
    %7 = arith.maximumf %5, %6 : vector<392x128xf32>
    %c0_6 = arith.constant 0 : index
    %c0_7 = arith.constant 0 : index
    %8 = vector.load %arg4[%c0_6, %c0_7] : memref<392x128xf32, #tpu.memory_space<vmem>>, vector<392x128xf32>
    tpu.vector_store %arg4[%c0_6, %c0_7], %7 {strides = array<i32>} : memref<392x128xf32, #tpu.memory_space<vmem>>, vector<392x128xf32>,
    return
  }
  func.func @transform_0(%arg0: i32) -> (i32, i32) {
    %c0_i32 = arith.constant 0 : i32
    %c0_i32_0 = arith.constant 0 : i32
    return %arg0, %c0_i32 : i32, i32
  }
  func.func @transform_1(%arg0: i32) -> (i32, i32) {
    %c0_i32 = arith.constant 0 : i32
    %c0_i32_0 = arith.constant 0 : i32
    %c0_i32_1 = arith.constant 0 : i32
    return %c0_i32, %c0_i32_0 : i32, i32
  }
  func.func @transform_2(%arg0: i32) -> (i32, i32) {
    %c0_i32 = arith.constant 0 : i32
    %c0_i32_0 = arith.constant 0 : i32
    %c0_i32_1 = arith.constant 0 : i32
    return %c0_i32, %c0_i32_0 : i32, i32
  }
  func.func @transform_3(%arg0: i32) -> (i32, i32) {
    %c0_i32 = arith.constant 0 : i32
    %c0_i32_0 = arith.constant 0 : i32
    return %arg0, %c0_i32 : i32, i32
  }
}

module attributes {stable_mosaic.version = 11 : i64} {
  func.func @_conv_mm_kernel(%arg0: i32, %arg1: memref<196x1152xf32, #tpu.memory_space<vmem>>, %arg2: memref<1152x128xf32, #tpu.memory_space<vmem>>, %arg3: memref<1x128xf32, #tpu.memory_space<vmem>>, %arg4: memref<196x128xf32, #tpu.memory_space<vmem>>) attributes {dimension_semantics = [#tpu.dimension_semantics<parallel>], iteration_bounds = array<i64: 1>, scalar_prefetch = 0 : i64, scratch_operands = 0 : i64, tpu.core_type = #tpu.core_type<tc>, window_params = [{transform_indices = @transform_0, window_bounds = array<i64: 196, 1152>}, {pipeline_mode = #tpu.pipeline_mode<synchronous>, transform_indices = @transform_1, window_bounds = array<i64: 1152, 128>}, {pipeline_mode = #tpu.pipeline_mode<synchronous>, transform_indices = @transform_2, window_bounds = array<i64: 1, 128>}, {transform_indices = @transform_3, window_bounds = array<i64: 196, 128>}]} {
    %c0 = arith.constant 0 : index
    %c0_0 = arith.constant 0 : index
    %0 = vector.load %arg1[%c0, %c0_0] : memref<196x1152xf32, #tpu.memory_space<vmem>>, vector<196x1152xf32>
    %c0_1 = arith.constant 0 : index
    %c0_2 = arith.constant 0 : index
    %1 = vector.load %arg2[%c0_1, %c0_2] : memref<1152x128xf32, #tpu.memory_space<vmem>>, vector<1152x128xf32>
    %cst = arith.constant dense<0.000000e+00> : vector<196x128xf32>
    %2 = tpu.matmul %0, %1, %cst {dimension_numbers = #tpu.dot_dimension_numbers<[1], [0], [0], [1], [0, 0, 1, 1], [], []>} : vector<196x1152xf32>, vector<1152x128xf32>, vector<196x128xf32> -> vector<196x128xf32>
    %c0_3 = arith.constant 0 : index
    %c0_4 = arith.constant 0 : index
    %3 = vector.load %arg3[%c0_3, %c0_4] : memref<1x128xf32, #tpu.memory_space<vmem>>, vector<1x128xf32>
    %4 = vector.broadcast %3 : vector<1x128xf32> to vector<196x128xf32>
    %5 = arith.addf %2, %4 : vector<196x128xf32>
    %cst_5 = arith.constant 0.000000e+00 : f32
    %6 = vector.broadcast %cst_5 : f32 to vector<196x128xf32>
    %7 = arith.maximumf %5, %6 : vector<196x128xf32>
    %c0_6 = arith.constant 0 : index
    %c0_7 = arith.constant 0 : index
    %8 = vector.load %arg4[%c0_6, %c0_7] : memref<196x128xf32, #tpu.memory_space<vmem>>, vector<196x128xf32>
    tpu.vector_store %arg4[%c0_6, %c0_7], %7 {strides = array<i32>} : memref<196x128xf32, #tpu.memory_space<vmem>>, vector<196x128xf32>,
    return
  }
  func.func @transform_0(%arg0: i32) -> (i32, i32) {
    %c0_i32 = arith.constant 0 : i32
    %c0_i32_0 = arith.constant 0 : i32
    return %arg0, %c0_i32 : i32, i32
  }
  func.func @transform_1(%arg0: i32) -> (i32, i32) {
    %c0_i32 = arith.constant 0 : i32
    %c0_i32_0 = arith.constant 0 : i32
    %c0_i32_1 = arith.constant 0 : i32
    return %c0_i32, %c0_i32_0 : i32, i32
  }
  func.func @transform_2(%arg0: i32) -> (i32, i32) {
    %c0_i32 = arith.constant 0 : i32
    %c0_i32_0 = arith.constant 0 : i32
    %c0_i32_1 = arith.constant 0 : i32
    return %c0_i32, %c0_i32_0 : i32, i32
  }
  func.func @transform_3(%arg0: i32) -> (i32, i32) {
    %c0_i32 = arith.constant 0 : i32
    %c0_i32_0 = arith.constant 0 : i32
    return %arg0, %c0_i32 : i32, i32
  }
}

module attributes {stable_mosaic.version = 11 : i64} {
  func.func @_fc_head_kernel(%arg0: i32, %arg1: memref<4x6272xf32, #tpu.memory_space<vmem>>, %arg2: memref<6272x10xf32, #tpu.memory_space<vmem>>, %arg3: memref<1x10xf32, #tpu.memory_space<vmem>>, %arg4: memref<100x19xf32, #tpu.memory_space<vmem>>, %arg5: memref<2x19xf32, #tpu.memory_space<vmem>>, %arg6: memref<2x20xf32, #tpu.memory_space<vmem>>) attributes {dimension_semantics = [#tpu.dimension_semantics<arbitrary>], iteration_bounds = array<i64: 1>, scalar_prefetch = 0 : i64, scratch_operands = 0 : i64, tpu.core_type = #tpu.core_type<tc>, window_params = [{pipeline_mode = #tpu.pipeline_mode<synchronous>, transform_indices = @transform_0, window_bounds = array<i64: 4, 6272>}, {pipeline_mode = #tpu.pipeline_mode<synchronous>, transform_indices = @transform_1, window_bounds = array<i64: 6272, 10>}, {pipeline_mode = #tpu.pipeline_mode<synchronous>, transform_indices = @transform_2, window_bounds = array<i64: 1, 10>}, {pipeline_mode = #tpu.pipeline_mode<synchronous>, transform_indices = @transform_3, window_bounds = array<i64: 100, 19>}, {pipeline_mode = #tpu.pipeline_mode<synchronous>, transform_indices = @transform_4, window_bounds = array<i64: 2, 19>}, {pipeline_mode = #tpu.pipeline_mode<synchronous>, transform_indices = @transform_5, window_bounds = array<i64: 2, 20>}]} {
    %c0 = arith.constant 0 : index
    %c0_0 = arith.constant 0 : index
    %0 = vector.load %arg1[%c0, %c0_0] : memref<4x6272xf32, #tpu.memory_space<vmem>>, vector<4x6272xf32>
    %c0_1 = arith.constant 0 : index
    %c0_2 = arith.constant 0 : index
    %1 = vector.load %arg2[%c0_1, %c0_2] : memref<6272x10xf32, #tpu.memory_space<vmem>>, vector<6272x10xf32>
    %cst = arith.constant dense<0.000000e+00> : vector<4x10xf32>
    %2 = tpu.matmul %0, %1, %cst {dimension_numbers = #tpu.dot_dimension_numbers<[1], [0], [0], [1], [0, 0, 1, 1], [], []>} : vector<4x6272xf32>, vector<6272x10xf32>, vector<4x10xf32> -> vector<4x10xf32>
    %c0_3 = arith.constant 0 : index
    %c0_4 = arith.constant 0 : index
    %3 = vector.load %arg3[%c0_3, %c0_4] : memref<1x10xf32, #tpu.memory_space<vmem>>, vector<1x10xf32>
    %4 = vector.broadcast %3 : vector<1x10xf32> to vector<4x10xf32>
    %5 = arith.addf %2, %4 : vector<4x10xf32>
    %cst_5 = arith.constant dense<0xFF800000> : vector<4xf32>
    %6 = vector.multi_reduction <maximumf>, %5, %cst_5 [1] : vector<4x10xf32> to vector<4xf32>
    %7 = vector.shape_cast %6 : vector<4xf32> to vector<4x1xf32>
    %8 = vector.broadcast %7 : vector<4x1xf32> to vector<4x10xf32>
    %9 = arith.subf %5, %8 : vector<4x10xf32>
    %10 = math.exp %9 : vector<4x10xf32>
    %cst_6 = arith.constant dense<0.000000e+00> : vector<4xf32>
    %11 = vector.multi_reduction <add>, %10, %cst_6 [1] : vector<4x10xf32> to vector<4xf32>
    %12 = vector.shape_cast %11 : vector<4xf32> to vector<4x1xf32>
    %13 = vector.broadcast %12 : vector<4x1xf32> to vector<4x10xf32>
    %14 = arith.divf %10, %13 : vector<4x10xf32>
    %15 = vector.extract_strided_slice %14 {offsets = [0, 0], sizes = [2, 10], strides = [1, 1]} : vector<4x10xf32> to vector<2x10xf32>
    %16 = vector.extract_strided_slice %14 {offsets = [2, 0], sizes = [2, 10], strides = [1, 1]} : vector<4x10xf32> to vector<2x10xf32>
    %17 = tpu.concatenate %15, %16 in 1 : vector<2x10xf32>, vector<2x10xf32> -> vector<2x20xf32>
    %c0_7 = arith.constant 0 : index
    %c0_8 = arith.constant 0 : index
    %18 = vector.load %arg6[%c0_7, %c0_8] : memref<2x20xf32, #tpu.memory_space<vmem>>, vector<2x20xf32>
    tpu.vector_store %arg6[%c0_7, %c0_8], %17 {strides = array<i32>} : memref<2x20xf32, #tpu.memory_space<vmem>>, vector<2x20xf32>,
    %19 = tpu.iota {dimensions = array<i32: 0>} : vector<10x100xi32>
    %20 = tpu.iota {dimensions = array<i32: 1>} : vector<10x100xi32>
    %c10_i32 = arith.constant 10 : i32
    %21 = vector.broadcast %c10_i32 : i32 to vector<10x100xi32>
    %22 = arith.muli %19, %21 : vector<10x100xi32>
    %23 = arith.cmpi sge, %20, %22 : vector<10x100xi32>
    %c1_i32 = arith.constant 1 : i32
    %24 = vector.broadcast %c1_i32 : i32 to vector<10x100xi32>
    %25 = arith.addi %19, %24 : vector<10x100xi32>
    %c10_i32_9 = arith.constant 10 : i32
    %26 = vector.broadcast %c10_i32_9 : i32 to vector<10x100xi32>
    %27 = arith.muli %25, %26 : vector<10x100xi32>
    %28 = arith.cmpi slt, %20, %27 : vector<10x100xi32>
    %29 = arith.andi %23, %28 : vector<10x100xi1>
    %30 = arith.extui %29 : vector<10x100xi1> to vector<10x100xi32>
    %31 = arith.sitofp %30 : vector<10x100xi32> to vector<10x100xf32>
    %cst_10 = arith.constant dense<0.000000e+00> : vector<2x100xf32>
    %32 = tpu.matmul %15, %31, %cst_10 {dimension_numbers = #tpu.dot_dimension_numbers<[1], [0], [0], [1], [0, 0, 1, 1], [], []>} : vector<2x10xf32>, vector<10x100xf32>, vector<2x100xf32> -> vector<2x100xf32>
    %33 = tpu.concatenate %16, %16, %16, %16, %16, %16, %16, %16, %16, %16 in 1 : vector<2x10xf32>, vector<2x10xf32>, vector<2x10xf32>, vector<2x10xf32>, vector<2x10xf32>, vector<2x10xf32>, vector<2x10xf32>, vector<2x10xf32>, vector<2x10xf32>, vector<2x10xf32> -> vector<2x100xf32>
    %34 = arith.mulf %32, %33 : vector<2x100xf32>
    %c0_11 = arith.constant 0 : index
    %c0_12 = arith.constant 0 : index
    %35 = vector.load %arg4[%c0_11, %c0_12] : memref<100x19xf32, #tpu.memory_space<vmem>>, vector<100x19xf32>
    %cst_13 = arith.constant dense<0.000000e+00> : vector<2x19xf32>
    %36 = tpu.matmul %34, %35, %cst_13 {dimension_numbers = #tpu.dot_dimension_numbers<[1], [0], [0], [1], [0, 0, 1, 1], [], []>} : vector<2x100xf32>, vector<100x19xf32>, vector<2x19xf32> -> vector<2x19xf32>
    %c0_14 = arith.constant 0 : index
    %c0_15 = arith.constant 0 : index
    %37 = vector.load %arg5[%c0_14, %c0_15] : memref<2x19xf32, #tpu.memory_space<vmem>>, vector<2x19xf32>
    tpu.vector_store %arg5[%c0_14, %c0_15], %36 {strides = array<i32>} : memref<2x19xf32, #tpu.memory_space<vmem>>, vector<2x19xf32>,
    return
  }
  func.func @transform_0(%arg0: i32) -> (i32, i32) {
    %c0_i32 = arith.constant 0 : i32
    %c0_i32_0 = arith.constant 0 : i32
    %c0_i32_1 = arith.constant 0 : i32
    return %c0_i32, %c0_i32_0 : i32, i32
  }
  func.func @transform_1(%arg0: i32) -> (i32, i32) {
    %c0_i32 = arith.constant 0 : i32
    %c0_i32_0 = arith.constant 0 : i32
    %c0_i32_1 = arith.constant 0 : i32
    return %c0_i32, %c0_i32_0 : i32, i32
  }
  func.func @transform_2(%arg0: i32) -> (i32, i32) {
    %c0_i32 = arith.constant 0 : i32
    %c0_i32_0 = arith.constant 0 : i32
    %c0_i32_1 = arith.constant 0 : i32
    return %c0_i32, %c0_i32_0 : i32, i32
  }
  func.func @transform_3(%arg0: i32) -> (i32, i32) {
    %c0_i32 = arith.constant 0 : i32
    %c0_i32_0 = arith.constant 0 : i32
    %c0_i32_1 = arith.constant 0 : i32
    return %c0_i32, %c0_i32_0 : i32, i32
  }
  func.func @transform_4(%arg0: i32) -> (i32, i32) {
    %c0_i32 = arith.constant 0 : i32
    %c0_i32_0 = arith.constant 0 : i32
    %c0_i32_1 = arith.constant 0 : i32
    return %c0_i32, %c0_i32_0 : i32, i32
  }
  func.func @transform_5(%arg0: i32) -> (i32, i32) {
    %c0_i32 = arith.constant 0 : i32
    %c0_i32_0 = arith.constant 0 : i32
    %c0_i32_1 = arith.constant 0 : i32
    return %c0_i32, %c0_i32_0 : i32, i32
  }
}

</mosaic_0001>

<bundles_post_ra>
// kernel: mnist_cbm_forward.3
= control target key start
LH: loop header
LB: loop body
LE: loop exit
PB: predicated region body
PF: predicated region fallthrough
CT: control target
= control target key end

     0   :  { %8 = vsyncpa [#allocation3], 0  ;;  %s1709_s0 = inlined_call_operand.vmem [shape: f32[784,9], index: 0, kind: input, shape index: {}]   ;;  %s1710_s1 = inlined_call_operand.hbm [shape: f32[9,128], index: 1, kind: input, shape index: {}]   ;;  %s1711_s2 = inlined_call_operand.hbm [shape: f32[1,128], index: 2, kind: input, shape index: {}]   ;;  %s1712_s3 = inlined_call_operand.vmem [shape: f32[784,128], index: 3, kind: output, shape index: {}]  }
   0x1   :  { %9 = vsyncpa [#allocation5], 0  ;;  %s1305_s12 = smov 0  }
   0x2 LB: > { %s898_s13 = sadd.s32 4294967295, %s1275_s12   ;;  %p900_p0 = scmp.ge.s32.totalorder %s1275_s12, 1  ;;  %s1275_s12 = sphi %s1305_s12, %s15_s12  }
   0x3   : > { %p114_p1 = scmp.lt.s32.totalorder %s1275_s12, 3  ;;  %s1277_s14 = smov [#allocation2]  }
   0x4   : > { %s126_s15 = sshll.u32 %s1277_s14, 4  ;;  %p1319_p3 = scmp.eq.s32.totalorder %s898_s13, 0  ;;  %s127_s15 = int_to_ptr.vmem [resolvable:$true] %s126_s15 }
   0x5   : > { %p1313_p2 = pnand %p900_p0, %p114_p1  ;;  %s1278_s18 = smov [#allocation4]  }
   0x6   : > { %s1717_s17 = scalar_select %p1319_p3, 1, 0 }
   0x7   : > { %s1716_s16 = scalar_select %p1313_p2, 1, 0 }
   0x8   : > { %p1178_p4 = pneg %p1313_p2  ;;  %s140_s19 = sshll.u32 %s1278_s18, 4  ;;  %s1331_s19 = int_to_ptr.vmem [resolvable:$true] %s140_s19 }
   0x9   : > { %s1205_s23 = scalar_lea.hbm %s1710_s1, 256 }
   0xa   : > { %p1327_p5 = pnand %p1319_p3, %p1178_p4  ;;  %p1206_p6 = scmp.ne.s32.totalorder %s1710_s1, %s1205_s23 }
   0xb   : > { %p1212_p10 = scmp.lt.u32.totalorder %s1205_s23, %s1710_s1 }
   0xc   : > { %p1207_p7 = pneg %p1327_p5 }
   0xe   : > { %p1208_p8 = pnand %p1207_p7, %p1206_p6 }
  0x10   : > { %p1209_p9 = pneg %p1208_p8 }
  0x12   : > { %p1214_p11 = pnand %p1212_p10, %p1209_p9 }
  0x14   : > { %1217 = shalt.err (!%p1214_p11)
}
  0x15   : > { %s1218_s28 = scalar_lea.vmem %s127_s15, 256  ;;  %p1226_p1 = scmp.lt.s32.totalorder %s127_s15, %s127_s15 }
  0x16   : > { %p1219_p12 = scmp.ne.s32.totalorder %s127_s15, %s1218_s28  ;;  %p1227_p4 = scmp.lt.s32.totalorder %s1218_s28, %s1218_s28 }
  0x18   : > { %p1221_p13 = pnand %p1219_p12, %p1207_p7  ;;  %p1228_p3 = por %p1227_p4, %p1226_p1 }
  0x1a   : > { %p1222_p0 = pneg %p1221_p13 }
  0x1c   : > { %p1229_p2 = pnand %p1228_p3, %p1222_p0 }
  0x1e   : > { %1232 = shalt.err (!%p1229_p2)
}
  0x1f   : > { %s1279_s29 = smov 128   ;;  %s1280_s30 = smov 8  }
  0x20   : > { %1181 = dma.hbm_to_vmem [thread:$0]  (!%p1327_p5), %s1710_s1, 256, %s127_s15, [#allocation3], %s1279_s29, %s1279_s29, %s1280_s30  }
  0x21   : > { %s1233_s8 = scalar_lea.hbm %s1711_s2, 16 }
  0x22   : > { %p1234_p6 = scmp.ne.s32.totalorder %s1711_s2, %s1233_s8  ;;  %p1240_p8 = scmp.lt.u32.totalorder %s1233_s8, %s1711_s2 }
  0x24   : > { %p1236_p2 = pnand %p1234_p6, %p1207_p7 }
  0x26   : > { %p1237_p3 = pneg %p1236_p2 }
  0x28   : > { %p1242_p9 = pnand %p1240_p8, %p1237_p3 }
  0x2a   : > { %1245 = shalt.err (!%p1242_p9)
}
  0x2b   : > { %s1246_s15 = scalar_lea.vmem %s1331_s19, 16  ;;  %s1253_s18 = scalar_lea.vmem %s1331_s19, 32 }
  0x2c   : > { %p1247_p10 = scmp.ne.s32.totalorder %s1331_s19, %s1246_s15  ;;  %p1254_p13 = scmp.lt.s32.totalorder %s1331_s19, %s1331_s19 }
  0x2d   : > { %p1255_p0 = scmp.lt.s32.totalorder %s1253_s18, %s1246_s15 }
  0x2e   : > { %p1249_p11 = pnand %p1247_p10, %p1207_p7 }
  0x2f   : > { %p1256_p1 = por %p1255_p0, %p1254_p13 }
  0x30   : > { %p1250_p12 = pneg %p1249_p11 }
  0x32   : > { %p1257_p4 = pnand %p1256_p1, %p1250_p12 }
  0x34   : > { %1260 = shalt.err (!%p1257_p4)
}
  0x35   : > { %1184 = dma.hbm_to_vmem [thread:$0]  (!%p1327_p5), %s1711_s2, 16, %s1331_s19, [#allocation5]  }
  0x36   : > { %p1719_p6 = scmp.ne.s32.totalorder %s1716_s16, 0 }
  0x37   : > { %p1720_p7 = scmp.ne.s32.totalorder (!%p1719_p6), %s1717_s17, 0 }
  0x38   : > { %162 = sbr.rel (%p1719_p6) target bundleno = 387 (0x183), region = 32 }
  0x3f   : > { %1266 = dma.done.wait (%p1720_p7), [#allocation3], 256  }
  0x40   : > { %1268 = vsyncadd (%p1720_p7), [#allocation3], 4294967040 }
  0x41   : > { %1270 = dma.done.wait (%p1720_p7), [#allocation5], 16  }
  0x42   : > { %1272 = vsyncadd (%p1720_p7), [#allocation5], 4294967280  ;;  %v1281_v0 = vmov 0.0|0.0   ;;  %s190_s19 = smul.u32 49, %s898_s13  ;;  %vm1282_vm0 = vmmov 0   ;;  %v1283_v1 = vmov 0.0  }
  0x43   : > { %1164 = vmatprep.subr.bf16.mxu0 %v1281_v0  ;;  %1168 = vmatprep.subr.bf16.mxu1 %v1281_v0  ;;  %vm408_vm1 = vcmask 1040384   ;;  %v251_v2 = vld [vmem:[#allocation2] sm:$0xff]  ;;  %v252_v3 = vld [vmem:[#allocation2 + $0x8] sm:$0x1]  ;;  %vm1284_vm2 = vmmov 1   ;;  %vm260_vm4 = vcmask 72704  }
  0x44   : > { %1017 = vmatprep.mubr.msk.f32.mxu0 %vm1282_vm0, %v1283_v1  ;;  %1092 = vmatprep.mubr.msk.f32.mxu1 %vm1282_vm0, %v1283_v1  ;;  %p191_p5 = scmp.lt.s32.totalorder %s190_s19, 97  ;;  %vm1166_vm3 = vmpackc.low %vm408_vm1, %vm1284_vm2  ;;  %v1165_v4 = vpack.c.bf16 %v252_v3, %v251_v2  ;;  %v1599_v54 = vld [vmem:[#allocation4] ss:$0 sm:$0xff] }
  0x46   : > { %s1722_s19 = smov (!%p191_p5, %s190_s19), 97  ;;  %1167 = vmatpush3.bf16.msk.msra.mxu0 %vm1166_vm3, %v1165_v4  ;;  %1169 = vmatpush3.bf16.msk.msra.mxu1 %vm1166_vm3, %v1165_v4 }
  0x47   : > { %s907_s16 = sshll.u32 %s1722_s19, 3 }
  0x48   : > { %s1405_s20 = scalar_lea.vmem %s1709_s0, %s907_s16  ;;  %s1608_s25 = scalar_lea.vmem %s1712_s3, %s907_s16 }
  0x49   : > { %v202_v5 = vld [vmem:[%s1405_s20] sm:$0xff]  ;;  %v227_v6 = vld [vmem:[%s1405_s20 + $0xc8] sm:$0xff]  ;;  %v228_v8 = vld [vmem:[%s1405_s20 + $0xd0] sm:$0xff] }
  0x4a   : > { %1018 = vmatmul.mubr.msk.f32.vlgmr.msra.gmra.mrb[0].mxu0 %vm260_vm4, %v202_v5  ;;  %1093 = vmatmul.mubr.msk.f32.vlgmr.msra.gmra.mrb[0].mxu1 %vm260_vm4, %v227_v6  ;;  %v203_v7 = vld [vmem:[%s1405_s20 + $0x8] sm:$0xff]  ;;  %v204_v9 = vld [vmem:[%s1405_s20 + $0x10] sm:$0xff]  ;;  %v229_v10 = vld [vmem:[%s1405_s20 + $0xd8] sm:$0xff] }
  0x4b   : > { %1020 = vmatprep.mubr.msk.f32.mxu0 %vm1282_vm0, %v1283_v1  ;;  %1095 = vmatprep.mubr.msk.f32.mxu1 %vm1282_vm0, %v1283_v1  ;;  %v205_v11 = vld [vmem:[%s1405_s20 + $0x18] sm:$0xff]  ;;  %v230_v12 = vld [vmem:[%s1405_s20 + $0xe0] sm:$0xff]  ;;  %v231_v14 = vld [vmem:[%s1405_s20 + $0xe8] sm:$0xff] }
  0x4c   : > { %v206_v13 = vld [vmem:[%s1405_s20 + $0x20] sm:$0xff]  ;;  %v207_v15 = vld [vmem:[%s1405_s20 + $0x28] sm:$0xff]  ;;  %v232_v16 = vld [vmem:[%s1405_s20 + $0xf0] sm:$0xff] }
  0x4d   : > { %v208_v17 = vld [vmem:[%s1405_s20 + $0x30] sm:$0xff]  ;;  %v233_v18 = vld [vmem:[%s1405_s20 + $0xf8] sm:$0xff]  ;;  %v234_v20 = vld [vmem:[%s1405_s20 + $0x100] sm:$0xff] }
  0x4e   : > { %1021 = vmatmul.mubr.msk.f32.gmra.mrb[2].mxu0 %vm260_vm4, %v203_v7  ;;  %1096 = vmatmul.mubr.msk.f32.gmra.mrb[2].mxu1 %vm260_vm4, %v228_v8  ;;  %v209_v19 = vld [vmem:[%s1405_s20 + $0x38] sm:$0xff]  ;;  %v210_v21 = vld [vmem:[%s1405_s20 + $0x40] sm:$0xff]  ;;  %v235_v22 = vld [vmem:[%s1405_s20 + $0x108] sm:$0xff] }
  0x4f   : > { %1023 = vmatprep.mubr.msk.f32.mxu0 %vm1282_vm0, %v1283_v1  ;;  %1098 = vmatprep.mubr.msk.f32.mxu1 %vm1282_vm0, %v1283_v1  ;;  %v211_v23 = vld [vmem:[%s1405_s20 + $0x48] sm:$0xff]  ;;  %v236_v24 = vld [vmem:[%s1405_s20 + $0x110] sm:$0xff]  ;;  %v237_v26 = vld [vmem:[%s1405_s20 + $0x118] sm:$0xff] }
  0x50   : > { %v212_v25 = vld [vmem:[%s1405_s20 + $0x50] sm:$0xff]  ;;  %v213_v27 = vld [vmem:[%s1405_s20 + $0x58] sm:$0xff]  ;;  %v238_v28 = vld [vmem:[%s1405_s20 + $0x120] sm:$0xff] }
  0x51   : > { %v214_v29 = vld [vmem:[%s1405_s20 + $0x60] sm:$0xff]  ;;  %v239_v30 = vld [vmem:[%s1405_s20 + $0x128] sm:$0xff]  ;;  %v240_v32 = vld [vmem:[%s1405_s20 + $0x130] sm:$0xff] }
  0x52   : > { %1024 = vmatmul.mubr.msk.f32.gmra.mrb[4].mxu0 %vm260_vm4, %v204_v9  ;;  %1099 = vmatmul.mubr.msk.f32.gmra.mrb[4].mxu1 %vm260_vm4, %v229_v10  ;;  %v215_v31 = vld [vmem:[%s1405_s20 + $0x68] sm:$0xff]  ;;  %v216_v33 = vld [vmem:[%s1405_s20 + $0x70] sm:$0xff]  ;;  %v241_v34 = vld [vmem:[%s1405_s20 + $0x138] sm:$0xff] }
  0x53   : > { %1026 = vmatprep.mubr.msk.f32.mxu0 %vm1282_vm0, %v1283_v1  ;;  %1101 = vmatprep.mubr.msk.f32.mxu1 %vm1282_vm0, %v1283_v1  ;;  %v217_v35 = vld [vmem:[%s1405_s20 + $0x78] sm:$0xff]  ;;  %v242_v36 = vld [vmem:[%s1405_s20 + $0x140] sm:$0xff]  ;;  %v243_v38 = vld [vmem:[%s1405_s20 + $0x148] sm:$0xff] }
  0x54   : > { %v218_v37 = vld [vmem:[%s1405_s20 + $0x80] sm:$0xff]  ;;  %v219_v39 = vld [vmem:[%s1405_s20 + $0x88] sm:$0xff]  ;;  %v244_v40 = vld [vmem:[%s1405_s20 + $0x150] sm:$0xff] }
  0x55   : > { %v220_v41 = vld [vmem:[%s1405_s20 + $0x90] sm:$0xff]  ;;  %v245_v42 = vld [vmem:[%s1405_s20 + $0x158] sm:$0xff]  ;;  %v246_v44 = vld [vmem:[%s1405_s20 + $0x160] sm:$0xff] }
  0x56   : > { %1027 = vmatmul.mubr.msk.f32.gmra.mrb[6].mxu0 %vm260_vm4, %v205_v11  ;;  %1102 = vmatmul.mubr.msk.f32.gmra.mrb[6].mxu1 %vm260_vm4, %v230_v12  ;;  %v221_v43 = vld [vmem:[%s1405_s20 + $0x98] sm:$0xff]  ;;  %v222_v45 = vld [vmem:[%s1405_s20 + $0xa0] sm:$0xff]  ;;  %v247_v46 = vld [vmem:[%s1405_s20 + $0x168] sm:$0xff] }
  0x57   : > { %1029 = vmatprep.mubr.msk.f32.mxu0 %vm1282_vm0, %v1283_v1  ;;  %1104 = vmatprep.mubr.msk.f32.mxu1 %vm1282_vm0, %v1283_v1  ;;  %v223_v47 = vld [vmem:[%s1405_s20 + $0xa8] sm:$0xff]  ;;  %v248_v48 = vld [vmem:[%s1405_s20 + $0x170] sm:$0xff]  ;;  %v249_v50 = vld [vmem:[%s1405_s20 + $0x178] sm:$0xff] }
  0x58   : > { %v224_v49 = vld [vmem:[%s1405_s20 + $0xb0] sm:$0xff]  ;;  %v225_v51 = vld [vmem:[%s1405_s20 + $0xb8] sm:$0xff]  ;;  %v250_v52 = vld [vmem:[%s1405_s20 + $0x180] sm:$0xff] }
  0x59   : > { %v226_v53 = vld [vmem:[%s1405_s20 + $0xc0] sm:$0xff] }
  0x5a   : > { %1030 = vmatmul.mubr.msk.f32.gmra.mrb[8].mxu0 %vm260_vm4, %v206_v13  ;;  %1105 = vmatmul.mubr.msk.f32.gmra.mrb[8].mxu1 %vm260_vm4, %v231_v14 }
  0x5b   : > { %1032 = vmatprep.mubr.msk.f32.mxu0 %vm1282_vm0, %v1283_v1  ;;  %1107 = vmatprep.mubr.msk.f32.mxu1 %vm1282_vm0, %v1283_v1 }
  0x5e   : > { %1033 = vmatmul.mubr.msk.f32.gmra.mrb[10].mxu0 %vm260_vm4, %v207_v15  ;;  %1108 = vmatmul.mubr.msk.f32.gmra.mrb[10].mxu1 %vm260_vm4, %v232_v16 }
  0x5f   : > { %1035 = vmatprep.mubr.msk.f32.mxu0 %vm1282_vm0, %v1283_v1  ;;  %1110 = vmatprep.mubr.msk.f32.mxu1 %vm1282_vm0, %v1283_v1 }
  0x62   : > { %1036 = vmatmul.mubr.msk.f32.gmra.mrb[12].mxu0 %vm260_vm4, %v208_v17  ;;  %1111 = vmatmul.mubr.msk.f32.gmra.mrb[12].mxu1 %vm260_vm4, %v233_v18 }
  0x63   : > { %1038 = vmatprep.mubr.msk.f32.mxu0 %vm1282_vm0, %v1283_v1  ;;  %1113 = vmatprep.mubr.msk.f32.mxu1 %vm1282_vm0, %v1283_v1 }
  0x66   : > { %1039 = vmatmul.mubr.msk.f32.gmra.mrb[14].mxu0 %vm260_vm4, %v209_v19  ;;  %1114 = vmatmul.mubr.msk.f32.gmra.mrb[14].mxu1 %vm260_vm4, %v234_v20 }
  0x67   : > { %1041 = vmatprep.mubr.msk.f32.mxu0 %vm1282_vm0, %v1283_v1  ;;  %1116 = vmatprep.mubr.msk.f32.mxu1 %vm1282_vm0, %v1283_v1 }
  0x6a   : > { %1042 = vmatmul.mubr.msk.f32.gmra.mrb[16].mxu0 %vm260_vm4, %v210_v21  ;;  %1117 = vmatmul.mubr.msk.f32.gmra.mrb[16].mxu1 %vm260_vm4, %v235_v22 }
  0x6b   : > { %1044 = vmatprep.mubr.msk.f32.mxu0 %vm1282_vm0, %v1283_v1  ;;  %1119 = vmatprep.mubr.msk.f32.mxu1 %vm1282_vm0, %v1283_v1 }
  0x6e   : > { %1045 = vmatmul.mubr.msk.f32.gmra.mrb[18].mxu0 %vm260_vm4, %v211_v23  ;;  %1120 = vmatmul.mubr.msk.f32.gmra.mrb[18].mxu1 %vm260_vm4, %v236_v24 }
  0x6f   : > { %1047 = vmatprep.mubr.msk.f32.mxu0 %vm1282_vm0, %v1283_v1  ;;  %1122 = vmatprep.mubr.msk.f32.mxu1 %vm1282_vm0, %v1283_v1 }
  0x72   : > { %1048 = vmatmul.mubr.msk.f32.gmra.mrb[20].mxu0 %vm260_vm4, %v212_v25  ;;  %1123 = vmatmul.mubr.msk.f32.gmra.mrb[20].mxu1 %vm260_vm4, %v237_v26 }
  0x73   : > { %1050 = vmatprep.mubr.msk.f32.mxu0 %vm1282_vm0, %v1283_v1  ;;  %1125 = vmatprep.mubr.msk.f32.mxu1 %vm1282_vm0, %v1283_v1 }
  0x76   : > { %1051 = vmatmul.mubr.msk.f32.gmra.mrb[22].mxu0 %vm260_vm4, %v213_v27  ;;  %1126 = vmatmul.mubr.msk.f32.gmra.mrb[22].mxu1 %vm260_vm4, %v238_v28 }
  0x77   : > { %1053 = vmatprep.mubr.msk.f32.mxu0 %vm1282_vm0, %v1283_v1  ;;  %1128 = vmatprep.mubr.msk.f32.mxu1 %vm1282_vm0, %v1283_v1 }
  0x7a   : > { %1054 = vmatmul.mubr.msk.f32.gmra.mrb[24].mxu0 %vm260_vm4, %v214_v29  ;;  %1129 = vmatmul.mubr.msk.f32.gmra.mrb[24].mxu1 %vm260_vm4, %v239_v30 }
  0x7b   : > { %1056 = vmatprep.mubr.msk.f32.mxu0 %vm1282_vm0, %v1283_v1  ;;  %1131 = vmatprep.mubr.msk.f32.mxu1 %vm1282_vm0, %v1283_v1 }
  0x7e   : > { %1057 = vmatmul.mubr.msk.f32.gmra.mrb[26].mxu0 %vm260_vm4, %v215_v31  ;;  %1132 = vmatmul.mubr.msk.f32.gmra.mrb[26].mxu1 %vm260_vm4, %v240_v32 }
  0x7f   : > { %1059 = vmatprep.mubr.msk.f32.mxu0 %vm1282_vm0, %v1283_v1  ;;  %1134 = vmatprep.mubr.msk.f32.mxu1 %vm1282_vm0, %v1283_v1 }
  0x82   : > { %1060 = vmatmul.mubr.msk.f32.gmra.mrb[28].mxu0 %vm260_vm4, %v216_v33  ;;  %1135 = vmatmul.mubr.msk.f32.gmra.mrb[28].mxu1 %vm260_vm4, %v241_v34 }
  0x83   : > { %1062 = vmatprep.mubr.msk.f32.mxu0 %vm1282_vm0, %v1283_v1  ;;  %1137 = vmatprep.mubr.msk.f32.mxu1 %vm1282_vm0, %v1283_v1 }
  0x86   : > { %1063 = vmatmul.mubr.msk.f32.gmra.mrb[30].mxu0 %vm260_vm4, %v217_v35  ;;  %1138 = vmatmul.mubr.msk.f32.gmra.mrb[30].mxu1 %vm260_vm4, %v242_v36 }
  0x87   : > { %1065 = vmatprep.mubr.msk.f32.mxu0 %vm1282_vm0, %v1283_v1  ;;  %1140 = vmatprep.mubr.msk.f32.mxu1 %vm1282_vm0, %v1283_v1 }
  0x8a   : > { %1066 = vmatmul.mubr.msk.f32.gmra.mrb[32].mxu0 %vm260_vm4, %v218_v37  ;;  %1141 = vmatmul.mubr.msk.f32.gmra.mrb[32].mxu1 %vm260_vm4, %v243_v38 }
  0x8b   : > { %1068 = vmatprep.mubr.msk.f32.mxu0 %vm1282_vm0, %v1283_v1  ;;  %1143 = vmatprep.mubr.msk.f32.mxu1 %vm1282_vm0, %v1283_v1 }
  0x8e   : > { %1069 = vmatmul.mubr.msk.f32.gmra.mrb[34].mxu0 %vm260_vm4, %v219_v39  ;;  %1144 = vmatmul.mubr.msk.f32.gmra.mrb[34].mxu1 %vm260_vm4, %v244_v40 }
  0x8f   : > { %1071 = vmatprep.mubr.msk.f32.mxu0 %vm1282_vm0, %v1283_v1  ;;  %1146 = vmatprep.mubr.msk.f32.mxu1 %vm1282_vm0, %v1283_v1 }
  0x92   : > { %1072 = vmatmul.mubr.msk.f32.gmra.mrb[36].mxu0 %vm260_vm4, %v220_v41  ;;  %1147 = vmatmul.mubr.msk.f32.gmra.mrb[36].mxu1 %vm260_vm4, %v245_v42 }
  0x93   : > { %1074 = vmatprep.mubr.msk.f32.mxu0 %vm1282_vm0, %v1283_v1  ;;  %1149 = vmatprep.mubr.msk.f32.mxu1 %vm1282_vm0, %v1283_v1 }
  0x96   : > { %1075 = vmatmul.mubr.msk.f32.gmra.mrb[38].mxu0 %vm260_vm4, %v221_v43  ;;  %1150 = vmatmul.mubr.msk.f32.gmra.mrb[38].mxu1 %vm260_vm4, %v246_v44 }
  0x97   : > { %1077 = vmatprep.mubr.msk.f32.mxu0 %vm1282_vm0, %v1283_v1  ;;  %1152 = vmatprep.mubr.msk.f32.mxu1 %vm1282_vm0, %v1283_v1 }
  0x9a   : > { %1078 = vmatmul.mubr.msk.f32.gmra.mrb[40].mxu0 %vm260_vm4, %v222_v45  ;;  %1153 = vmatmul.mubr.msk.f32.gmra.mrb[40].mxu1 %vm260_vm4, %v247_v46 }
  0x9b   : > { %1080 = vmatprep.mubr.msk.f32.mxu0 %vm1282_vm0, %v1283_v1  ;;  %1155 = vmatprep.mubr.msk.f32.mxu1 %vm1282_vm0, %v1283_v1 }
  0x9e   : > { %1081 = vmatmul.mubr.msk.f32.gmra.mrb[42].mxu0 %vm260_vm4, %v223_v47  ;;  %1156 = vmatmul.mubr.msk.f32.gmra.mrb[42].mxu1 %vm260_vm4, %v248_v48 }
  0x9f   : > { %1083 = vmatprep.mubr.msk.f32.mxu0 %vm1282_vm0, %v1283_v1  ;;  %1158 = vmatprep.mubr.msk.f32.mxu1 %vm1282_vm0, %v1283_v1 }
  0xa2   : > { %1084 = vmatmul.mubr.msk.f32.gmra.mrb[44].mxu0 %vm260_vm4, %v224_v49  ;;  %1159 = vmatmul.mubr.msk.f32.gmra.mrb[44].mxu1 %vm260_vm4, %v249_v50 }
  0xa3   : > { %1086 = vmatprep.mubr.msk.f32.mxu0 %vm1282_vm0, %v1283_v1  ;;  %1161 = vmatprep.mubr.msk.f32.mxu1 %vm1282_vm0, %v1283_v1 }
  0xa6   : > { %1087 = vmatmul.mubr.msk.f32.gmra.mrb[46].mxu0 %vm260_vm4, %v225_v51  ;;  %1162 = vmatmul.mubr.msk.f32.gmra.mrb[46].mxu1 %vm260_vm4, %v250_v52 }
  0xa7   : > { %1089 = vmatprep.mubr.msk.f32.mxu0 %vm1282_vm0, %v1283_v1 }
  0xaa   : > { %1090 = vmatmul.mubr.msk.f32.gmra.mrb[48].mxu0 %vm260_vm4, %v226_v53 }
 0x11d   : > { %v478_v55 = vpop.f32.mrb[0].mxu0  ;;  %v603_v56 = vpop.f32.mrb[0].mxu1 }
 0x11e   : > { %v479_v57 = vadd.f32 %v1599_v54, %v478_v55  ;;  %v1019_v58 = vpop.f32.mrb[1].mxu0  ;;  %v604_v59 = vadd.f32 %v1599_v54, %v603_v56  ;;  %v1094_v60 = vpop.f32.mrb[1].mxu1 }
 0x120   : > { %v722_v61 = vmax.f32 %v479_v57, 0.0  ;;  %v747_v62 = vmax.f32 %v604_v59, 0.0 }
 0x121   : > { %v483_v63 = vpop.f32.mrb[2].mxu0  ;;  %v608_v0 = vpop.f32.mrb[2].mxu1 }
 0x122   : > { %771 = vst [vmem:[%s1608_s25] sm:$0xff] %v722_v61  ;;  %796 = vst [vmem:[%s1608_s25 + $0xc8] sm:$0xff] %v747_v62  ;;  %v484_v1 = vadd.f32 %v1599_v54, %v483_v63  ;;  %v1022_v2 = vpop.f32.mrb[3].mxu0  ;;  %v609_v3 = vadd.f32 %v1599_v54, %v608_v0  ;;  %v1097_v4 = vpop.f32.mrb[3].mxu1 }
 0x124   : > { %v723_v5 = vmax.f32 %v484_v1, 0.0  ;;  %v748_v6 = vmax.f32 %v609_v3, 0.0 }
 0x125   : > { %v488_v7 = vpop.f32.mrb[4].mxu0  ;;  %v613_v8 = vpop.f32.mrb[4].mxu1 }
 0x126   : > { %772 = vst [vmem:[%s1608_s25 + $0x8] sm:$0xff] %v723_v5  ;;  %797 = vst [vmem:[%s1608_s25 + $0xd0] sm:$0xff] %v748_v6  ;;  %v489_v9 = vadd.f32 %v1599_v54, %v488_v7  ;;  %v1025_v10 = vpop.f32.mrb[5].mxu0  ;;  %v614_v11 = vadd.f32 %v1599_v54, %v613_v8  ;;  %v1100_v12 = vpop.f32.mrb[5].mxu1 }
 0x128   : > { %v724_v13 = vmax.f32 %v489_v9, 0.0  ;;  %v749_v14 = vmax.f32 %v614_v11, 0.0 }
 0x129   : > { %v493_v15 = vpop.f32.mrb[6].mxu0  ;;  %v618_v16 = vpop.f32.mrb[6].mxu1 }
 0x12a   : > { %773 = vst [vmem:[%s1608_s25 + $0x10] sm:$0xff] %v724_v13  ;;  %798 = vst [vmem:[%s1608_s25 + $0xd8] sm:$0xff] %v749_v14  ;;  %v494_v17 = vadd.f32 %v1599_v54, %v493_v15  ;;  %v1028_v18 = vpop.f32.mrb[7].mxu0  ;;  %v619_v19 = vadd.f32 %v1599_v54, %v618_v16  ;;  %v1103_v20 = vpop.f32.mrb[7].mxu1 }
 0x12c   : > { %v725_v21 = vmax.f32 %v494_v17, 0.0  ;;  %v750_v22 = vmax.f32 %v619_v19, 0.0 }
 0x12d   : > { %v498_v23 = vpop.f32.mrb[8].mxu0  ;;  %v623_v24 = vpop.f32.mrb[8].mxu1 }
 0x12e   : > { %774 = vst [vmem:[%s1608_s25 + $0x18] sm:$0xff] %v725_v21  ;;  %799 = vst [vmem:[%s1608_s25 + $0xe0] sm:$0xff] %v750_v22  ;;  %v499_v25 = vadd.f32 %v1599_v54, %v498_v23  ;;  %v1031_v26 = vpop.f32.mrb[9].mxu0  ;;  %v624_v27 = vadd.f32 %v1599_v54, %v623_v24  ;;  %v1106_v28 = vpop.f32.mrb[9].mxu1 }
 0x130   : > { %v726_v29 = vmax.f32 %v499_v25, 0.0  ;;  %v751_v30 = vmax.f32 %v624_v27, 0.0 }
 0x131   : > { %v503_v31 = vpop.f32.mrb[10].mxu0  ;;  %v628_v32 = vpop.f32.mrb[10].mxu1 }
 0x132   : > { %775 = vst [vmem:[%s1608_s25 + $0x20] sm:$0xff] %v726_v29  ;;  %800 = vst [vmem:[%s1608_s25 + $0xe8] sm:$0xff] %v751_v30  ;;  %v504_v33 = vadd.f32 %v1599_v54, %v503_v31  ;;  %v1034_v34 = vpop.f32.mrb[11].mxu0  ;;  %v629_v35 = vadd.f32 %v1599_v54, %v628_v32  ;;  %v1109_v36 = vpop.f32.mrb[11].mxu1 }
 0x134   : > { %v727_v37 = vmax.f32 %v504_v33, 0.0  ;;  %v752_v38 = vmax.f32 %v629_v35, 0.0 }
 0x135   : > { %v508_v39 = vpop.f32.mrb[12].mxu0  ;;  %v633_v40 = vpop.f32.mrb[12].mxu1 }
 0x136   : > { %776 = vst [vmem:[%s1608_s25 + $0x28] sm:$0xff] %v727_v37  ;;  %801 = vst [vmem:[%s1608_s25 + $0xf0] sm:$0xff] %v752_v38  ;;  %v509_v41 = vadd.f32 %v1599_v54, %v508_v39  ;;  %v1037_v42 = vpop.f32.mrb[13].mxu0  ;;  %v634_v43 = vadd.f32 %v1599_v54, %v633_v40  ;;  %v1112_v44 = vpop.f32.mrb[13].mxu1 }
 0x138   : > { %v728_v45 = vmax.f32 %v509_v41, 0.0  ;;  %v753_v46 = vmax.f32 %v634_v43, 0.0 }
 0x139   : > { %v513_v47 = vpop.f32.mrb[14].mxu0  ;;  %v638_v48 = vpop.f32.mrb[14].mxu1 }
 0x13a   : > { %777 = vst [vmem:[%s1608_s25 + $0x30] sm:$0xff] %v728_v45  ;;  %802 = vst [vmem:[%s1608_s25 + $0xf8] sm:$0xff] %v753_v46  ;;  %v514_v49 = vadd.f32 %v1599_v54, %v513_v47  ;;  %v1040_v50 = vpop.f32.mrb[15].mxu0  ;;  %v639_v51 = vadd.f32 %v1599_v54, %v638_v48  ;;  %v1115_v52 = vpop.f32.mrb[15].mxu1 }
 0x13c   : > { %v729_v53 = vmax.f32 %v514_v49, 0.0  ;;  %v754_v55 = vmax.f32 %v639_v51, 0.0 }
 0x13d   : > { %v518_v56 = vpop.f32.mrb[16].mxu0  ;;  %v643_v57 = vpop.f32.mrb[16].mxu1 }
 0x13e   : > { %778 = vst [vmem:[%s1608_s25 + $0x38] sm:$0xff] %v729_v53  ;;  %803 = vst [vmem:[%s1608_s25 + $0x100] sm:$0xff] %v754_v55  ;;  %v519_v58 = vadd.f32 %v1599_v54, %v518_v56  ;;  %v1043_v59 = vpop.f32.mrb[17].mxu0  ;;  %v644_v60 = vadd.f32 %v1599_v54, %v643_v57  ;;  %v1118_v61 = vpop.f32.mrb[17].mxu1 }
 0x140   : > { %v730_v62 = vmax.f32 %v519_v58, 0.0  ;;  %v755_v63 = vmax.f32 %v644_v60, 0.0 }
 0x141   : > { %v523_v0 = vpop.f32.mrb[18].mxu0  ;;  %v648_v1 = vpop.f32.mrb[18].mxu1 }
 0x142   : > { %779 = vst [vmem:[%s1608_s25 + $0x40] sm:$0xff] %v730_v62  ;;  %804 = vst [vmem:[%s1608_s25 + $0x108] sm:$0xff] %v755_v63  ;;  %v524_v2 = vadd.f32 %v1599_v54, %v523_v0  ;;  %v1046_v3 = vpop.f32.mrb[19].mxu0  ;;  %v649_v4 = vadd.f32 %v1599_v54, %v648_v1  ;;  %v1121_v5 = vpop.f32.mrb[19].mxu1 }
 0x144   : > { %v731_v6 = vmax.f32 %v524_v2, 0.0  ;;  %v756_v7 = vmax.f32 %v649_v4, 0.0 }
 0x145   : > { %v528_v8 = vpop.f32.mrb[20].mxu0  ;;  %v653_v9 = vpop.f32.mrb[20].mxu1 }
 0x146   : > { %780 = vst [vmem:[%s1608_s25 + $0x48] sm:$0xff] %v731_v6  ;;  %805 = vst [vmem:[%s1608_s25 + $0x110] sm:$0xff] %v756_v7  ;;  %v529_v10 = vadd.f32 %v1599_v54, %v528_v8  ;;  %v1049_v11 = vpop.f32.mrb[21].mxu0  ;;  %v654_v12 = vadd.f32 %v1599_v54, %v653_v9  ;;  %v1124_v13 = vpop.f32.mrb[21].mxu1 }
 0x148   : > { %v732_v14 = vmax.f32 %v529_v10, 0.0  ;;  %v757_v15 = vmax.f32 %v654_v12, 0.0 }
 0x149   : > { %v533_v16 = vpop.f32.mrb[22].mxu0  ;;  %v658_v17 = vpop.f32.mrb[22].mxu1 }
 0x14a   : > { %781 = vst [vmem:[%s1608_s25 + $0x50] sm:$0xff] %v732_v14  ;;  %806 = vst [vmem:[%s1608_s25 + $0x118] sm:$0xff] %v757_v15  ;;  %v534_v18 = vadd.f32 %v1599_v54, %v533_v16  ;;  %v1052_v19 = vpop.f32.mrb[23].mxu0  ;;  %v659_v20 = vadd.f32 %v1599_v54, %v658_v17  ;;  %v1127_v21 = vpop.f32.mrb[23].mxu1 }
 0x14c   : > { %v733_v22 = vmax.f32 %v534_v18, 0.0  ;;  %v758_v23 = vmax.f32 %v659_v20, 0.0 }
 0x14d   : > { %v538_v24 = vpop.f32.mrb[24].mxu0  ;;  %v663_v25 = vpop.f32.mrb[24].mxu1 }
 0x14e   : > { %782 = vst [vmem:[%s1608_s25 + $0x58] sm:$0xff] %v733_v22  ;;  %807 = vst [vmem:[%s1608_s25 + $0x120] sm:$0xff] %v758_v23  ;;  %v539_v26 = vadd.f32 %v1599_v54, %v538_v24  ;;  %v1055_v27 = vpop.f32.mrb[25].mxu0  ;;  %v664_v28 = vadd.f32 %v1599_v54, %v663_v25  ;;  %v1130_v29 = vpop.f32.mrb[25].mxu1 }
 0x150   : > { %v734_v30 = vmax.f32 %v539_v26, 0.0  ;;  %v759_v31 = vmax.f32 %v664_v28, 0.0 }
 0x151   : > { %v543_v32 = vpop.f32.mrb[26].mxu0  ;;  %v668_v33 = vpop.f32.mrb[26].mxu1 }
 0x152   : > { %783 = vst [vmem:[%s1608_s25 + $0x60] sm:$0xff] %v734_v30  ;;  %808 = vst [vmem:[%s1608_s25 + $0x128] sm:$0xff] %v759_v31  ;;  %v544_v34 = vadd.f32 %v1599_v54, %v543_v32  ;;  %v1058_v35 = vpop.f32.mrb[27].mxu0  ;;  %v669_v36 = vadd.f32 %v1599_v54, %v668_v33  ;;  %v1133_v37 = vpop.f32.mrb[27].mxu1 }
 0x154   : > { %v735_v38 = vmax.f32 %v544_v34, 0.0  ;;  %v760_v39 = vmax.f32 %v669_v36, 0.0 }
 0x155   : > { %v548_v40 = vpop.f32.mrb[28].mxu0  ;;  %v673_v41 = vpop.f32.mrb[28].mxu1 }
 0x156   : > { %784 = vst [vmem:[%s1608_s25 + $0x68] sm:$0xff] %v735_v38  ;;  %809 = vst [vmem:[%s1608_s25 + $0x130] sm:$0xff] %v760_v39  ;;  %v549_v42 = vadd.f32 %v1599_v54, %v548_v40  ;;  %v1061_v43 = vpop.f32.mrb[29].mxu0  ;;  %v674_v44 = vadd.f32 %v1599_v54, %v673_v41  ;;  %v1136_v45 = vpop.f32.mrb[29].mxu1 }
 0x158   : > { %v736_v46 = vmax.f32 %v549_v42, 0.0  ;;  %v761_v47 = vmax.f32 %v674_v44, 0.0 }
 0x159   : > { %v553_v48 = vpop.f32.mrb[30].mxu0  ;;  %v678_v49 = vpop.f32.mrb[30].mxu1 }
 0x15a   : > { %785 = vst [vmem:[%s1608_s25 + $0x70] sm:$0xff] %v736_v46  ;;  %810 = vst [vmem:[%s1608_s25 + $0x138] sm:$0xff] %v761_v47  ;;  %v554_v50 = vadd.f32 %v1599_v54, %v553_v48  ;;  %v1064_v51 = vpop.f32.mrb[31].mxu0  ;;  %v679_v52 = vadd.f32 %v1599_v54, %v678_v49  ;;  %v1139_v53 = vpop.f32.mrb[31].mxu1 }
 0x15c   : > { %v737_v55 = vmax.f32 %v554_v50, 0.0  ;;  %v762_v56 = vmax.f32 %v679_v52, 0.0 }
 0x15d   : > { %v558_v57 = vpop.f32.mrb[32].mxu0  ;;  %v683_v58 = vpop.f32.mrb[32].mxu1 }
 0x15e   : > { %786 = vst [vmem:[%s1608_s25 + $0x78] sm:$0xff] %v737_v55  ;;  %811 = vst [vmem:[%s1608_s25 + $0x140] sm:$0xff] %v762_v56  ;;  %v559_v59 = vadd.f32 %v1599_v54, %v558_v57  ;;  %v1067_v60 = vpop.f32.mrb[33].mxu0  ;;  %v684_v61 = vadd.f32 %v1599_v54, %v683_v58  ;;  %v1142_v62 = vpop.f32.mrb[33].mxu1 }
 0x160   : > { %v738_v63 = vmax.f32 %v559_v59, 0.0  ;;  %v763_v0 = vmax.f32 %v684_v61, 0.0 }
 0x161   : > { %v563_v1 = vpop.f32.mrb[34].mxu0  ;;  %v688_v2 = vpop.f32.mrb[34].mxu1 }
 0x162   : > { %787 = vst [vmem:[%s1608_s25 + $0x80] sm:$0xff] %v738_v63  ;;  %812 = vst [vmem:[%s1608_s25 + $0x148] sm:$0xff] %v763_v0  ;;  %v564_v3 = vadd.f32 %v1599_v54, %v563_v1  ;;  %v1070_v4 = vpop.f32.mrb[35].mxu0  ;;  %v689_v5 = vadd.f32 %v1599_v54, %v688_v2  ;;  %v1145_v6 = vpop.f32.mrb[35].mxu1 }
 0x164   : > { %v739_v7 = vmax.f32 %v564_v3, 0.0  ;;  %v764_v8 = vmax.f32 %v689_v5, 0.0 }
 0x165   : > { %v568_v9 = vpop.f32.mrb[36].mxu0  ;;  %v693_v10 = vpop.f32.mrb[36].mxu1 }
 0x166   : > { %788 = vst [vmem:[%s1608_s25 + $0x88] sm:$0xff] %v739_v7  ;;  %813 = vst [vmem:[%s1608_s25 + $0x150] sm:$0xff] %v764_v8  ;;  %v569_v11 = vadd.f32 %v1599_v54, %v568_v9  ;;  %v1073_v12 = vpop.f32.mrb[37].mxu0  ;;  %v694_v13 = vadd.f32 %v1599_v54, %v693_v10  ;;  %v1148_v14 = vpop.f32.mrb[37].mxu1 }
 0x168   : > { %v740_v15 = vmax.f32 %v569_v11, 0.0  ;;  %v765_v16 = vmax.f32 %v694_v13, 0.0 }
 0x169   : > { %v573_v17 = vpop.f32.mrb[38].mxu0  ;;  %v698_v18 = vpop.f32.mrb[38].mxu1 }
 0x16a   : > { %789 = vst [vmem:[%s1608_s25 + $0x90] sm:$0xff] %v740_v15  ;;  %814 = vst [vmem:[%s1608_s25 + $0x158] sm:$0xff] %v765_v16  ;;  %v574_v19 = vadd.f32 %v1599_v54, %v573_v17  ;;  %v1076_v20 = vpop.f32.mrb[39].mxu0  ;;  %v699_v21 = vadd.f32 %v1599_v54, %v698_v18  ;;  %v1151_v22 = vpop.f32.mrb[39].mxu1 }
 0x16c   : > { %v741_v23 = vmax.f32 %v574_v19, 0.0  ;;  %v766_v24 = vmax.f32 %v699_v21, 0.0 }
 0x16d   : > { %v578_v25 = vpop.f32.mrb[40].mxu0  ;;  %v703_v26 = vpop.f32.mrb[40].mxu1 }
 0x16e   : > { %790 = vst [vmem:[%s1608_s25 + $0x98] sm:$0xff] %v741_v23  ;;  %815 = vst [vmem:[%s1608_s25 + $0x160] sm:$0xff] %v766_v24  ;;  %v579_v27 = vadd.f32 %v1599_v54, %v578_v25  ;;  %v1079_v28 = vpop.f32.mrb[41].mxu0  ;;  %v704_v29 = vadd.f32 %v1599_v54, %v703_v26  ;;  %v1154_v30 = vpop.f32.mrb[41].mxu1 }
 0x170   : > { %v742_v31 = vmax.f32 %v579_v27, 0.0  ;;  %v767_v32 = vmax.f32 %v704_v29, 0.0 }
 0x171   : > { %v583_v33 = vpop.f32.mrb[42].mxu0  ;;  %v708_v34 = vpop.f32.mrb[42].mxu1 }
 0x172   : > { %791 = vst [vmem:[%s1608_s25 + $0xa0] sm:$0xff] %v742_v31  ;;  %816 = vst [vmem:[%s1608_s25 + $0x168] sm:$0xff] %v767_v32  ;;  %v584_v35 = vadd.f32 %v1599_v54, %v583_v33  ;;  %v1082_v36 = vpop.f32.mrb[43].mxu0  ;;  %v709_v37 = vadd.f32 %v1599_v54, %v708_v34  ;;  %v1157_v38 = vpop.f32.mrb[43].mxu1 }
 0x174   : > { %v743_v39 = vmax.f32 %v584_v35, 0.0  ;;  %v768_v40 = vmax.f32 %v709_v37, 0.0 }
 0x175   : > { %v588_v41 = vpop.f32.mrb[44].mxu0  ;;  %v713_v42 = vpop.f32.mrb[44].mxu1 }
 0x176   : > { %792 = vst [vmem:[%s1608_s25 + $0xa8] sm:$0xff] %v743_v39  ;;  %817 = vst [vmem:[%s1608_s25 + $0x170] sm:$0xff] %v768_v40  ;;  %v589_v43 = vadd.f32 %v1599_v54, %v588_v41  ;;  %v1085_v44 = vpop.f32.mrb[45].mxu0  ;;  %v714_v45 = vadd.f32 %v1599_v54, %v713_v42  ;;  %v1160_v46 = vpop.f32.mrb[45].mxu1 }
 0x178   : > { %v744_v47 = vmax.f32 %v589_v43, 0.0  ;;  %v769_v48 = vmax.f32 %v714_v45, 0.0 }
 0x179   : > { %v593_v49 = vpop.f32.mrb[46].mxu0  ;;  %v718_v50 = vpop.f32.mrb[46].mxu1 }
 0x17a   : > { %793 = vst [vmem:[%s1608_s25 + $0xb0] sm:$0xff] %v744_v47  ;;  %818 = vst [vmem:[%s1608_s25 + $0x178] sm:$0xff] %v769_v48  ;;  %v594_v51 = vadd.f32 %v1599_v54, %v593_v49  ;;  %v1088_v52 = vpop.f32.mrb[47].mxu0  ;;  %v719_v53 = vadd.f32 %v1599_v54, %v718_v50  ;;  %v1163_v55 = vpop.f32.mrb[47].mxu1 }
 0x17c   : > { %v745_v56 = vmax.f32 %v594_v51, 0.0  ;;  %v770_v57 = vmax.f32 %v719_v53, 0.0 }
 0x17d   : > { %v598_v58 = vpop.f32.mrb[48].mxu0 }
 0x17e   : > { %794 = vst [vmem:[%s1608_s25 + $0xb8] sm:$0xff] %v745_v56  ;;  %819 = vst [vmem:[%s1608_s25 + $0x180] sm:$0xff] %v770_v57  ;;  %v599_v59 = vadd.f32 %v1599_v54, %v598_v58  ;;  %v1091_v60 = vpop.f32.mrb[49].mxu0 }
 0x180   : > { %v746_v61 = vmax.f32 %v599_v59, 0.0 }
 0x182   : > { %795 = vst [vmem:[%s1608_s25 + $0xc0] sm:$0xff] %v746_v61 }
 0x183 PF: > { %s15_s12 = sadd.s32 1, %s1275_s12  }
 0x184   : > { %p12_p2 = scmp.ge.s32.totalorder %s15_s12, 4  }
 0x186   :  { %14 = sbr.rel (!%p12_p2) target bundleno = 2 (0x2), region = 71 }
 0x18d   :  { %842 = vsyncpa [#allocation3], 1 }
 0x18e   :  { %844 = vsyncpa [#allocation3 + $0x1], 1 }
 0x18f   :  { %845 = vsyncpa [#allocation5], 1 }

// kernel: mnist_cbm_forward.4
= control target key start
LH: loop header
LB: loop body
LE: loop exit
PB: predicated region body
PF: predicated region fallthrough
CT: control target
= control target key end

     0   :  { %v1970_v0 = vmov 0.0|0.0   ;;  %vm1971_vm0 = vmmov 0   ;;  %s3500_s1 = inlined_call_operand.vmem [shape: f32[1152,128], index: 1, kind: input, shape index: {}]   ;;  %s3501_s0 = inlined_call_operand.vmem [shape: f32[196,1152], index: 0, kind: input, shape index: {}]   ;;  %s3502_s2 = inlined_call_operand.vmem [shape: f32[1,128], index: 2, kind: input, shape index: {}]   ;;  %s3503_s3 = inlined_call_operand.vmem [shape: f32[196,128], index: 3, kind: output, shape index: {}]  }
   0x1   :  { %1543 = vmatprep.subr.bf16.mxu1 %v1970_v0  ;;  %1639 = vmatprep.subr.bf16.mxu0 %v1970_v0  ;;  %v239_v1 = vld [vmem:[%s3500_s1] sm:$0xff]  ;;  %v240_v2 = vld [vmem:[%s3500_s1 + $0x8] sm:$0xff]  ;;  %v241_v6 = vld [vmem:[%s3500_s1 + $0x10] sm:$0xff] }
   0x2   :  { %v303_v3 = vld [vmem:[%s3500_s1 + $0x200] sm:$0xff]  ;;  %v1544_v4 = vpack.c.bf16 %v240_v2, %v239_v1  ;;  %v304_v5 = vld [vmem:[%s3500_s1 + $0x208] sm:$0xff]  ;;  %v242_v7 = vld [vmem:[%s3500_s1 + $0x18] sm:$0xff] }
   0x3   :  { %v1640_v8 = vpack.c.bf16 %v304_v5, %v303_v3  ;;  %v305_v9 = vld [vmem:[%s3500_s1 + $0x210] sm:$0xff]  ;;  %v306_v10 = vld [vmem:[%s3500_s1 + $0x218] sm:$0xff]  ;;  %v1547_v11 = vpack.c.bf16 %v242_v7, %v241_v6  ;;  %v243_v13 = vld [vmem:[%s3500_s1 + $0x20] sm:$0xff] }
   0x4   :  { %1545 = vmatpush1.bf16.msra.mxu1 %v1544_v4  ;;  %v1643_v12 = vpack.c.bf16 %v306_v10, %v305_v9  ;;  %v244_v14 = vld [vmem:[%s3500_s1 + $0x28] sm:$0xff]  ;;  %v307_v15 = vld [vmem:[%s3500_s1 + $0x220] sm:$0xff]  ;;  %v245_v19 = vld [vmem:[%s3500_s1 + $0x30] sm:$0xff] }
   0x5   :  { %1641 = vmatpush1.bf16.msra.mxu0 %v1640_v8  ;;  %1546 = vmatprep.subr.bf16.mxu1 %v1970_v0  ;;  %v308_v16 = vld [vmem:[%s3500_s1 + $0x228] sm:$0xff]  ;;  %v1550_v17 = vpack.c.bf16 %v244_v14, %v243_v13  ;;  %v246_v20 = vld [vmem:[%s3500_s1 + $0x38] sm:$0xff]  ;;  %v309_v21 = vld [vmem:[%s3500_s1 + $0x230] sm:$0xff] }
   0x6   :  { %1642 = vmatprep.subr.bf16.mxu0 %v1970_v0  ;;  %v1646_v18 = vpack.c.bf16 %v308_v16, %v307_v15  ;;  %v310_v22 = vld [vmem:[%s3500_s1 + $0x238] sm:$0xff]  ;;  %v1553_v23 = vpack.c.bf16 %v246_v20, %v245_v19  ;;  %v247_v25 = vld [vmem:[%s3500_s1 + $0x40] sm:$0xff]  ;;  %v248_v26 = vld [vmem:[%s3500_s1 + $0x48] sm:$0xff] }
   0x7   :  { %v1649_v24 = vpack.c.bf16 %v310_v22, %v309_v21  ;;  %v311_v27 = vld [vmem:[%s3500_s1 + $0x240] sm:$0xff]  ;;  %v312_v28 = vld [vmem:[%s3500_s1 + $0x248] sm:$0xff]  ;;  %v1556_v29 = vpack.c.bf16 %v248_v26, %v247_v25  ;;  %v249_v31 = vld [vmem:[%s3500_s1 + $0x50] sm:$0xff] }
   0x8   :  { %1548 = vmatpush1.bf16.msra.mxu1 %v1547_v11  ;;  %v1652_v30 = vpack.c.bf16 %v312_v28, %v311_v27  ;;  %v250_v32 = vld [vmem:[%s3500_s1 + $0x58] sm:$0xff]  ;;  %v313_v33 = vld [vmem:[%s3500_s1 + $0x250] sm:$0xff]  ;;  %v251_v37 = vld [vmem:[%s3500_s1 + $0x60] sm:$0xff] }
   0x9   :  { %1644 = vmatpush1.bf16.msra.mxu0 %v1643_v12  ;;  %1549 = vmatprep.subr.bf16.mxu1 %v1970_v0  ;;  %v314_v34 = vld [vmem:[%s3500_s1 + $0x258] sm:$0xff]  ;;  %v1559_v35 = vpack.c.bf16 %v250_v32, %v249_v31  ;;  %v252_v38 = vld [vmem:[%s3500_s1 + $0x68] sm:$0xff]  ;;  %v315_v39 = vld [vmem:[%s3500_s1 + $0x260] sm:$0xff] }
   0xa   :  { %1645 = vmatprep.subr.bf16.mxu0 %v1970_v0  ;;  %v1655_v36 = vpack.c.bf16 %v314_v34, %v313_v33  ;;  %v316_v40 = vld [vmem:[%s3500_s1 + $0x268] sm:$0xff]  ;;  %v1562_v43 = vpack.c.bf16 %v252_v38, %v251_v37  ;;  %v253_v45 = vld [vmem:[%s3500_s1 + $0x70] sm:$0xff]  ;;  %v254_v46 = vld [vmem:[%s3500_s1 + $0x78] sm:$0xff] }
   0xb   :  { %v15_v41 = vld [vmem:[%s3501_s0 + $0x8] sm:$0xff]  ;;  %v1658_v44 = vpack.c.bf16 %v316_v40, %v315_v39  ;;  %v317_v47 = vld [vmem:[%s3500_s1 + $0x270] sm:$0xff]  ;;  %v318_v48 = vld [vmem:[%s3500_s1 + $0x278] sm:$0xff]  ;;  %v1565_v49 = vpack.c.bf16 %v254_v46, %v253_v45 }
   0xc   :  { %1551 = vmatpush1.bf16.msra.mxu1 %v1550_v17  ;;  %v19_v42 = vld [vmem:[%s3501_s0 + $0x28] sm:$0xff]  ;;  %454 = vmatprep.mubr.f32.mxu1 %v15_v41  ;;  %v1661_v50 = vpack.c.bf16 %v318_v48, %v317_v47  ;;  %v255_v51 = vld [vmem:[%s3500_s1 + $0x80] sm:$0xff]  ;;  %v257_v57 = vld [vmem:[%s3500_s1 + $0x90] sm:$0xff] }
   0xd   :  { %1647 = vmatpush1.bf16.msra.mxu0 %v1646_v18  ;;  %1552 = vmatprep.subr.bf16.mxu1 %v1970_v0  ;;  %v256_v52 = vld [vmem:[%s3500_s1 + $0x88] sm:$0xff]  ;;  %v319_v53 = vld [vmem:[%s3500_s1 + $0x280] sm:$0xff]  ;;  %v258_v58 = vld [vmem:[%s3500_s1 + $0x98] sm:$0xff] }
   0xe   :  { %1648 = vmatprep.subr.bf16.mxu0 %v1970_v0  ;;  %834 = vmatprep.mubr.f32.mxu0 %v19_v42  ;;  %v320_v54 = vld [vmem:[%s3500_s1 + $0x288] sm:$0xff]  ;;  %v1568_v55 = vpack.c.bf16 %v256_v52, %v255_v51  ;;  %v321_v59 = vld [vmem:[%s3500_s1 + $0x290] sm:$0xff]  ;;  %v322_v60 = vld [vmem:[%s3500_s1 + $0x298] sm:$0xff]  ;;  %v1571_v61 = vpack.c.bf16 %v258_v58, %v257_v57 }
   0xf   :  { %v1664_v56 = vpack.c.bf16 %v320_v54, %v319_v53  ;;  %v1667_v62 = vpack.c.bf16 %v322_v60, %v321_v59  ;;  %v259_v63 = vld [vmem:[%s3500_s1 + $0xa0] sm:$0xff]  ;;  %v260_v1 = vld [vmem:[%s3500_s1 + $0xa8] sm:$0xff]  ;;  %v261_v6 = vld [vmem:[%s3500_s1 + $0xb0] sm:$0xff] }
  0x10   :  { %1554 = vmatpush1.bf16.msra.mxu1 %v1553_v23  ;;  %v323_v2 = vld [vmem:[%s3500_s1 + $0x2a0] sm:$0xff]  ;;  %v324_v3 = vld [vmem:[%s3500_s1 + $0x2a8] sm:$0xff]  ;;  %v1574_v4 = vpack.c.bf16 %v260_v1, %v259_v63  ;;  %v262_v7 = vld [vmem:[%s3500_s1 + $0xb8] sm:$0xff] }
  0x11   :  { %1650 = vmatpush1.bf16.msra.mxu0 %v1649_v24  ;;  %1555 = vmatprep.subr.bf16.mxu1 %v1970_v0  ;;  %v1670_v5 = vpack.c.bf16 %v324_v3, %v323_v2  ;;  %v325_v8 = vld [vmem:[%s3500_s1 + $0x2b0] sm:$0xff]  ;;  %v326_v9 = vld [vmem:[%s3500_s1 + $0x2b8] sm:$0xff]  ;;  %v1577_v10 = vpack.c.bf16 %v262_v7, %v261_v6  ;;  %v263_v12 = vld [vmem:[%s3500_s1 + $0xc0] sm:$0xff] }
  0x12   :  { %1651 = vmatprep.subr.bf16.mxu0 %v1970_v0  ;;  %v1673_v11 = vpack.c.bf16 %v326_v9, %v325_v8  ;;  %v264_v13 = vld [vmem:[%s3500_s1 + $0xc8] sm:$0xff]  ;;  %v327_v14 = vld [vmem:[%s3500_s1 + $0x2c0] sm:$0xff]  ;;  %v265_v18 = vld [vmem:[%s3500_s1 + $0xd0] sm:$0xff] }
  0x13   :  { %v328_v15 = vld [vmem:[%s3500_s1 + $0x2c8] sm:$0xff]  ;;  %v1580_v16 = vpack.c.bf16 %v264_v13, %v263_v12  ;;  %v266_v19 = vld [vmem:[%s3500_s1 + $0xd8] sm:$0xff]  ;;  %v329_v20 = vld [vmem:[%s3500_s1 + $0x2d0] sm:$0xff] }
  0x14   :  { %1557 = vmatpush1.bf16.msra.mxu1 %v1556_v29  ;;  %v1676_v17 = vpack.c.bf16 %v328_v15, %v327_v14  ;;  %v330_v21 = vld [vmem:[%s3500_s1 + $0x2d8] sm:$0xff]  ;;  %v1583_v22 = vpack.c.bf16 %v266_v19, %v265_v18  ;;  %v267_v24 = vld [vmem:[%s3500_s1 + $0xe0] sm:$0xff]  ;;  %v268_v25 = vld [vmem:[%s3500_s1 + $0xe8] sm:$0xff] }
  0x15   :  { %1653 = vmatpush1.bf16.msra.mxu0 %v1652_v30  ;;  %1558 = vmatprep.subr.bf16.mxu1 %v1970_v0  ;;  %v1679_v23 = vpack.c.bf16 %v330_v21, %v329_v20  ;;  %v331_v26 = vld [vmem:[%s3500_s1 + $0x2e0] sm:$0xff]  ;;  %v332_v27 = vld [vmem:[%s3500_s1 + $0x2e8] sm:$0xff]  ;;  %v1586_v28 = vpack.c.bf16 %v268_v25, %v267_v24  ;;  %v269_v30 = vld [vmem:[%s3500_s1 + $0xf0] sm:$0xff] }
  0x16   :  { %1654 = vmatprep.subr.bf16.mxu0 %v1970_v0  ;;  %v1682_v29 = vpack.c.bf16 %v332_v27, %v331_v26  ;;  %v270_v31 = vld [vmem:[%s3500_s1 + $0xf8] sm:$0xff]  ;;  %v333_v32 = vld [vmem:[%s3500_s1 + $0x2f0] sm:$0xff]  ;;  %v336_v37 = vld [vmem:[%s3500_s1 + $0x308] sm:$0xff] }
  0x17   :  { %v334_v33 = vld [vmem:[%s3500_s1 + $0x2f8] sm:$0xff]  ;;  %v1589_v34 = vpack.c.bf16 %v270_v31, %v269_v30  ;;  %v271_v38 = vld [vmem:[%s3500_s1 + $0x100] sm:$0xff]  ;;  %v272_v39 = vld [vmem:[%s3500_s1 + $0x108] sm:$0xff] }
  0x18   :  { %1560 = vmatpush1.bf16.msra.mxu1 %v1559_v35  ;;  %v1685_v35 = vpack.c.bf16 %v334_v33, %v333_v32  ;;  %v14_v40 = vld [vmem:[%s3501_s0] sm:$0xff]  ;;  %v337_v45 = vld [vmem:[%s3500_s1 + $0x310] sm:$0xff]  ;;  %v338_v46 = vld [vmem:[%s3500_s1 + $0x318] sm:$0xff] }
  0x19   :  { %1656 = vmatpush1.bf16.msra.mxu0 %v1655_v36  ;;  %1561 = vmatprep.subr.bf16.mxu1 %v1970_v0  ;;  %v335_v36 = vld [vmem:[%s3500_s1 + $0x300] sm:$0xff]  ;;  %v28_v47 = vld [vmem:[%s3501_s0 + $0x70] sm:$0xff]  ;;  %v27_v51 = vld [vmem:[%s3501_s0 + $0x68] sm:$0xff]  ;;  %v2273_v53 = vpack.c.bf16 %v338_v46, %v337_v45 }
  0x1a   :  { %1657 = vmatprep.subr.bf16.mxu0 %v1970_v0  ;;  %v18_v41 = vld [vmem:[%s3501_s0 + $0x20] sm:$0xff]  ;;  %v2241_v42 = vpack.c.bf16 %v336_v37, %v335_v36  ;;  %v273_v48 = vld [vmem:[%s3500_s1 + $0x110] sm:$0xff]  ;;  %v33_v52 = vld [vmem:[%s3501_s0 + $0x98] sm:$0xff] }
  0x1b   :  { %v37_v54 = vld [vmem:[%s3501_s0 + $0xb8] sm:$0xff]  ;;  %v340_v57 = vld [vmem:[%s3500_s1 + $0x328] sm:$0xff]  ;;  %v275_v58 = vld [vmem:[%s3500_s1 + $0x120] sm:$0xff] }
  0x1c   :  { %1563 = vmatpush1.bf16.msra.mxu1 %v1562_v43  ;;  %v24_v43 = vld [vmem:[%s3501_s0 + $0x50] sm:$0xff]  ;;  %v276_v59 = vld [vmem:[%s3500_s1 + $0x128] sm:$0xff]  ;;  %v46_v1 = vld [vmem:[%s3501_s0 + $0x100] sm:$0xff] }
  0x1d   :  { %1659 = vmatpush1.bf16.msra.mxu0 %v1658_v44  ;;  %1564 = vmatprep.subr.bf16.mxu1 %v1970_v0  ;;  %v1592_v44 = vpack.c.bf16 %v272_v39, %v271_v38  ;;  %v32_v60 = vld [vmem:[%s3501_s0 + $0x90] sm:$0xff]  ;;  %v1598_v2 = vpack.c.bf16 %v276_v59, %v275_v58  ;;  %v278_v6 = vld [vmem:[%s3500_s1 + $0x138] sm:$0xff]  ;;  %v51_v9 = vld [vmem:[%s3501_s0 + $0x128] sm:$0xff] }
  0x1e   :  { %1660 = vmatprep.subr.bf16.mxu0 %v1970_v0  ;;  %v341_v3 = vld [vmem:[%s3500_s1 + $0x330] sm:$0xff]  ;;  %v41_v7 = vld [vmem:[%s3501_s0 + $0xd8] sm:$0xff]  ;;  %v343_v13 = vld [vmem:[%s3500_s1 + $0x340] sm:$0xff] }
  0x1f   :  { %v45_v8 = vld [vmem:[%s3501_s0 + $0xf8] sm:$0xff]  ;;  %v344_v14 = vld [vmem:[%s3500_s1 + $0x348] sm:$0xff]  ;;  %v279_v15 = vld [vmem:[%s3500_s1 + $0x140] sm:$0xff] }
  0x20   :  { %1566 = vmatpush1.bf16.msra.mxu1 %v1565_v49  ;;  %v274_v49 = vld [vmem:[%s3500_s1 + $0x118] sm:$0xff]  ;;  %v54_v18 = vld [vmem:[%s3501_s0 + $0x140] sm:$0xff]  ;;  %v60_v19 = vld [vmem:[%s3501_s0 + $0x170] sm:$0xff]  ;;  %v2360_v20 = vpack.c.bf16 %v344_v14, %v343_v13 }
  0x21   :  { %1662 = vmatpush1.bf16.msra.mxu0 %v1661_v50  ;;  %1567 = vmatprep.subr.bf16.mxu1 %v1970_v0  ;;  %v23_v50 = vld [vmem:[%s3501_s0 + $0x48] sm:$0xff]  ;;  %v64_v21 = vld [vmem:[%s3501_s0 + $0x190] sm:$0xff]  ;;  %v346_v24 = vld [vmem:[%s3500_s1 + $0x358] sm:$0xff] }
  0x22   :  { %1663 = vmatprep.subr.bf16.mxu0 %v1970_v0  ;;  %v281_v25 = vld [vmem:[%s3500_s1 + $0x150] sm:$0xff]  ;;  %v282_v26 = vld [vmem:[%s3500_s1 + $0x158] sm:$0xff]  ;;  %v59_v27 = vld [vmem:[%s3501_s0 + $0x168] sm:$0xff] }
  0x23   :  { %v73_v31 = vld [vmem:[%s3501_s0 + $0x1d8] sm:$0xff]  ;;  %v1607_v32 = vpack.c.bf16 %v282_v26, %v281_v25  ;;  %v347_v33 = vld [vmem:[%s3500_s1 + $0x360] sm:$0xff]  ;;  %v284_v36 = vld [vmem:[%s3500_s1 + $0x168] sm:$0xff] }
  0x24   :  { %1569 = vmatpush1.bf16.msra.mxu1 %v1568_v55  ;;  %v1595_v55 = vpack.c.bf16 %v274_v49, %v273_v48  ;;  %v68_v37 = vld [vmem:[%s3501_s0 + $0x1b0] sm:$0xff]  ;;  %v78_v39 = vld [vmem:[%s3501_s0 + $0x200] sm:$0xff]  ;;  %v350_v45 = vld [vmem:[%s3500_s1 + $0x378] sm:$0xff] }
  0x25   :  { %1665 = vmatpush1.bf16.msra.mxu0 %v1664_v56  ;;  %1570 = vmatprep.subr.bf16.mxu1 %v1970_v0  ;;  %v339_v56 = vld [vmem:[%s3500_s1 + $0x320] sm:$0xff]  ;;  %v72_v38 = vld [vmem:[%s3501_s0 + $0x1d0] sm:$0xff]  ;;  %v77_v48 = vld [vmem:[%s3501_s0 + $0x1f8] sm:$0xff] }
  0x26   :  { %1666 = vmatprep.subr.bf16.mxu0 %v1970_v0  ;;  %v2302_v63 = vpack.c.bf16 %v340_v57, %v339_v56  ;;  %v285_v46 = vld [vmem:[%s3500_s1 + $0x170] sm:$0xff]  ;;  %v81_v49 = vld [vmem:[%s3501_s0 + $0x218] sm:$0xff]  ;;  %v352_v56 = vld [vmem:[%s3500_s1 + $0x388] sm:$0xff] }
  0x27   :  { %v287_v57 = vld [vmem:[%s3500_s1 + $0x180] sm:$0xff]  ;;  %v288_v58 = vld [vmem:[%s3500_s1 + $0x188] sm:$0xff]  ;;  %v357_v25 = vld [vmem:[%s3500_s1 + $0x3b0] sm:$0xff] }
  0x28   :  { %1572 = vmatpush1.bf16.msra.mxu1 %v1571_v61  ;;  %v36_v61 = vld [vmem:[%s3501_s0 + $0xb0] sm:$0xff]  ;;  %v86_v59 = vld [vmem:[%s3501_s0 + $0x240] sm:$0xff]  ;;  %v358_v26 = vld [vmem:[%s3500_s1 + $0x3b8] sm:$0xff] }
  0x29   :  { %1668 = vmatpush1.bf16.msra.mxu0 %v1667_v62  ;;  %1573 = vmatprep.subr.bf16.mxu1 %v1970_v0  ;;  %v42_v62 = vld [vmem:[%s3501_s0 + $0xe0] sm:$0xff] }
  0x2a   :  { %1669 = vmatprep.subr.bf16.mxu0 %v1970_v0  ;;  %v355_v14 = vld [vmem:[%s3500_s1 + $0x3a0] sm:$0xff] }
  0x2c   :  { %1575 = vmatpush1.bf16.msra.mxu1 %v1574_v4  ;;  %v342_v4 = vld [vmem:[%s3500_s1 + $0x338] sm:$0xff] }
  0x2d   :  { %1671 = vmatpush1.bf16.msra.mxu0 %v1670_v5  ;;  %1576 = vmatprep.subr.bf16.mxu1 %v1970_v0  ;;  %v277_v5 = vld [vmem:[%s3500_s1 + $0x130] sm:$0xff] }
  0x2e   :  { %1672 = vmatprep.subr.bf16.mxu0 %v1970_v0  ;;  %v1601_v12 = vpack.c.bf16 %v278_v6, %v277_v5  ;;  %v289_v5 = vld [vmem:[%s3500_s1 + $0x190] sm:$0xff]  ;;  %v290_v6 = vld [vmem:[%s3500_s1 + $0x198] sm:$0xff] }
  0x2f   :  { %v1619_v13 = vpack.c.bf16 %v290_v6, %v289_v5  ;;  %v150_v5 = vld [vmem:[%s3501_s0 + $0x440] sm:$0xff] }
  0x30   :  { %1578 = vmatpush1.bf16.msra.mxu1 %v1577_v10  ;;  %v2331_v10 = vpack.c.bf16 %v342_v4, %v341_v3  ;;  %v353_v3 = vld [vmem:[%s3500_s1 + $0x390] sm:$0xff]  ;;  %v354_v4 = vld [vmem:[%s3500_s1 + $0x398] sm:$0xff] }
  0x31   :  { %1674 = vmatpush1.bf16.msra.mxu0 %v1673_v11  ;;  %1579 = vmatprep.subr.bf16.mxu1 %v1970_v0  ;;  %v55_v11 = vld [vmem:[%s3501_s0 + $0x148] sm:$0xff] }
  0x32   :  { %1675 = vmatprep.subr.bf16.mxu0 %v1970_v0 }
  0x34   :  { %1581 = vmatpush1.bf16.msra.mxu1 %v1580_v16  ;;  %v280_v16 = vld [vmem:[%s3500_s1 + $0x148] sm:$0xff] }
  0x35   :  { %1677 = vmatpush1.bf16.msra.mxu0 %v1676_v17  ;;  %1582 = vmatprep.subr.bf16.mxu1 %v1970_v0  ;;  %v50_v17 = vld [vmem:[%s3501_s0 + $0x120] sm:$0xff] }
  0x36   :  { %1678 = vmatprep.subr.bf16.mxu0 %v1970_v0 }
  0x38   :  { %1584 = vmatpush1.bf16.msra.mxu1 %v1583_v22  ;;  %v1604_v22 = vpack.c.bf16 %v280_v16, %v279_v15  ;;  %v356_v15 = vld [vmem:[%s3500_s1 + $0x3a8] sm:$0xff]  ;;  %v291_v16 = vld [vmem:[%s3500_s1 + $0x1a0] sm:$0xff] }
  0x39   :  { %1680 = vmatpush1.bf16.msra.mxu0 %v1679_v23  ;;  %1585 = vmatprep.subr.bf16.mxu1 %v1970_v0  ;;  %v345_v23 = vld [vmem:[%s3500_s1 + $0x350] sm:$0xff] }
  0x3a   :  { %1681 = vmatprep.subr.bf16.mxu0 %v1970_v0  ;;  %v2389_v30 = vpack.c.bf16 %v346_v24, %v345_v23  ;;  %v118_v23 = vld [vmem:[%s3501_s0 + $0x340] sm:$0xff] }
  0x3c   :  { %1587 = vmatpush1.bf16.msra.mxu1 %v1586_v28  ;;  %v63_v28 = vld [vmem:[%s3501_s0 + $0x188] sm:$0xff] }
  0x3d   :  { %1683 = vmatpush1.bf16.msra.mxu0 %v1682_v29  ;;  %1588 = vmatprep.subr.bf16.mxu1 %v1970_v0  ;;  %v69_v29 = vld [vmem:[%s3501_s0 + $0x1b8] sm:$0xff] }
  0x3e   :  { %1684 = vmatprep.subr.bf16.mxu0 %v1970_v0 }
  0x40   :  { %1590 = vmatpush1.bf16.msra.mxu1 %v1589_v34  ;;  %v348_v34 = vld [vmem:[%s3500_s1 + $0x368] sm:$0xff] }
  0x41   :  { %1686 = vmatpush1.bf16.msra.mxu0 %v1685_v35  ;;  %1591 = vmatprep.subr.bf16.mxu1 %v1970_v0  ;;  %v283_v35 = vld [vmem:[%s3500_s1 + $0x160] sm:$0xff] }
  0x42   :  { %1687 = vmatprep.subr.bf16.mxu0 %v1970_v0 }
  0x43   :  { %455 = vmatmul.mubr.f32.vlgmr.msra.gmra.mrb[0].mxu1 %v14_v40  ;;  %v2418_v40 = vpack.c.bf16 %v348_v34, %v347_v33  ;;  %v2563_v33 = vpack.c.bf16 %v358_v26, %v357_v25  ;;  %v127_v34 = vld [vmem:[%s3501_s0 + $0x388] sm:$0xff]  ;;  %v168_v25 = vld [vmem:[%s3501_s0 + $0x4d0] sm:$0xff] }
  0x44   :  { %835 = vmatmul.mubr.f32.vlgmr.msra.gmra.mrb[0].mxu0 %v18_v41  ;;  %459 = vmatprep.mubr.f32.mxu1 %v24_v43  ;;  %v82_v41 = vld [vmem:[%s3501_s0 + $0x220] sm:$0xff]  ;;  %v1610_v43 = vpack.c.bf16 %v284_v36, %v283_v35  ;;  %v172_v26 = vld [vmem:[%s3501_s0 + $0x4f0] sm:$0xff] }
  0x45   :  { %1689 = vmatpush1.bf16.msra.mxu0 %v2241_v42  ;;  %1593 = vmatpush1.bf16.msra.mxu1 %v1592_v44  ;;  %v349_v44 = vld [vmem:[%s3500_s1 + $0x370] sm:$0xff]  ;;  %v359_v36 = vld [vmem:[%s3500_s1 + $0x3c0] sm:$0xff] }
  0x46   :  { %839 = vmatprep.mubr.f32.mxu0 %v28_v47  ;;  %1690 = vmatprep.subr.bf16.mxu0 %v1970_v0  ;;  %v286_v47 = vld [vmem:[%s3500_s1 + $0x178] sm:$0xff] }
  0x47   :  { %460 = vmatmul.mubr.f32.gmra.mrb[2].mxu1 %v23_v50  ;;  %1594 = vmatprep.subr.bf16.mxu1 %v1970_v0  ;;  %v87_v50 = vld [vmem:[%s3501_s0 + $0x248] sm:$0xff] }
  0x48   :  { %840 = vmatmul.mubr.f32.gmra.mrb[2].mxu0 %v27_v51  ;;  %464 = vmatprep.mubr.f32.mxu1 %v33_v52  ;;  %v2447_v51 = vpack.c.bf16 %v350_v45, %v349_v44  ;;  %v91_v52 = vld [vmem:[%s3501_s0 + $0x268] sm:$0xff]  ;;  %v132_v44 = vld [vmem:[%s3501_s0 + $0x3b0] sm:$0xff] }
  0x49   :  { %844 = vmatprep.mubr.f32.mxu0 %v37_v54  ;;  %1692 = vmatpush1.bf16.msra.mxu0 %v2273_v53  ;;  %v1613_v54 = vpack.c.bf16 %v286_v47, %v285_v46  ;;  %v136_v46 = vld [vmem:[%s3501_s0 + $0x3d0] sm:$0xff] }
  0x4a   :  { %1596 = vmatpush1.bf16.msra.mxu1 %v1595_v55  ;;  %1693 = vmatprep.subr.bf16.mxu0 %v1970_v0  ;;  %v351_v55 = vld [vmem:[%s3500_s1 + $0x380] sm:$0xff] }
  0x4b   :  { %465 = vmatmul.mubr.f32.gmra.mrb[4].mxu1 %v32_v60  ;;  %1597 = vmatprep.subr.bf16.mxu1 %v1970_v0  ;;  %v90_v60 = vld [vmem:[%s3501_s0 + $0x260] sm:$0xff] }
  0x4c   :  { %845 = vmatmul.mubr.f32.gmra.mrb[4].mxu0 %v36_v61  ;;  %469 = vmatprep.mubr.f32.mxu1 %v42_v62  ;;  %v96_v61 = vld [vmem:[%s3501_s0 + $0x290] sm:$0xff]  ;;  %v2476_v62 = vpack.c.bf16 %v352_v56, %v351_v55  ;;  %v135_v55 = vld [vmem:[%s3501_s0 + $0x3c8] sm:$0xff]  ;;  %v141_v56 = vld [vmem:[%s3501_s0 + $0x3f8] sm:$0xff] }
  0x4d   :  { %849 = vmatprep.mubr.f32.mxu0 %v46_v1  ;;  %1695 = vmatpush1.bf16.msra.mxu0 %v2302_v63  ;;  %v100_v1 = vld [vmem:[%s3501_s0 + $0x2b0] sm:$0xff] }
  0x4e   :  { %1599 = vmatpush1.bf16.msra.mxu1 %v1598_v2  ;;  %1696 = vmatprep.subr.bf16.mxu0 %v1970_v0  ;;  %v1616_v2 = vpack.c.bf16 %v288_v58, %v287_v57  ;;  %v145_v58 = vld [vmem:[%s3501_s0 + $0x418] sm:$0xff] }
  0x4f   :  { %470 = vmatmul.mubr.f32.gmra.mrb[6].mxu1 %v41_v7  ;;  %1600 = vmatprep.subr.bf16.mxu1 %v1970_v0  ;;  %v95_v7 = vld [vmem:[%s3501_s0 + $0x288] sm:$0xff] }
  0x50   :  { %850 = vmatmul.mubr.f32.gmra.mrb[6].mxu0 %v45_v8  ;;  %474 = vmatprep.mubr.f32.mxu1 %v51_v9  ;;  %v99_v8 = vld [vmem:[%s3501_s0 + $0x2a8] sm:$0xff]  ;;  %v105_v9 = vld [vmem:[%s3501_s0 + $0x2d8] sm:$0xff] }
  0x51   :  { %854 = vmatprep.mubr.f32.mxu0 %v55_v11  ;;  %1698 = vmatpush1.bf16.msra.mxu0 %v2331_v10  ;;  %v2505_v11 = vpack.c.bf16 %v354_v4, %v353_v3  ;;  %v140_v3 = vld [vmem:[%s3501_s0 + $0x3f0] sm:$0xff] }
  0x52   :  { %1602 = vmatpush1.bf16.msra.mxu1 %v1601_v12  ;;  %1699 = vmatprep.subr.bf16.mxu0 %v1970_v0  ;;  %v109_v12 = vld [vmem:[%s3501_s0 + $0x2f8] sm:$0xff]  ;;  %v144_v4 = vld [vmem:[%s3501_s0 + $0x410] sm:$0xff] }
  0x53   :  { %475 = vmatmul.mubr.f32.gmra.mrb[8].mxu1 %v50_v17  ;;  %1603 = vmatprep.subr.bf16.mxu1 %v1970_v0  ;;  %v292_v17 = vld [vmem:[%s3500_s1 + $0x1a8] sm:$0xff] }
  0x54   :  { %855 = vmatmul.mubr.f32.gmra.mrb[8].mxu0 %v54_v18  ;;  %479 = vmatprep.mubr.f32.mxu1 %v60_v19  ;;  %v104_v18 = vld [vmem:[%s3501_s0 + $0x2d0] sm:$0xff]  ;;  %v1622_v24 = vpack.c.bf16 %v292_v17, %v291_v16  ;;  %v153_v16 = vld [vmem:[%s3501_s0 + $0x458] sm:$0xff]  ;;  %v159_v17 = vld [vmem:[%s3501_s0 + $0x488] sm:$0xff] }
  0x55   :  { %859 = vmatprep.mubr.f32.mxu0 %v64_v21  ;;  %1701 = vmatpush1.bf16.msra.mxu0 %v2360_v20  ;;  %v108_v19 = vld [vmem:[%s3501_s0 + $0x2f0] sm:$0xff]  ;;  %v114_v21 = vld [vmem:[%s3501_s0 + $0x320] sm:$0xff] }
  0x56   :  { %1605 = vmatpush1.bf16.msra.mxu1 %v1604_v22  ;;  %1702 = vmatprep.subr.bf16.mxu0 %v1970_v0  ;;  %v2534_v22 = vpack.c.bf16 %v356_v15, %v355_v14  ;;  %v302_v14 = vld [vmem:[%s3500_s1 + $0x1f8] sm:$0xff] }
  0x57   :  { %480 = vmatmul.mubr.f32.gmra.mrb[10].mxu1 %v59_v27  ;;  %1606 = vmatprep.subr.bf16.mxu1 %v1970_v0  ;;  %v293_v27 = vld [vmem:[%s3500_s1 + $0x1b0] sm:$0xff]  ;;  %v149_v15 = vld [vmem:[%s3501_s0 + $0x438] sm:$0xff] }
  0x58   :  { %860 = vmatmul.mubr.f32.gmra.mrb[10].mxu0 %v63_v28  ;;  %484 = vmatprep.mubr.f32.mxu1 %v69_v29  ;;  %v294_v28 = vld [vmem:[%s3500_s1 + $0x1b8] sm:$0xff] }
  0x59   :  { %864 = vmatprep.mubr.f32.mxu0 %v73_v31  ;;  %1704 = vmatpush1.bf16.msra.mxu0 %v2389_v30  ;;  %v113_v29 = vld [vmem:[%s3501_s0 + $0x318] sm:$0xff]  ;;  %v1625_v35 = vpack.c.bf16 %v294_v28, %v293_v27  ;;  %v167_v27 = vld [vmem:[%s3501_s0 + $0x4c8] sm:$0xff] }
  0x5a   :  { %1608 = vmatpush1.bf16.msra.mxu1 %v1607_v32  ;;  %1705 = vmatprep.subr.bf16.mxu0 %v1970_v0  ;;  %v117_v31 = vld [vmem:[%s3501_s0 + $0x338] sm:$0xff]  ;;  %v123_v32 = vld [vmem:[%s3501_s0 + $0x368] sm:$0xff] }
  0x5b   :  { %485 = vmatmul.mubr.f32.gmra.mrb[12].mxu1 %v68_v37  ;;  %1609 = vmatprep.subr.bf16.mxu1 %v1970_v0  ;;  %v360_v37 = vld [vmem:[%s3500_s1 + $0x3c8] sm:$0xff] }
  0x5c   :  { %865 = vmatmul.mubr.f32.gmra.mrb[12].mxu0 %v72_v38  ;;  %489 = vmatprep.mubr.f32.mxu1 %v78_v39  ;;  %v295_v38 = vld [vmem:[%s3500_s1 + $0x1c0] sm:$0xff]  ;;  %v296_v39 = vld [vmem:[%s3500_s1 + $0x1c8] sm:$0xff]  ;;  %v2592_v45 = vpack.c.bf16 %v360_v37, %v359_v36  ;;  %v185_v37 = vld [vmem:[%s3501_s0 + $0x558] sm:$0xff] }
  0x5d   :  { %869 = vmatprep.mubr.f32.mxu0 %v82_v41  ;;  %1707 = vmatpush1.bf16.msra.mxu0 %v2418_v40  ;;  %v122_v41 = vld [vmem:[%s3501_s0 + $0x360] sm:$0xff]  ;;  %v1628_v47 = vpack.c.bf16 %v296_v39, %v295_v38  ;;  %v171_v28 = vld [vmem:[%s3501_s0 + $0x4e8] sm:$0xff]  ;;  %v189_v38 = vld [vmem:[%s3501_s0 + $0x578] sm:$0xff] }
  0x5e   :  { %1611 = vmatpush1.bf16.msra.mxu1 %v1610_v43  ;;  %1708 = vmatprep.subr.bf16.mxu0 %v1970_v0  ;;  %v126_v43 = vld [vmem:[%s3501_s0 + $0x380] sm:$0xff]  ;;  %v195_v39 = vld [vmem:[%s3501_s0 + $0x5a8] sm:$0xff] }
  0x5f   :  { %490 = vmatmul.mubr.f32.gmra.mrb[14].mxu1 %v77_v48  ;;  %1612 = vmatprep.subr.bf16.mxu1 %v1970_v0  ;;  %v361_v48 = vld [vmem:[%s3500_s1 + $0x3d0] sm:$0xff]  ;;  %v190_v36 = vld [vmem:[%s3501_s0 + $0x580] sm:$0xff] }
  0x60   :  { %870 = vmatmul.mubr.f32.gmra.mrb[14].mxu0 %v81_v49  ;;  %494 = vmatprep.mubr.f32.mxu1 %v87_v50  ;;  %v362_v49 = vld [vmem:[%s3500_s1 + $0x3d8] sm:$0xff]  ;;  %v297_v50 = vld [vmem:[%s3500_s1 + $0x1d0] sm:$0xff] }
  0x61   :  { %874 = vmatprep.mubr.f32.mxu0 %v91_v52  ;;  %1710 = vmatpush1.bf16.msra.mxu0 %v2447_v51  ;;  %v298_v52 = vld [vmem:[%s3500_s1 + $0x1d8] sm:$0xff]  ;;  %v2621_v57 = vpack.c.bf16 %v362_v49, %v361_v48  ;;  %v203_v48 = vld [vmem:[%s3501_s0 + $0x5e8] sm:$0xff] }
  0x62   :  { %1614 = vmatpush1.bf16.msra.mxu1 %v1613_v54  ;;  %1711 = vmatprep.subr.bf16.mxu0 %v1970_v0  ;;  %v131_v54 = vld [vmem:[%s3501_s0 + $0x3a8] sm:$0xff] }
  0x63   :  { %495 = vmatmul.mubr.f32.gmra.mrb[16].mxu1 %v86_v59  ;;  %1615 = vmatprep.subr.bf16.mxu1 %v1970_v0  ;;  %v1631_v59 = vpack.c.bf16 %v298_v52, %v297_v50  ;;  %v207_v49 = vld [vmem:[%s3501_s0 + $0x608] sm:$0xff]  ;;  %v213_v50 = vld [vmem:[%s3501_s0 + $0x638] sm:$0xff] }
  0x64   :  { %875 = vmatmul.mubr.f32.gmra.mrb[16].mxu0 %v90_v60  ;;  %499 = vmatprep.mubr.f32.mxu1 %v96_v61  ;;  %v363_v60 = vld [vmem:[%s3500_s1 + $0x3e0] sm:$0xff]  ;;  %v364_v61 = vld [vmem:[%s3500_s1 + $0x3e8] sm:$0xff]  ;;  %v217_v52 = vld [vmem:[%s3501_s0 + $0x658] sm:$0xff] }
  0x65   :  { %879 = vmatprep.mubr.f32.mxu0 %v100_v1  ;;  %1713 = vmatpush1.bf16.msra.mxu0 %v2476_v62  ;;  %v299_v1 = vld [vmem:[%s3500_s1 + $0x1e0] sm:$0xff]  ;;  %v2650_v6 = vpack.c.bf16 %v364_v61, %v363_v60  ;;  %v225_v60 = vld [vmem:[%s3501_s0 + $0x698] sm:$0xff]  ;;  %v231_v61 = vld [vmem:[%s3501_s0 + $0x6c8] sm:$0xf] }
  0x66   :  { %1617 = vmatpush1.bf16.msra.mxu1 %v1616_v2  ;;  %1714 = vmatprep.subr.bf16.mxu0 %v1970_v0  ;;  %v300_v2 = vld [vmem:[%s3500_s1 + $0x1e8] sm:$0xff] }
  0x67   :  { %500 = vmatmul.mubr.f32.gmra.mrb[18].mxu1 %v95_v7  ;;  %1618 = vmatprep.subr.bf16.mxu1 %v1970_v0  ;;  %v154_v7 = vld [vmem:[%s3501_s0 + $0x460] sm:$0xff] }
  0x68   :  { %880 = vmatmul.mubr.f32.gmra.mrb[18].mxu0 %v99_v8  ;;  %504 = vmatprep.mubr.f32.mxu1 %v105_v9  ;;  %v1634_v8 = vpack.c.bf16 %v300_v2, %v299_v1  ;;  %v365_v9 = vld [vmem:[%s3500_s1 + $0x3f0] sm:$0xff]  ;;  %v235_v1 = vld [vmem:[%s3501_s0 + $0x6e8] sm:$0xf]  ;;  %v230_v2 = vld [vmem:[%s3501_s0 + $0x6c0] sm:$0xf] }
  0x69   :  { %884 = vmatprep.mubr.f32.mxu0 %v109_v12  ;;  %1716 = vmatpush1.bf16.msra.mxu0 %v2505_v11  ;;  %v366_v12 = vld [vmem:[%s3500_s1 + $0x3f8] sm:$0xff] }
  0x6a   :  { %1620 = vmatpush1.bf16.msra.mxu1 %v1619_v13  ;;  %1717 = vmatprep.subr.bf16.mxu0 %v1970_v0  ;;  %v301_v13 = vld [vmem:[%s3500_s1 + $0x1f0] sm:$0xff] }
  0x6b   :  { %505 = vmatmul.mubr.f32.gmra.mrb[20].mxu1 %v104_v18  ;;  %1621 = vmatprep.subr.bf16.mxu1 %v1970_v0  ;;  %v2679_v18 = vpack.c.bf16 %v366_v12, %v365_v9  ;;  %v16_v9 = vld [vmem:[%s3501_s0 + $0x10] sm:$0xff] }
  0x6c   :  { %885 = vmatmul.mubr.f32.gmra.mrb[20].mxu0 %v108_v19  ;;  %509 = vmatprep.mubr.f32.mxu1 %v114_v21  ;;  %v163_v19 = vld [vmem:[%s3501_s0 + $0x4a8] sm:$0xff]  ;;  %v1637_v21 = vpack.c.bf16 %v302_v14, %v301_v13  ;;  %v20_v12 = vld [vmem:[%s3501_s0 + $0x30] sm:$0xff]  ;;  %v26_v14 = vld [vmem:[%s3501_s0 + $0x60] sm:$0xff] }
  0x6d   :  { %889 = vmatprep.mubr.f32.mxu0 %v118_v23  ;;  %1719 = vmatpush1.bf16.msra.mxu0 %v2534_v22  ;;  %v158_v23 = vld [vmem:[%s3501_s0 + $0x480] sm:$0xff] }
  0x6e   :  { %1623 = vmatpush1.bf16.msra.mxu1 %v1622_v24  ;;  %1720 = vmatprep.subr.bf16.mxu0 %v1970_v0  ;;  %v162_v24 = vld [vmem:[%s3501_s0 + $0x4a0] sm:$0xff] }
  0x6f   :  { %510 = vmatmul.mubr.f32.gmra.mrb[22].mxu1 %v113_v29  ;;  %1624 = vmatprep.subr.bf16.mxu1 %v1970_v0  ;;  %v177_v29 = vld [vmem:[%s3501_s0 + $0x518] sm:$0xff] }
  0x70   :  { %890 = vmatmul.mubr.f32.gmra.mrb[22].mxu0 %v117_v31  ;;  %514 = vmatprep.mubr.f32.mxu1 %v123_v32  ;;  %v181_v31 = vld [vmem:[%s3501_s0 + $0x538] sm:$0xff]  ;;  %v176_v32 = vld [vmem:[%s3501_s0 + $0x510] sm:$0xff] }
  0x71   :  { %894 = vmatprep.mubr.f32.mxu0 %v127_v34  ;;  %1722 = vmatpush1.bf16.msra.mxu0 %v2563_v33  ;;  %v180_v34 = vld [vmem:[%s3501_s0 + $0x530] sm:$0xff] }
  0x72   :  { %1626 = vmatpush1.bf16.msra.mxu1 %v1625_v35  ;;  %1723 = vmatprep.subr.bf16.mxu0 %v1970_v0  ;;  %v186_v35 = vld [vmem:[%s3501_s0 + $0x560] sm:$0xff] }
  0x73   :  { %515 = vmatmul.mubr.f32.gmra.mrb[24].mxu1 %v122_v41  ;;  %1627 = vmatprep.subr.bf16.mxu1 %v1970_v0  ;;  %v199_v41 = vld [vmem:[%s3501_s0 + $0x5c8] sm:$0xff] }
  0x74   :  { %895 = vmatmul.mubr.f32.gmra.mrb[24].mxu0 %v126_v43  ;;  %519 = vmatprep.mubr.f32.mxu1 %v132_v44  ;;  %v194_v43 = vld [vmem:[%s3501_s0 + $0x5a0] sm:$0xff] }
  0x75   :  { %899 = vmatprep.mubr.f32.mxu0 %v136_v46  ;;  %1725 = vmatpush1.bf16.msra.mxu0 %v2592_v45  ;;  %v198_v44 = vld [vmem:[%s3501_s0 + $0x5c0] sm:$0xff]  ;;  %v204_v46 = vld [vmem:[%s3501_s0 + $0x5f0] sm:$0xff] }
  0x76   :  { %1629 = vmatpush1.bf16.msra.mxu1 %v1628_v47  ;;  %1726 = vmatprep.subr.bf16.mxu0 %v1970_v0  ;;  %v208_v47 = vld [vmem:[%s3501_s0 + $0x610] sm:$0xff] }
  0x77   :  { %520 = vmatmul.mubr.f32.gmra.mrb[26].mxu1 %v131_v54  ;;  %1630 = vmatprep.subr.bf16.mxu1 %v1970_v0  ;;  %v212_v54 = vld [vmem:[%s3501_s0 + $0x630] sm:$0xff] }
  0x78   :  { %900 = vmatmul.mubr.f32.gmra.mrb[26].mxu0 %v135_v55  ;;  %524 = vmatprep.mubr.f32.mxu1 %v141_v56  ;;  %v216_v55 = vld [vmem:[%s3501_s0 + $0x650] sm:$0xff]  ;;  %v222_v56 = vld [vmem:[%s3501_s0 + $0x680] sm:$0xff] }
  0x79   :  { %904 = vmatprep.mubr.f32.mxu0 %v145_v58  ;;  %1728 = vmatpush1.bf16.msra.mxu0 %v2621_v57  ;;  %v226_v58 = vld [vmem:[%s3501_s0 + $0x6a0] sm:$0xff] }
  0x7a   :  { %1632 = vmatpush1.bf16.msra.mxu1 %v1631_v59  ;;  %1729 = vmatprep.subr.bf16.mxu0 %v1970_v0  ;;  %v221_v59 = vld [vmem:[%s3501_s0 + $0x678] sm:$0xff] }
  0x7b   :  { %525 = vmatmul.mubr.f32.gmra.mrb[28].mxu1 %v140_v3  ;;  %1633 = vmatprep.subr.bf16.mxu1 %v1970_v0  ;;  %v234_v3 = vld [vmem:[%s3501_s0 + $0x6e0] sm:$0xf] }
  0x7c   :  { %905 = vmatmul.mubr.f32.gmra.mrb[28].mxu0 %v144_v4  ;;  %529 = vmatprep.mubr.f32.mxu1 %v150_v5  ;;  %v17_v4 = vld [vmem:[%s3501_s0 + $0x18] sm:$0xff] }
  0x7d   :  { %909 = vmatprep.mubr.f32.mxu0 %v154_v7  ;;  %1731 = vmatpush1.bf16.msra.mxu0 %v2650_v6  ;;  %v21_v5 = vld [vmem:[%s3501_s0 + $0x38] sm:$0xff]  ;;  %v367_v7 = vld [vmem:[%s3500_s1 + $0x400] sm:$0xff] }
  0x7e   :  { %1635 = vmatpush1.bf16.msra.mxu1 %v1634_v8  ;;  %1732 = vmatprep.subr.bf16.mxu0 %v1970_v0  ;;  %v368_v8 = vld [vmem:[%s3500_s1 + $0x408] sm:$0xff] }
  0x7f   :  { %530 = vmatmul.mubr.f32.gmra.mrb[30].mxu1 %v149_v15  ;;  %1636 = vmatprep.subr.bf16.mxu1 %v1970_v0  ;;  %v1736_v13 = vpack.c.bf16 %v368_v8, %v367_v7  ;;  %v369_v15 = vld [vmem:[%s3500_s1 + $0x410] sm:$0xff]  ;;  %v89_v7 = vld [vmem:[%s3501_s0 + $0x258] sm:$0xff] }
  0x80   :  { %910 = vmatmul.mubr.f32.gmra.mrb[30].mxu0 %v153_v16  ;;  %534 = vmatprep.mubr.f32.mxu1 %v159_v17  ;;  %v370_v16 = vld [vmem:[%s3500_s1 + $0x418] sm:$0xff]  ;;  %v30_v17 = vld [vmem:[%s3501_s0 + $0x80] sm:$0xff] }
  0x81   :  { %914 = vmatprep.mubr.f32.mxu0 %v163_v19  ;;  %1734 = vmatpush1.bf16.msra.mxu0 %v2679_v18  ;;  %v25_v19 = vld [vmem:[%s3501_s0 + $0x58] sm:$0xff] }
  0x82   :  { %1638 = vmatpush1.bf16.msra.mxu1 %v1637_v21  ;;  %1735 = vmatprep.subr.bf16.mxu0 %v1970_v0  ;;  %v29_v21 = vld [vmem:[%s3501_s0 + $0x78] sm:$0xff] }
  0x83   :  { %535 = vmatmul.mubr.f32.gmra.mrb[32].mxu1 %v158_v23  ;;  %1759 = vmatprep.subr.bf16.mxu1 %v1970_v0  ;;  %v35_v23 = vld [vmem:[%s3501_s0 + $0xa8] sm:$0xff] }
  0x84   :  { %915 = vmatmul.mubr.f32.gmra.mrb[32].mxu0 %v162_v24  ;;  %539 = vmatprep.mubr.f32.mxu1 %v168_v25  ;;  %v1739_v24 = vpack.c.bf16 %v370_v16, %v369_v15  ;;  %v39_v25 = vld [vmem:[%s3501_s0 + $0xc8] sm:$0xff]  ;;  %v97_v15 = vld [vmem:[%s3501_s0 + $0x298] sm:$0xff] }
  0x85   :  { %919 = vmatprep.mubr.f32.mxu0 %v172_v26  ;;  %v372_v26 = vld [vmem:[%s3500_s1 + $0x428] sm:$0xff]  ;;  %v101_v16 = vld [vmem:[%s3501_s0 + $0x2b8] sm:$0xff] }
  0x87   :  { %540 = vmatmul.mubr.f32.gmra.mrb[34].mxu1 %v167_v27  ;;  %v34_v27 = vld [vmem:[%s3501_s0 + $0xa0] sm:$0xff] }
  0x88   :  { %920 = vmatmul.mubr.f32.gmra.mrb[34].mxu0 %v171_v28  ;;  %544 = vmatprep.mubr.f32.mxu1 %v177_v29  ;;  %v38_v28 = vld [vmem:[%s3501_s0 + $0xc0] sm:$0xff]  ;;  %v44_v29 = vld [vmem:[%s3501_s0 + $0xf0] sm:$0xff] }
  0x89   :  { %924 = vmatprep.mubr.f32.mxu0 %v181_v31 }
  0x8b   :  { %545 = vmatmul.mubr.f32.gmra.mrb[36].mxu1 %v176_v32  ;;  %v48_v32 = vld [vmem:[%s3501_s0 + $0x110] sm:$0xff] }
  0x8c   :  { %925 = vmatmul.mubr.f32.gmra.mrb[36].mxu0 %v180_v34  ;;  %549 = vmatprep.mubr.f32.mxu1 %v186_v35  ;;  %v373_v34 = vld [vmem:[%s3500_s1 + $0x430] sm:$0xff]  ;;  %v374_v35 = vld [vmem:[%s3500_s1 + $0x438] sm:$0xff] }
  0x8d   :  { %929 = vmatprep.mubr.f32.mxu0 %v190_v36  ;;  %v47_v36 = vld [vmem:[%s3501_s0 + $0x108] sm:$0xff] }
  0x8f   :  { %550 = vmatmul.mubr.f32.gmra.mrb[38].mxu1 %v185_v37  ;;  %v53_v37 = vld [vmem:[%s3501_s0 + $0x138] sm:$0xff] }
  0x90   :  { %930 = vmatmul.mubr.f32.gmra.mrb[38].mxu0 %v189_v38  ;;  %554 = vmatprep.mubr.f32.mxu1 %v195_v39  ;;  %v1745_v38 = vpack.c.bf16 %v374_v35, %v373_v34  ;;  %v57_v39 = vld [vmem:[%s3501_s0 + $0x158] sm:$0xff]  ;;  %v31_v34 = vld [vmem:[%s3501_s0 + $0x88] sm:$0xff] }
  0x91   :  { %934 = vmatprep.mubr.f32.mxu0 %v199_v41  ;;  %v375_v41 = vld [vmem:[%s3500_s1 + $0x440] sm:$0xff]  ;;  %v151_v35 = vld [vmem:[%s3501_s0 + $0x448] sm:$0xff] }
  0x93   :  { %555 = vmatmul.mubr.f32.gmra.mrb[40].mxu1 %v194_v43  ;;  %v376_v43 = vld [vmem:[%s3500_s1 + $0x448] sm:$0xff] }
  0x94   :  { %935 = vmatmul.mubr.f32.gmra.mrb[40].mxu0 %v198_v44  ;;  %559 = vmatprep.mubr.f32.mxu1 %v204_v46  ;;  %v52_v44 = vld [vmem:[%s3501_s0 + $0x130] sm:$0xff]  ;;  %v62_v46 = vld [vmem:[%s3501_s0 + $0x180] sm:$0xff] }
  0x95   :  { %939 = vmatprep.mubr.f32.mxu0 %v208_v47  ;;  %v1748_v47 = vpack.c.bf16 %v376_v43, %v375_v41  ;;  %v67_v41 = vld [vmem:[%s3501_s0 + $0x1a8] sm:$0xff]  ;;  %v188_v43 = vld [vmem:[%s3501_s0 + $0x570] sm:$0xff] }
  0x97   :  { %560 = vmatmul.mubr.f32.gmra.mrb[42].mxu1 %v203_v48  ;;  %v66_v48 = vld [vmem:[%s3501_s0 + $0x1a0] sm:$0xff] }
  0x98   :  { %940 = vmatmul.mubr.f32.gmra.mrb[42].mxu0 %v207_v49  ;;  %564 = vmatprep.mubr.f32.mxu1 %v213_v50  ;;  %v377_v49 = vld [vmem:[%s3500_s1 + $0x450] sm:$0xff]  ;;  %v378_v50 = vld [vmem:[%s3500_s1 + $0x458] sm:$0xff] }
  0x99   :  { %944 = vmatprep.mubr.f32.mxu0 %v217_v52  ;;  %v61_v52 = vld [vmem:[%s3501_s0 + $0x178] sm:$0xff] }
  0x9b   :  { %565 = vmatmul.mubr.f32.gmra.mrb[44].mxu1 %v212_v54  ;;  %v71_v54 = vld [vmem:[%s3501_s0 + $0x1c8] sm:$0xff] }
  0x9c   :  { %945 = vmatmul.mubr.f32.gmra.mrb[44].mxu0 %v216_v55  ;;  %569 = vmatprep.mubr.f32.mxu1 %v222_v56  ;;  %v1751_v55 = vpack.c.bf16 %v378_v50, %v377_v49  ;;  %v75_v56 = vld [vmem:[%s3501_s0 + $0x1e8] sm:$0xff]  ;;  %v206_v49 = vld [vmem:[%s3501_s0 + $0x600] sm:$0xff]  ;;  %v205_v50 = vld [vmem:[%s3501_s0 + $0x5f8] sm:$0xff] }
  0x9d   :  { %949 = vmatprep.mubr.f32.mxu0 %v226_v58  ;;  %v379_v58 = vld [vmem:[%s3500_s1 + $0x460] sm:$0xff] }
  0x9f   :  { %570 = vmatmul.mubr.f32.gmra.mrb[46].mxu1 %v221_v59  ;;  %v380_v59 = vld [vmem:[%s3500_s1 + $0x468] sm:$0xff] }
  0xa0   :  { %950 = vmatmul.mubr.f32.gmra.mrb[46].mxu0 %v225_v60  ;;  %574 = vmatprep.mubr.f32.mxu1 %v231_v61  ;;  %v70_v60 = vld [vmem:[%s3501_s0 + $0x1c0] sm:$0xff]  ;;  %v80_v61 = vld [vmem:[%s3501_s0 + $0x210] sm:$0xff] }
  0xa1   :  { %954 = vmatprep.mubr.f32.mxu0 %v235_v1  ;;  %v1754_v1 = vpack.c.bf16 %v380_v59, %v379_v58  ;;  %v223_v58 = vld [vmem:[%s3501_s0 + $0x688] sm:$0xff]  ;;  %v112_v59 = vld [vmem:[%s3501_s0 + $0x310] sm:$0xff] }
  0xa3   :  { %575 = vmatmul.mubr.f32.gmra.mrb[48].mxu1 %v230_v2  ;;  %v84_v2 = vld [vmem:[%s3501_s0 + $0x230] sm:$0xff] }
  0xa4   :  { %955 = vmatmul.mubr.f32.gmra.mrb[48].mxu0 %v234_v3  ;;  %644 = vmatprep.mubr.f32.mxu1 %v17_v4  ;;  %v381_v3 = vld [vmem:[%s3500_s1 + $0x470] sm:$0xff]  ;;  %v382_v4 = vld [vmem:[%s3500_s1 + $0x478] sm:$0xff] }
  0xa5   :  { %1024 = vmatprep.mubr.f32.mxu0 %v21_v5  ;;  %v79_v5 = vld [vmem:[%s3501_s0 + $0x208] sm:$0xff]  ;;  %v1757_v8 = vpack.c.bf16 %v382_v4, %v381_v3  ;;  %v130_v3 = vld [vmem:[%s3501_s0 + $0x3a0] sm:$0xff] }
  0xa6   :  { %v147_v4 = vld [vmem:[%s3501_s0 + $0x428] sm:$0xff] }
  0xa7   :  { %645 = vmatmul.mubr.f32.vlgmr.msra.gmra.mrb[0].mxu1 %v16_v9  ;;  %v93_v9 = vld [vmem:[%s3501_s0 + $0x278] sm:$0xff] }
  0xa8   :  { %1025 = vmatmul.mubr.f32.vlgmr.msra.gmra.mrb[0].mxu0 %v20_v12  ;;  %649 = vmatprep.mubr.f32.mxu1 %v26_v14  ;;  %v88_v12 = vld [vmem:[%s3501_s0 + $0x250] sm:$0xff]  ;;  %v102_v14 = vld [vmem:[%s3501_s0 + $0x2c0] sm:$0xff] }
  0xa9   :  { %1737 = vmatpush3.bf16.msra.mxu0 %v1736_v13  ;;  %1775 = vmatpush1.bf16.msra.mxu1 %v2241_v42  ;;  %v371_v42 = vld [vmem:[%s3500_s1 + $0x420] sm:$0xff]  ;;  %v92_v13 = vld [vmem:[%s3501_s0 + $0x270] sm:$0xff] }
  0xaa   :  { %1029 = vmatprep.mubr.f32.mxu0 %v30_v17  ;;  %1738 = vmatprep.subr.bf16.mxu0 %v1970_v0  ;;  %v1742_v31 = vpack.c.bf16 %v372_v26, %v371_v42  ;;  %v107_v17 = vld [vmem:[%s3501_s0 + $0x2e8] sm:$0xff]  ;;  %v125_v42 = vld [vmem:[%s3501_s0 + $0x378] sm:$0xff]  ;;  %v124_v26 = vld [vmem:[%s3501_s0 + $0x370] sm:$0xff] }
  0xab   :  { %650 = vmatmul.mubr.f32.gmra.mrb[2].mxu1 %v25_v19  ;;  %1760 = vmatprep.subr.bf16.mxu1 %v1970_v0  ;;  %v106_v19 = vld [vmem:[%s3501_s0 + $0x2e0] sm:$0xff] }
  0xac   :  { %1030 = vmatmul.mubr.f32.gmra.mrb[2].mxu0 %v29_v21  ;;  %654 = vmatprep.mubr.f32.mxu1 %v35_v23  ;;  %v110_v21 = vld [vmem:[%s3501_s0 + $0x300] sm:$0xff]  ;;  %v116_v23 = vld [vmem:[%s3501_s0 + $0x330] sm:$0xff] }
  0xad   :  { %1034 = vmatprep.mubr.f32.mxu0 %v39_v25  ;;  %1740 = vmatpush3.bf16.msra.mxu0 %v1739_v24  ;;  %v115_v24 = vld [vmem:[%s3501_s0 + $0x328] sm:$0xff] }
  0xae   :  { %1776 = vmatpush1.bf16.msra.mxu1 %v2273_v53  ;;  %1741 = vmatprep.subr.bf16.mxu0 %v1970_v0  ;;  %v43_v53 = vld [vmem:[%s3501_s0 + $0xe8] sm:$0xff] }
  0xaf   :  { %655 = vmatmul.mubr.f32.gmra.mrb[4].mxu1 %v34_v27  ;;  %1761 = vmatprep.subr.bf16.mxu1 %v1970_v0  ;;  %v119_v25 = vld [vmem:[%s3501_s0 + $0x348] sm:$0xff]  ;;  %v128_v27 = vld [vmem:[%s3501_s0 + $0x390] sm:$0xff] }
  0xb0   :  { %1035 = vmatmul.mubr.f32.gmra.mrb[4].mxu0 %v38_v28  ;;  %659 = vmatprep.mubr.f32.mxu1 %v44_v29  ;;  %v134_v28 = vld [vmem:[%s3501_s0 + $0x3c0] sm:$0xff]  ;;  %v1972_v29 = vmov 0.0  }
  0xb1   :  { %1039 = vmatprep.mubr.f32.mxu0 %v48_v32  ;;  %1743 = vmatpush3.bf16.msra.mxu0 %v1742_v31  ;;  %v22_v31 = vld [vmem:[%s3501_s0 + $0x40] sm:$0xff] }
  0xb2   :  { %1777 = vmatpush1.bf16.msra.mxu1 %v2302_v63  ;;  %1744 = vmatprep.subr.bf16.mxu0 %v1970_v0  ;;  %v56_v63 = vld [vmem:[%s3501_s0 + $0x150] sm:$0xff]  ;;  %v142_v32 = vld [vmem:[%s3501_s0 + $0x400] sm:$0xff] }
  0xb3   :  { %660 = vmatmul.mubr.f32.gmra.mrb[6].mxu1 %v43_v53  ;;  %1762 = vmatprep.subr.bf16.mxu1 %v1970_v0  ;;  %v40_v53 = vld [vmem:[%s3501_s0 + $0xd0] sm:$0xff] }
  0xb4   :  { %1040 = vmatmul.mubr.f32.gmra.mrb[6].mxu0 %v47_v36  ;;  %664 = vmatprep.mubr.f32.mxu1 %v53_v37  ;;  %v160_v36 = vld [vmem:[%s3501_s0 + $0x490] sm:$0xff]  ;;  %v49_v37 = vld [vmem:[%s3501_s0 + $0x118] sm:$0xff] }
  0xb5   :  { %1044 = vmatprep.mubr.f32.mxu0 %v57_v39  ;;  %1746 = vmatpush3.bf16.msra.mxu0 %v1745_v38  ;;  %v58_v38 = vld [vmem:[%s3501_s0 + $0x160] sm:$0xff]  ;;  %v179_v39 = vld [vmem:[%s3501_s0 + $0x528] sm:$0xff] }
  0xb6   :  { %1778 = vmatpush1.bf16.msra.mxu1 %v2331_v10  ;;  %1747 = vmatprep.subr.bf16.mxu0 %v1970_v0  ;;  %v65_v10 = vld [vmem:[%s3501_s0 + $0x198] sm:$0xff] }
  0xb7   :  { %665 = vmatmul.mubr.f32.gmra.mrb[8].mxu1 %v52_v44  ;;  %1763 = vmatprep.subr.bf16.mxu1 %v1970_v0  ;;  %v187_v44 = vld [vmem:[%s3501_s0 + $0x568] sm:$0xff] }
  0xb8   :  { %1045 = vmatmul.mubr.f32.gmra.mrb[8].mxu0 %v56_v63  ;;  %669 = vmatprep.mubr.f32.mxu1 %v62_v46  ;;  %v76_v63 = vld [vmem:[%s3501_s0 + $0x1f0] sm:$0xff]  ;;  %v197_v46 = vld [vmem:[%s3501_s0 + $0x5b8] sm:$0xff] }
  0xb9   :  { %1049 = vmatprep.mubr.f32.mxu0 %v66_v48  ;;  %1749 = vmatpush3.bf16.msra.mxu0 %v1748_v47  ;;  %v196_v47 = vld [vmem:[%s3501_s0 + $0x5b0] sm:$0xff]  ;;  %v85_v48 = vld [vmem:[%s3501_s0 + $0x238] sm:$0xff] }
  0xba   :  { %1779 = vmatpush1.bf16.msra.mxu1 %v2360_v20  ;;  %1750 = vmatprep.subr.bf16.mxu0 %v1970_v0  ;;  %v74_v20 = vld [vmem:[%s3501_s0 + $0x1e0] sm:$0xff] }
  0xbb   :  { %670 = vmatmul.mubr.f32.gmra.mrb[10].mxu1 %v61_v52  ;;  %1764 = vmatprep.subr.bf16.mxu1 %v1970_v0  ;;  %v94_v52 = vld [vmem:[%s3501_s0 + $0x280] sm:$0xff] }
  0xbc   :  { %1050 = vmatmul.mubr.f32.gmra.mrb[10].mxu0 %v65_v10  ;;  %674 = vmatprep.mubr.f32.mxu1 %v71_v54  ;;  %v215_v10 = vld [vmem:[%s3501_s0 + $0x648] sm:$0xff]  ;;  %v214_v54 = vld [vmem:[%s3501_s0 + $0x640] sm:$0xff] }
  0xbd   :  { %1054 = vmatprep.mubr.f32.mxu0 %v75_v56  ;;  %1752 = vmatpush3.bf16.msra.mxu0 %v1751_v55  ;;  %v103_v55 = vld [vmem:[%s3501_s0 + $0x2c8] sm:$0xff]  ;;  %v224_v56 = vld [vmem:[%s3501_s0 + $0x690] sm:$0xff] }
  0xbe   :  { %1780 = vmatpush1.bf16.msra.mxu1 %v2389_v30  ;;  %1753 = vmatprep.subr.bf16.mxu0 %v1970_v0  ;;  %v83_v30 = vld [vmem:[%s3501_s0 + $0x228] sm:$0xff] }
  0xbf   :  { %675 = vmatmul.mubr.f32.gmra.mrb[12].mxu1 %v70_v60  ;;  %1765 = vmatprep.subr.bf16.mxu1 %v1970_v0  ;;  %v233_v60 = vld [vmem:[%s3501_s0 + $0x6d8] sm:$0xf] }
  0xc0   :  { %1055 = vmatmul.mubr.f32.gmra.mrb[12].mxu0 %v74_v20  ;;  %679 = vmatprep.mubr.f32.mxu1 %v80_v61  ;;  %v232_v20 = vld [vmem:[%s3501_s0 + $0x6d0] sm:$0xf]  ;;  %v121_v61 = vld [vmem:[%s3501_s0 + $0x358] sm:$0xff] }
  0xc1   :  { %1059 = vmatprep.mubr.f32.mxu0 %v84_v2  ;;  %1755 = vmatpush3.bf16.msra.mxu0 %v1754_v1  ;;  %v138_v1 = vld [vmem:[%s3501_s0 + $0x3e0] sm:$0xff]  ;;  %v137_v2 = vld [vmem:[%s3501_s0 + $0x3d8] sm:$0xff] }
  0xc2   :  { %1781 = vmatpush1.bf16.msra.mxu1 %v2418_v40  ;;  %1756 = vmatprep.subr.bf16.mxu0 %v1970_v0  ;;  %v98_v40 = vld [vmem:[%s3501_s0 + $0x2a0] sm:$0xff] }
  0xc3   :  { %680 = vmatmul.mubr.f32.gmra.mrb[14].mxu1 %v79_v5  ;;  %1766 = vmatprep.subr.bf16.mxu1 %v1970_v0  ;;  %v146_v5 = vld [vmem:[%s3501_s0 + $0x420] sm:$0xff] }
  0xc4   :  { %1060 = vmatmul.mubr.f32.gmra.mrb[14].mxu0 %v83_v30  ;;  %684 = vmatprep.mubr.f32.mxu1 %v89_v7  ;;  %v139_v30 = vld [vmem:[%s3501_s0 + $0x3e8] sm:$0xff]  ;;  %v156_v7 = vld [vmem:[%s3501_s0 + $0x470] sm:$0xff] }
  0xc5   :  { %1064 = vmatprep.mubr.f32.mxu0 %v93_v9  ;;  %1758 = vmatpush3.bf16.msra.mxu0 %v1757_v8  ;;  %v155_v8 = vld [vmem:[%s3501_s0 + $0x468] sm:$0xff]  ;;  %v148_v9 = vld [vmem:[%s3501_s0 + $0x430] sm:$0xff] }
  0xc6   :  { %1782 = vmatpush1.bf16.msra.mxu1 %v2447_v51  ;;  %v111_v51 = vld [vmem:[%s3501_s0 + $0x308] sm:$0xff] }
  0xc7   :  { %685 = vmatmul.mubr.f32.gmra.mrb[16].mxu1 %v88_v12  ;;  %1767 = vmatprep.subr.bf16.mxu1 %v1970_v0  ;;  %v165_v12 = vld [vmem:[%s3501_s0 + $0x4b8] sm:$0xff] }
  0xc8   :  { %1065 = vmatmul.mubr.f32.gmra.mrb[16].mxu0 %v92_v13  ;;  %689 = vmatprep.mubr.f32.mxu1 %v98_v40  ;;  %v164_v13 = vld [vmem:[%s3501_s0 + $0x4b0] sm:$0xff]  ;;  %v157_v40 = vld [vmem:[%s3501_s0 + $0x478] sm:$0xff] }
  0xc9   :  { %1069 = vmatprep.mubr.f32.mxu0 %v102_v14  ;;  %v174_v14 = vld [vmem:[%s3501_s0 + $0x500] sm:$0xff] }
  0xca   :  { %1783 = vmatpush1.bf16.msra.mxu1 %v2476_v62  ;;  %v120_v62 = vld [vmem:[%s3501_s0 + $0x350] sm:$0xff] }
  0xcb   :  { %690 = vmatmul.mubr.f32.gmra.mrb[18].mxu1 %v97_v15  ;;  %1768 = vmatprep.subr.bf16.mxu1 %v1970_v0  ;;  %v173_v15 = vld [vmem:[%s3501_s0 + $0x4f8] sm:$0xff] }
  0xcc   :  { %1070 = vmatmul.mubr.f32.gmra.mrb[18].mxu0 %v101_v16  ;;  %694 = vmatprep.mubr.f32.mxu1 %v107_v17  ;;  %v166_v16 = vld [vmem:[%s3501_s0 + $0x4c0] sm:$0xff]  ;;  %v183_v17 = vld [vmem:[%s3501_s0 + $0x548] sm:$0xff] }
  0xcd   :  { %1074 = vmatprep.mubr.f32.mxu0 %v111_v51  ;;  %v182_v51 = vld [vmem:[%s3501_s0 + $0x540] sm:$0xff] }
  0xce   :  { %1784 = vmatpush1.bf16.msra.mxu1 %v2505_v11  ;;  %v129_v11 = vld [vmem:[%s3501_s0 + $0x398] sm:$0xff] }
  0xcf   :  { %695 = vmatmul.mubr.f32.gmra.mrb[20].mxu1 %v106_v19  ;;  %1769 = vmatprep.subr.bf16.mxu1 %v1970_v0  ;;  %v175_v19 = vld [vmem:[%s3501_s0 + $0x508] sm:$0xff] }
  0xd0   :  { %1075 = vmatmul.mubr.f32.gmra.mrb[20].mxu0 %v110_v21  ;;  %699 = vmatprep.mubr.f32.mxu1 %v116_v23  ;;  %v192_v21 = vld [vmem:[%s3501_s0 + $0x590] sm:$0xff]  ;;  %v191_v23 = vld [vmem:[%s3501_s0 + $0x588] sm:$0xff] }
  0xd1   :  { %1079 = vmatprep.mubr.f32.mxu0 %v120_v62  ;;  %v184_v62 = vld [vmem:[%s3501_s0 + $0x550] sm:$0xff] }
  0xd2   :  { %1785 = vmatpush1.bf16.msra.mxu1 %v2534_v22  ;;  %v133_v22 = vld [vmem:[%s3501_s0 + $0x3b8] sm:$0xff] }
  0xd3   :  { %700 = vmatmul.mubr.f32.gmra.mrb[22].mxu1 %v115_v24  ;;  %1770 = vmatprep.subr.bf16.mxu1 %v1970_v0  ;;  %v201_v24 = vld [vmem:[%s3501_s0 + $0x5d8] sm:$0xff] }
  0xd4   :  { %1080 = vmatmul.mubr.f32.gmra.mrb[22].mxu0 %v119_v25  ;;  %704 = vmatprep.mubr.f32.mxu1 %v125_v42  ;;  %v200_v25 = vld [vmem:[%s3501_s0 + $0x5d0] sm:$0xff]  ;;  %v193_v42 = vld [vmem:[%s3501_s0 + $0x598] sm:$0xff] }
  0xd5   :  { %1084 = vmatprep.mubr.f32.mxu0 %v129_v11  ;;  %v210_v11 = vld [vmem:[%s3501_s0 + $0x620] sm:$0xff] }
  0xd6   :  { %1786 = vmatpush1.bf16.msra.mxu1 %v2563_v33  ;;  %v143_v33 = vld [vmem:[%s3501_s0 + $0x408] sm:$0xff] }
  0xd7   :  { %705 = vmatmul.mubr.f32.gmra.mrb[24].mxu1 %v124_v26  ;;  %1771 = vmatprep.subr.bf16.mxu1 %v1970_v0  ;;  %v209_v26 = vld [vmem:[%s3501_s0 + $0x618] sm:$0xff] }
  0xd8   :  { %1085 = vmatmul.mubr.f32.gmra.mrb[24].mxu0 %v128_v27  ;;  %709 = vmatprep.mubr.f32.mxu1 %v134_v28  ;;  %v202_v27 = vld [vmem:[%s3501_s0 + $0x5e0] sm:$0xff]  ;;  %v219_v28 = vld [vmem:[%s3501_s0 + $0x668] sm:$0xff] }
  0xd9   :  { %1468 = vmatprep.mubr.msk.f32.mxu0 %vm1971_vm0, %v1972_v29 }
  0xda   :  { %1787 = vmatpush1.bf16.msra.mxu1 %v2592_v45  ;;  %v152_v45 = vld [vmem:[%s3501_s0 + $0x450] sm:$0xff] }
  0xdb   :  { %710 = vmatmul.mubr.f32.gmra.mrb[26].mxu1 %v133_v22  ;;  %1772 = vmatprep.subr.bf16.mxu1 %v1970_v0  ;;  %v218_v22 = vld [vmem:[%s3501_s0 + $0x660] sm:$0xff] }
  0xdc   :  { %1469 = vmatmul.mubr.f32.vlgmr.msra.gmra.mrb[0].mxu0 %v22_v31  ;;  %714 = vmatprep.mubr.f32.mxu1 %v143_v33  ;;  %v211_v31 = vld [vmem:[%s3501_s0 + $0x628] sm:$0xff]  ;;  %v228_v33 = vld [vmem:[%s3501_s0 + $0x6b0] sm:$0xff] }
  0xdd   :  { %1471 = vmatprep.mubr.msk.f32.mxu0 %vm1971_vm0, %v1972_v29 }
  0xde   :  { %1788 = vmatpush1.bf16.msra.mxu1 %v2621_v57  ;;  %v161_v57 = vld [vmem:[%s3501_s0 + $0x498] sm:$0xff] }
  0xdf   :  { %715 = vmatmul.mubr.f32.gmra.mrb[28].mxu1 %v142_v32  ;;  %1773 = vmatprep.subr.bf16.mxu1 %v1970_v0  ;;  %v227_v32 = vld [vmem:[%s3501_s0 + $0x6a8] sm:$0xff] }
  0xe0   :  { %1472 = vmatmul.mubr.f32.gmra.mrb[2].mxu0 %v31_v34  ;;  %719 = vmatprep.mubr.f32.mxu1 %v152_v45  ;;  %v220_v34 = vld [vmem:[%s3501_s0 + $0x670] sm:$0xff]  ;;  %v237_v45 = vld [vmem:[%s3501_s0 + $0x6f8] sm:$0xf] }
  0xe1   :  { %1474 = vmatprep.mubr.msk.f32.mxu0 %vm1971_vm0, %v1972_v29 }
  0xe2   :  { %1789 = vmatpush1.bf16.msra.mxu1 %v2650_v6  ;;  %v170_v6 = vld [vmem:[%s3501_s0 + $0x4e0] sm:$0xff] }
  0xe3   :  { %720 = vmatmul.mubr.f32.gmra.mrb[30].mxu1 %v151_v35  ;;  %1774 = vmatprep.subr.bf16.mxu1 %v1970_v0  ;;  %v169_v0 = vld [vmem:[%s3501_s0 + $0x4d8] sm:$0xff]  ;;  %v236_v35 = vld [vmem:[%s3501_s0 + $0x6f0] sm:$0xf] }
  0xe4   :  { %1475 = vmatmul.mubr.f32.gmra.mrb[4].mxu0 %v40_v53  ;;  %724 = vmatprep.mubr.f32.mxu1 %v161_v57  ;;  %v229_v53 = vld [vmem:[%s3501_s0 + $0x6b8] sm:$0xff]  ;;  %v238_v57 = vld [vmem:[%s3501_s0 + $0x700] sm:$0xf] }
  0xe5   :  { %1477 = vmatprep.mubr.msk.f32.mxu0 %vm1971_vm0, %v1972_v29 }
  0xe6   :  { %1790 = vmatpush1.bf16.msra.mxu1 %v2679_v18  ;;  %v178_v18 = vld [vmem:[%s3501_s0 + $0x520] sm:$0xff] }
  0xe7   :  { %725 = vmatmul.mubr.f32.gmra.mrb[32].mxu1 %v160_v36 }
  0xe8   :  { %1478 = vmatmul.mubr.f32.gmra.mrb[6].mxu0 %v49_v37  ;;  %729 = vmatprep.mubr.f32.mxu1 %v170_v6 }
  0xe9   :  { %1480 = vmatprep.mubr.msk.f32.mxu0 %vm1971_vm0, %v1972_v29 }
  0xeb   :  { %730 = vmatmul.mubr.f32.gmra.mrb[34].mxu1 %v169_v0 }
  0xec   :  { %1481 = vmatmul.mubr.f32.gmra.mrb[8].mxu0 %v58_v38  ;;  %734 = vmatprep.mubr.f32.mxu1 %v179_v39 }
  0xed   :  { %1483 = vmatprep.mubr.msk.f32.mxu0 %vm1971_vm0, %v1972_v29 }
  0xef   :  { %735 = vmatmul.mubr.f32.gmra.mrb[36].mxu1 %v178_v18 }
  0xf0   :  { %1484 = vmatmul.mubr.f32.gmra.mrb[10].mxu0 %v67_v41  ;;  %739 = vmatprep.mubr.f32.mxu1 %v188_v43 }
  0xf1   :  { %1486 = vmatprep.mubr.msk.f32.mxu0 %vm1971_vm0, %v1972_v29 }
  0xf3   :  { %740 = vmatmul.mubr.f32.gmra.mrb[38].mxu1 %v187_v44 }
  0xf4   :  { %1487 = vmatmul.mubr.f32.gmra.mrb[12].mxu0 %v76_v63  ;;  %744 = vmatprep.mubr.f32.mxu1 %v197_v46 }
  0xf5   :  { %1489 = vmatprep.mubr.msk.f32.mxu0 %vm1971_vm0, %v1972_v29 }
  0xf7   :  { %745 = vmatmul.mubr.f32.gmra.mrb[40].mxu1 %v196_v47 }
  0xf8   :  { %1490 = vmatmul.mubr.f32.gmra.mrb[14].mxu0 %v85_v48  ;;  %749 = vmatprep.mubr.f32.mxu1 %v206_v49 }
  0xf9   :  { %1492 = vmatprep.mubr.msk.f32.mxu0 %vm1971_vm0, %v1972_v29 }
  0xfb   :  { %750 = vmatmul.mubr.f32.gmra.mrb[42].mxu1 %v205_v50 }
  0xfc   :  { %1493 = vmatmul.mubr.f32.gmra.mrb[16].mxu0 %v94_v52  ;;  %754 = vmatprep.mubr.f32.mxu1 %v215_v10 }
  0xfd   :  { %1495 = vmatprep.mubr.msk.f32.mxu0 %vm1971_vm0, %v1972_v29 }
  0xff   :  { %755 = vmatmul.mubr.f32.gmra.mrb[44].mxu1 %v214_v54 }
 0x100   :  { %1496 = vmatmul.mubr.f32.gmra.mrb[18].mxu0 %v103_v55  ;;  %759 = vmatprep.mubr.f32.mxu1 %v224_v56 }
 0x101   :  { %1498 = vmatprep.mubr.msk.f32.mxu0 %vm1971_vm0, %v1972_v29 }
 0x103   :  { %760 = vmatmul.mubr.f32.gmra.mrb[46].mxu1 %v223_v58 }
 0x104   :  { %1499 = vmatmul.mubr.f32.gmra.mrb[20].mxu0 %v112_v59  ;;  %764 = vmatprep.mubr.f32.mxu1 %v233_v60 }
 0x105   :  { %1501 = vmatprep.mubr.msk.f32.mxu0 %vm1971_vm0, %v1972_v29 }
 0x107   :  { %765 = vmatmul.mubr.f32.gmra.mrb[48].mxu1 %v232_v20 }
 0x108   :  { %1502 = vmatmul.mubr.f32.gmra.mrb[22].mxu0 %v121_v61  ;;  %1089 = vmatprep.mubr.f32.mxu1 %v138_v1 }
 0x109   :  { %1504 = vmatprep.mubr.msk.f32.mxu0 %vm1971_vm0, %v1972_v29 }
 0x10b   :  { %1090 = vmatmul.mubr.f32.vlgmr.msra.gmra.mrb[50].mxu1 %v137_v2 }
 0x10c   :  { %1505 = vmatmul.mubr.f32.gmra.mrb[24].mxu0 %v130_v3  ;;  %1094 = vmatprep.mubr.f32.mxu1 %v147_v4 }
 0x10d   :  { %1507 = vmatprep.mubr.msk.f32.mxu0 %vm1971_vm0, %v1972_v29 }
 0x10f   :  { %1095 = vmatmul.mubr.f32.gmra.mrb[52].mxu1 %v146_v5 }
 0x110   :  { %1508 = vmatmul.mubr.f32.gmra.mrb[50].mxu0 %v139_v30  ;;  %1099 = vmatprep.mubr.f32.mxu1 %v156_v7 }
 0x111   :  { %1510 = vmatprep.mubr.msk.f32.mxu0 %vm1971_vm0, %v1972_v29 }
 0x113   :  { %1100 = vmatmul.mubr.f32.gmra.mrb[54].mxu1 %v155_v8 }
 0x114   :  { %1511 = vmatmul.mubr.f32.gmra.mrb[52].mxu0 %v148_v9  ;;  %1104 = vmatprep.mubr.f32.mxu1 %v165_v12 }
 0x115   :  { %1513 = vmatprep.mubr.msk.f32.mxu0 %vm1971_vm0, %v1972_v29 }
 0x117   :  { %1105 = vmatmul.mubr.f32.gmra.mrb[56].mxu1 %v164_v13 }
 0x118   :  { %1514 = vmatmul.mubr.f32.gmra.mrb[54].mxu0 %v157_v40  ;;  %1109 = vmatprep.mubr.f32.mxu1 %v174_v14 }
 0x119   :  { %1516 = vmatprep.mubr.msk.f32.mxu0 %vm1971_vm0, %v1972_v29 }
 0x11b   :  { %1110 = vmatmul.mubr.f32.gmra.mrb[58].mxu1 %v173_v15 }
 0x11c   :  { %1517 = vmatmul.mubr.f32.gmra.mrb[56].mxu0 %v166_v16  ;;  %1114 = vmatprep.mubr.f32.mxu1 %v183_v17 }
 0x11d   :  { %1519 = vmatprep.mubr.msk.f32.mxu0 %vm1971_vm0, %v1972_v29 }
 0x11f   :  { %1115 = vmatmul.mubr.f32.gmra.mrb[60].mxu1 %v182_v51 }
 0x120   :  { %1520 = vmatmul.mubr.f32.gmra.mrb[58].mxu0 %v175_v19  ;;  %1119 = vmatprep.mubr.f32.mxu1 %v192_v21 }
 0x121   :  { %1522 = vmatprep.mubr.msk.f32.mxu0 %vm1971_vm0, %v1972_v29 }
 0x123   :  { %1120 = vmatmul.mubr.f32.gmra.mrb[62].mxu1 %v191_v23 }
 0x124   :  { %1523 = vmatmul.mubr.f32.gmra.mrb[60].mxu0 %v184_v62  ;;  %1124 = vmatprep.mubr.f32.mxu1 %v201_v24 }
 0x125   :  { %1525 = vmatprep.mubr.msk.f32.mxu0 %vm1971_vm0, %v1972_v29 }
 0x127   :  { %1125 = vmatmul.mubr.f32.gmra.mrb[64].mxu1 %v200_v25  ;;  %v3343_v25 = vld [vmem:[%s3502_s2] ss:$0 sm:$0xff] }
 0x128   :  { %1526 = vmatmul.mubr.f32.gmra.mrb[62].mxu0 %v193_v42  ;;  %1129 = vmatprep.mubr.f32.mxu1 %v210_v11 }
 0x129   :  { %1528 = vmatprep.mubr.msk.f32.mxu0 %vm1971_vm0, %v1972_v29 }
 0x12b   :  { %1130 = vmatmul.mubr.f32.gmra.mrb[66].mxu1 %v209_v26 }
 0x12c   :  { %1529 = vmatmul.mubr.f32.gmra.mrb[64].mxu0 %v202_v27  ;;  %1134 = vmatprep.mubr.f32.mxu1 %v219_v28 }
 0x12d   :  { %1531 = vmatprep.mubr.msk.f32.mxu0 %vm1971_vm0, %v1972_v29 }
 0x12f   :  { %1135 = vmatmul.mubr.f32.gmra.mrb[68].mxu1 %v218_v22 }
 0x130   :  { %1532 = vmatmul.mubr.f32.gmra.mrb[66].mxu0 %v211_v31  ;;  %1139 = vmatprep.mubr.f32.mxu1 %v228_v33 }
 0x131   :  { %1534 = vmatprep.mubr.msk.f32.mxu0 %vm1971_vm0, %v1972_v29 }
 0x133   :  { %1140 = vmatmul.mubr.f32.gmra.mrb[70].mxu1 %v227_v32 }
 0x134   :  { %1535 = vmatmul.mubr.f32.gmra.mrb[68].mxu0 %v220_v34  ;;  %1144 = vmatprep.mubr.f32.mxu1 %v237_v45 }
 0x135   :  { %1537 = vmatprep.mubr.msk.f32.mxu0 %vm1971_vm0, %v1972_v29 }
 0x137   :  { %1145 = vmatmul.mubr.f32.gmra.mrb[72].mxu1 %v236_v35 }
 0x138   :  { %1538 = vmatmul.mubr.f32.gmra.mrb[70].mxu0 %v229_v53 }
 0x139   :  { %1540 = vmatprep.mubr.msk.f32.mxu0 %vm1971_vm0, %v1972_v29 }
 0x13c   :  { %1541 = vmatmul.mubr.f32.gmra.mrb[72].mxu0 %v238_v57 }
 0x14b   :  { %v901_v36 = vpop.f32.mrb[26].mxu0 }
 0x14c   :  { %v903_v37 = vpop.f32.mrb[27].mxu0 }
 0x14f   :  { %v3302_v6 = vpop.f32.mrb[28].mxu0 }
 0x150   :  { %v908_v0 = vpop.f32.mrb[29].mxu0 }
 0x153   :  { %v3304_v38 = vpop.f32.mrb[30].mxu0 }
 0x154   :  { %v913_v39 = vpop.f32.mrb[31].mxu0 }
 0x157   :  { %v3306_v18 = vpop.f32.mrb[32].mxu0 }
 0x158   :  { %v918_v41 = vpop.f32.mrb[33].mxu0 }
 0x15b   :  { %v3308_v43 = vpop.f32.mrb[34].mxu0 }
 0x15c   :  { %v923_v44 = vpop.f32.mrb[35].mxu0 }
 0x15f   :  { %v3310_v29 = vpop.f32.mrb[36].mxu0 }
 0x160   :  { %v928_v63 = vpop.f32.mrb[37].mxu0 }
 0x163   :  { %v3312_v46 = vpop.f32.mrb[38].mxu0 }
 0x164   :  { %v933_v47 = vpop.f32.mrb[39].mxu0 }
 0x167   :  { %v3314_v48 = vpop.f32.mrb[40].mxu0 }
 0x168   :  { %v938_v49 = vpop.f32.mrb[41].mxu0 }
 0x16b   :  { %v3316_v50 = vpop.f32.mrb[42].mxu0 }
 0x16c   :  { %v943_v52 = vpop.f32.mrb[43].mxu0 }
 0x16f   :  { %v3318_v10 = vpop.f32.mrb[44].mxu0 }
 0x170   :  { %v948_v54 = vpop.f32.mrb[45].mxu0 }
 0x173   :  { %v3320_v55 = vpop.f32.mrb[46].mxu0 }
 0x174   :  { %v953_v56 = vpop.f32.mrb[47].mxu0 }
 0x177   :  { %v3322_v58 = vpop.f32.mrb[48].mxu0 }
 0x178   :  { %v958_v59 = vpop.f32.mrb[49].mxu0 }
 0x17a   :  { %v646_v60 = vpop.f32.mrb[0].mxu1 }
 0x17b   :  { %v648_v20 = vpop.f32.mrb[1].mxu1  ;;  %v1791_v11 = vadd.f32 %v3343_v25, %v646_v60 }
 0x17e   :  { %v651_v61 = vpop.f32.mrb[2].mxu1 }
 0x17f   :  { %v653_v1 = vpop.f32.mrb[3].mxu1  ;;  %v1793_v34 = vadd.f32 %v3343_v25, %v651_v61 }
 0x182   :  { %v656_v2 = vpop.f32.mrb[4].mxu1 }
 0x183   :  { %v658_v3 = vpop.f32.mrb[5].mxu1 }
 0x186   :  { %v661_v4 = vpop.f32.mrb[6].mxu1 }
 0x187   :  { %v663_v5 = vpop.f32.mrb[7].mxu1 }
 0x18a   :  { %v666_v30 = vpop.f32.mrb[8].mxu1 }
 0x18b   :  { %v668_v7 = vpop.f32.mrb[9].mxu1 }
 0x18e   :  { %v3324_v8 = vpop.f32.mrb[10].mxu1 }
 0x18f   :  { %v673_v9 = vpop.f32.mrb[11].mxu1 }
 0x192   :  { %v3326_v12 = vpop.f32.mrb[12].mxu1 }
 0x193   :  { %v678_v13 = vpop.f32.mrb[13].mxu1 }
 0x196   :  { %v3328_v40 = vpop.f32.mrb[14].mxu1 }
 0x197   :  { %v683_v14 = vpop.f32.mrb[15].mxu1 }
 0x19a   :  { %v3330_v15 = vpop.f32.mrb[16].mxu1 }
 0x19b   :  { %v688_v16 = vpop.f32.mrb[17].mxu1 }
 0x19e   :  { %v3332_v17 = vpop.f32.mrb[18].mxu1 }
 0x19f   :  { %v693_v51 = vpop.f32.mrb[19].mxu1 }
 0x1a2   :  { %v3334_v19 = vpop.f32.mrb[20].mxu1 }
 0x1a3   :  { %v698_v21 = vpop.f32.mrb[21].mxu1 }
 0x1a6   :  { %v3336_v23 = vpop.f32.mrb[22].mxu1 }
 0x1a7   :  { %v703_v62 = vpop.f32.mrb[23].mxu1 }
 0x1aa   :  { %v3338_v24 = vpop.f32.mrb[24].mxu1 }
 0x1ab   :  { %v708_v42 = vpop.f32.mrb[25].mxu1 }
 0x1ae   :  { %v711_v26 = vpop.f32.mrb[26].mxu1 }
 0x1af   :  { %v1817_v27 = vadd.f32 %v3343_v25, %v711_v26  ;;  %v1216_v28 = vpop.f32.mrb[0].mxu0  ;;  %v713_v22 = vpop.f32.mrb[27].mxu1 }
 0x1b0   :  { %v1792_v31 = vadd.f32 %v1791_v11, %v1216_v28  ;;  %v1470_v33 = vpop.f32.mrb[1].mxu0 }
 0x1b1   :  { %v3347_v32 = vadd.f32 %v1817_v27, %v901_v36  ;;  %v1795_v36 = vadd.f32 %v3343_v25, %v656_v2 }
 0x1b2   :  { %v1340_v45 = vmax.f32 %v1792_v31, 0.0  ;;  %v716_v35 = vpop.f32.mrb[28].mxu1 }
 0x1b3   :  { %v1821_v53 = vadd.f32 %v3343_v25, %v716_v35  ;;  %v1221_v57 = vpop.f32.mrb[2].mxu0  ;;  %v718_v37 = vpop.f32.mrb[29].mxu1 }
 0x1b4   :  { %1365 = vst [vmem:[%s3503_s3] sm:$0xff] %v1340_v45  ;;  %v1794_v0 = vadd.f32 %v1793_v34, %v1221_v57  ;;  %v1473_v39 = vpop.f32.mrb[3].mxu0 }
 0x1b5   :  { %v3355_v41 = vadd.f32 %v1821_v53, %v3302_v6  ;;  %v1797_v6 = vadd.f32 %v3343_v25, %v661_v4 }
 0x1b6   :  { %v1341_v44 = vmax.f32 %v1794_v0, 0.0  ;;  %v721_v63 = vpop.f32.mrb[30].mxu1 }
 0x1b7   :  { %v1825_v47 = vadd.f32 %v3343_v25, %v721_v63  ;;  %v1226_v49 = vpop.f32.mrb[4].mxu0  ;;  %v723_v52 = vpop.f32.mrb[31].mxu1 }
 0x1b8   :  { %1366 = vst [vmem:[%s3503_s3 + $0x8] sm:$0xff] %v1341_v44  ;;  %v1796_v54 = vadd.f32 %v1795_v36, %v1226_v49  ;;  %v1476_v56 = vpop.f32.mrb[5].mxu0 }
 0x1b9   :  { %v3363_v59 = vadd.f32 %v1825_v47, %v3304_v38  ;;  %v1799_v38 = vadd.f32 %v3343_v25, %v666_v30 }
 0x1ba   :  { %v1342_v60 = vmax.f32 %v1796_v54, 0.0  ;;  %v726_v20 = vpop.f32.mrb[32].mxu1 }
 0x1bb   :  { %v1829_v61 = vadd.f32 %v3343_v25, %v726_v20  ;;  %v1231_v1 = vpop.f32.mrb[6].mxu0  ;;  %v728_v2 = vpop.f32.mrb[33].mxu1 }
 0x1bc   :  { %1367 = vst [vmem:[%s3503_s3 + $0x10] sm:$0xff] %v1342_v60  ;;  %v1798_v3 = vadd.f32 %v1797_v6, %v1231_v1  ;;  %v1479_v5 = vpop.f32.mrb[7].mxu0 }
 0x1bd   :  { %v3371_v7 = vadd.f32 %v1829_v61, %v3306_v18  ;;  %v1801_v18 = vadd.f32 %v3343_v25, %v3324_v8 }
 0x1be   :  { %v1343_v9 = vmax.f32 %v1798_v3, 0.0  ;;  %v731_v13 = vpop.f32.mrb[34].mxu1 }
 0x1bf   :  { %v1833_v4 = vadd.f32 %v3343_v25, %v731_v13  ;;  %v1236_v14 = vpop.f32.mrb[8].mxu0  ;;  %v733_v16 = vpop.f32.mrb[35].mxu1 }
 0x1c0   :  { %1368 = vst [vmem:[%s3503_s3 + $0x18] sm:$0xff] %v1343_v9  ;;  %v1800_v51 = vadd.f32 %v1799_v38, %v1236_v14  ;;  %v1482_v21 = vpop.f32.mrb[9].mxu0 }
 0x1c1   :  { %v3379_v62 = vadd.f32 %v1833_v4, %v3308_v43  ;;  %v1803_v43 = vadd.f32 %v3343_v25, %v3326_v12 }
 0x1c2   :  { %v1344_v42 = vmax.f32 %v1800_v51, 0.0  ;;  %v736_v30 = vpop.f32.mrb[36].mxu1 }
 0x1c3   :  { %v1837_v11 = vadd.f32 %v3343_v25, %v736_v30  ;;  %v1241_v26 = vpop.f32.mrb[10].mxu0  ;;  %v738_v27 = vpop.f32.mrb[37].mxu1 }
 0x1c4   :  { %1369 = vst [vmem:[%s3503_s3 + $0x20] sm:$0xff] %v1344_v42  ;;  %v1802_v28 = vadd.f32 %v1801_v18, %v1241_v26  ;;  %v1485_v22 = vpop.f32.mrb[11].mxu0 }
 0x1c5   :  { %v3388_v31 = vadd.f32 %v1837_v11, %v3310_v29  ;;  %v1805_v29 = vadd.f32 %v3343_v25, %v3328_v40 }
 0x1c6   :  { %v1345_v33 = vmax.f32 %v1802_v28, 0.0  ;;  %v741_v8 = vpop.f32.mrb[38].mxu1 }
 0x1c7   :  { %v1841_v34 = vadd.f32 %v3343_v25, %v741_v8  ;;  %v1246_v45 = vpop.f32.mrb[12].mxu0  ;;  %v743_v35 = vpop.f32.mrb[39].mxu1 }
 0x1c8   :  { %1370 = vst [vmem:[%s3503_s3 + $0x28] sm:$0xff] %v1345_v33  ;;  %v1804_v53 = vadd.f32 %v1803_v43, %v1246_v45  ;;  %v1488_v57 = vpop.f32.mrb[13].mxu0 }
 0x1c9   :  { %v3397_v37 = vadd.f32 %v1841_v34, %v3312_v46  ;;  %v1807_v46 = vadd.f32 %v3343_v25, %v3330_v15 }
 0x1ca   :  { %v1346_v0 = vmax.f32 %v1804_v53, 0.0  ;;  %v746_v12 = vpop.f32.mrb[40].mxu1 }
 0x1cb   :  { %v1845_v39 = vadd.f32 %v3343_v25, %v746_v12  ;;  %v1251_v36 = vpop.f32.mrb[14].mxu0  ;;  %v748_v44 = vpop.f32.mrb[41].mxu1 }
 0x1cc   :  { %1371 = vst [vmem:[%s3503_s3 + $0x30] sm:$0xff] %v1346_v0  ;;  %v1806_v63 = vadd.f32 %v1805_v29, %v1251_v36  ;;  %v1491_v47 = vpop.f32.mrb[15].mxu0 }
 0x1cd   :  { %v3406_v49 = vadd.f32 %v1845_v39, %v3314_v48  ;;  %v1809_v48 = vadd.f32 %v3343_v25, %v3332_v17 }
 0x1ce   :  { %v1347_v52 = vmax.f32 %v1806_v63, 0.0  ;;  %v751_v40 = vpop.f32.mrb[42].mxu1 }
 0x1cf   :  { %v1849_v54 = vadd.f32 %v3343_v25, %v751_v40  ;;  %v1256_v56 = vpop.f32.mrb[16].mxu0  ;;  %v753_v6 = vpop.f32.mrb[43].mxu1 }
 0x1d0   :  { %1372 = vst [vmem:[%s3503_s3 + $0x38] sm:$0xff] %v1347_v52  ;;  %v1808_v60 = vadd.f32 %v1807_v46, %v1256_v56  ;;  %v1494_v20 = vpop.f32.mrb[17].mxu0 }
 0x1d1   :  { %v3415_v61 = vadd.f32 %v1849_v54, %v3316_v50  ;;  %v1811_v50 = vadd.f32 %v3343_v25, %v3334_v19 }
 0x1d2   :  { %v1348_v1 = vmax.f32 %v1808_v60, 0.0  ;;  %v756_v15 = vpop.f32.mrb[44].mxu1 }
 0x1d3   :  { %v1853_v2 = vadd.f32 %v3343_v25, %v756_v15  ;;  %v1261_v3 = vpop.f32.mrb[18].mxu0  ;;  %v758_v5 = vpop.f32.mrb[45].mxu1 }
 0x1d4   :  { %1373 = vst [vmem:[%s3503_s3 + $0x40] sm:$0xff] %v1348_v1  ;;  %v1810_v38 = vadd.f32 %v1809_v48, %v1261_v3  ;;  %v1497_v9 = vpop.f32.mrb[19].mxu0 }
 0x1d5   :  { %v3424_v13 = vadd.f32 %v1853_v2, %v3318_v10  ;;  %v1813_v10 = vadd.f32 %v3343_v25, %v3336_v23 }
 0x1d6   :  { %v1349_v4 = vmax.f32 %v1810_v38, 0.0  ;;  %v761_v17 = vpop.f32.mrb[46].mxu1 }
 0x1d7   :  { %v1857_v14 = vadd.f32 %v3343_v25, %v761_v17  ;;  %v1266_v16 = vpop.f32.mrb[20].mxu0  ;;  %v763_v51 = vpop.f32.mrb[47].mxu1 }
 0x1d8   :  { %1374 = vst [vmem:[%s3503_s3 + $0x48] sm:$0xff] %v1349_v4  ;;  %v1812_v21 = vadd.f32 %v1811_v50, %v1266_v16  ;;  %v1500_v18 = vpop.f32.mrb[21].mxu0 }
 0x1d9   :  { %v3433_v42 = vadd.f32 %v1857_v14, %v3320_v55  ;;  %v1815_v55 = vadd.f32 %v3343_v25, %v3338_v24 }
 0x1da   :  { %v1350_v30 = vmax.f32 %v1812_v21, 0.0  ;;  %v766_v19 = vpop.f32.mrb[48].mxu1 }
 0x1db   :  { %v1861_v11 = vadd.f32 %v3343_v25, %v766_v19  ;;  %v1271_v26 = vpop.f32.mrb[22].mxu0  ;;  %v768_v27 = vpop.f32.mrb[49].mxu1 }
 0x1dc   :  { %1375 = vst [vmem:[%s3503_s3 + $0x50] sm:$0xff] %v1350_v30  ;;  %v1814_v28 = vadd.f32 %v1813_v10, %v1271_v26  ;;  %v1503_v22 = vpop.f32.mrb[23].mxu0 }
 0x1dd   :  { %v3442_v43 = vadd.f32 %v1861_v11, %v3322_v58 }
 0x1de   :  { %v1351_v33 = vmax.f32 %v1814_v28, 0.0  ;;  %v1091_v23 = vpop.f32.mrb[50].mxu1 }
 0x1df   :  { %v1819_v8 = vadd.f32 %v3347_v32, %v1091_v23  ;;  %v1276_v34 = vpop.f32.mrb[24].mxu0  ;;  %v1093_v45 = vpop.f32.mrb[51].mxu1 }
 0x1e0   :  { %1376 = vst [vmem:[%s3503_s3 + $0x58] sm:$0xff] %v1351_v33  ;;  %v1816_v35 = vadd.f32 %v1815_v55, %v1276_v34  ;;  %v1506_v53 = vpop.f32.mrb[25].mxu0 }
 0x1e2   :  { %v1352_v57 = vmax.f32 %v1816_v35, 0.0  ;;  %v1096_v29 = vpop.f32.mrb[52].mxu1 }
 0x1e3   :  { %v1823_v58 = vadd.f32 %v3355_v41, %v1096_v29  ;;  %v1281_v0 = vpop.f32.mrb[50].mxu0  ;;  %v1098_v12 = vpop.f32.mrb[53].mxu1 }
 0x1e4   :  { %1377 = vst [vmem:[%s3503_s3 + $0x60] sm:$0xff] %v1352_v57  ;;  %v1820_v24 = vadd.f32 %v1819_v8, %v1281_v0  ;;  %v1509_v25 = vpop.f32.mrb[51].mxu0 }
 0x1e6   :  { %v1353_v32 = vmax.f32 %v1820_v24, 0.0  ;;  %v1101_v39 = vpop.f32.mrb[54].mxu1 }
 0x1e7   :  { %v1827_v36 = vadd.f32 %v3363_v59, %v1101_v39  ;;  %v1286_v44 = vpop.f32.mrb[52].mxu0  ;;  %v1103_v63 = vpop.f32.mrb[55].mxu1 }
 0x1e8   :  { %1378 = vst [vmem:[%s3503_s3 + $0x68] sm:$0xff] %v1353_v32  ;;  %v1824_v47 = vadd.f32 %v1823_v58, %v1286_v44  ;;  %v1512_v41 = vpop.f32.mrb[53].mxu0 }
 0x1ea   :  { %v1354_v46 = vmax.f32 %v1824_v47, 0.0  ;;  %v1106_v52 = vpop.f32.mrb[56].mxu1 }
 0x1eb   :  { %v1831_v40 = vadd.f32 %v3371_v7, %v1106_v52  ;;  %v1291_v54 = vpop.f32.mrb[54].mxu0  ;;  %v1108_v56 = vpop.f32.mrb[57].mxu1 }
 0x1ec   :  { %1379 = vst [vmem:[%s3503_s3 + $0x70] sm:$0xff] %v1354_v46  ;;  %v1828_v6 = vadd.f32 %v1827_v36, %v1291_v54  ;;  %v1515_v59 = vpop.f32.mrb[55].mxu0 }
 0x1ee   :  { %v1355_v60 = vmax.f32 %v1828_v6, 0.0  ;;  %v1111_v20 = vpop.f32.mrb[58].mxu1 }
 0x1ef   :  { %v1835_v48 = vadd.f32 %v3379_v62, %v1111_v20  ;;  %v1296_v1 = vpop.f32.mrb[56].mxu0  ;;  %v1113_v15 = vpop.f32.mrb[59].mxu1 }
 0x1f0   :  { %1380 = vst [vmem:[%s3503_s3 + $0x78] sm:$0xff] %v1355_v60  ;;  %v1832_v2 = vadd.f32 %v1831_v40, %v1296_v1  ;;  %v1518_v7 = vpop.f32.mrb[57].mxu0 }
 0x1f2   :  { %v1356_v3 = vmax.f32 %v1832_v2, 0.0  ;;  %v1116_v5 = vpop.f32.mrb[60].mxu1 }
 0x1f3   :  { %v1839_v38 = vadd.f32 %v3388_v31, %v1116_v5  ;;  %v1301_v9 = vpop.f32.mrb[58].mxu0  ;;  %v1118_v50 = vpop.f32.mrb[61].mxu1 }
 0x1f4   :  { %1381 = vst [vmem:[%s3503_s3 + $0x80] sm:$0xff] %v1356_v3  ;;  %v1836_v4 = vadd.f32 %v1835_v48, %v1301_v9  ;;  %v1521_v62 = vpop.f32.mrb[59].mxu0 }
 0x1f6   :  { %v1357_v17 = vmax.f32 %v1836_v4, 0.0  ;;  %v1121_v14 = vpop.f32.mrb[62].mxu1 }
 0x1f7   :  { %v1843_v16 = vadd.f32 %v3397_v37, %v1121_v14  ;;  %v1306_v51 = vpop.f32.mrb[60].mxu0  ;;  %v1123_v21 = vpop.f32.mrb[63].mxu1 }
 0x1f8   :  { %1382 = vst [vmem:[%s3503_s3 + $0x88] sm:$0xff] %v1357_v17  ;;  %v1840_v18 = vadd.f32 %v1839_v38, %v1306_v51  ;;  %v1524_v31 = vpop.f32.mrb[61].mxu0 }
 0x1fa   :  { %v1358_v10 = vmax.f32 %v1840_v18, 0.0  ;;  %v1126_v30 = vpop.f32.mrb[64].mxu1 }
 0x1fb   :  { %v1847_v19 = vadd.f32 %v3406_v49, %v1126_v30  ;;  %v1311_v11 = vpop.f32.mrb[62].mxu0  ;;  %v1128_v26 = vpop.f32.mrb[65].mxu1 }
 0x1fc   :  { %1383 = vst [vmem:[%s3503_s3 + $0x90] sm:$0xff] %v1358_v10  ;;  %v1844_v27 = vadd.f32 %v1843_v16, %v1311_v11  ;;  %v1527_v37 = vpop.f32.mrb[63].mxu0 }
 0x1fe   :  { %v1359_v28 = vmax.f32 %v1844_v27, 0.0  ;;  %v1131_v22 = vpop.f32.mrb[66].mxu1 }
 0x1ff   :  { %v1851_v55 = vadd.f32 %v3415_v61, %v1131_v22  ;;  %v1316_v33 = vpop.f32.mrb[64].mxu0  ;;  %v1133_v23 = vpop.f32.mrb[67].mxu1 }
 0x200   :  { %1384 = vst [vmem:[%s3503_s3 + $0x98] sm:$0xff] %v1359_v28  ;;  %v1848_v8 = vadd.f32 %v1847_v19, %v1316_v33  ;;  %v1530_v49 = vpop.f32.mrb[65].mxu0 }
 0x202   :  { %v1360_v34 = vmax.f32 %v1848_v8, 0.0  ;;  %v1136_v45 = vpop.f32.mrb[68].mxu1 }
 0x203   :  { %v1855_v35 = vadd.f32 %v3424_v13, %v1136_v45  ;;  %v1321_v53 = vpop.f32.mrb[66].mxu0  ;;  %v1138_v57 = vpop.f32.mrb[69].mxu1 }
 0x204   :  { %1385 = vst [vmem:[%s3503_s3 + $0xa0] sm:$0xff] %v1360_v34  ;;  %v1852_v29 = vadd.f32 %v1851_v55, %v1321_v53  ;;  %v1533_v61 = vpop.f32.mrb[67].mxu0 }
 0x206   :  { %v1361_v58 = vmax.f32 %v1852_v29, 0.0  ;;  %v1141_v0 = vpop.f32.mrb[70].mxu1 }
 0x207   :  { %v1859_v12 = vadd.f32 %v3433_v42, %v1141_v0  ;;  %v1326_v24 = vpop.f32.mrb[68].mxu0  ;;  %v1143_v25 = vpop.f32.mrb[71].mxu1 }
 0x208   :  { %1386 = vst [vmem:[%s3503_s3 + $0xa8] sm:$0xff] %v1361_v58  ;;  %v1856_v32 = vadd.f32 %v1855_v35, %v1326_v24  ;;  %v1536_v13 = vpop.f32.mrb[69].mxu0 }
 0x20a   :  { %v1362_v39 = vmax.f32 %v1856_v32, 0.0  ;;  %v1146_v36 = vpop.f32.mrb[72].mxu1 }
 0x20b   :  { %v1863_v44 = vadd.f32 %v3442_v43, %v1146_v36  ;;  %v1331_v63 = vpop.f32.mrb[70].mxu0  ;;  %v1148_v47 = vpop.f32.mrb[73].mxu1 }
 0x20c   :  { %1387 = vst [vmem:[%s3503_s3 + $0xb0] sm:$0xff] %v1362_v39  ;;  %v1860_v41 = vadd.f32 %v1859_v12, %v1331_v63  ;;  %v1539_v42 = vpop.f32.mrb[71].mxu0 }
 0x20e   :  { %v1363_v46 = vmax.f32 %v1860_v41, 0.0 }
 0x20f   :  { %v1336_v52 = vpop.f32.mrb[72].mxu0 }
 0x210   :  { %1388 = vst [vmem:[%s3503_s3 + $0xb8] sm:$0xff] %v1363_v46  ;;  %v1864_v40 = vadd.f32 %v1863_v44, %v1336_v52  ;;  %v1542_v54 = vpop.f32.mrb[73].mxu0 }
 0x212   :  { %v1364_v56 = vmax.f32 %v1864_v40, 0.0 }
 0x214   :  { %1389 = vst [vmem:[%s3503_s3 + $0xc0] sm:$0xf] %v1364_v56 }

// kernel: mnist_cbm_forward.5
= control target key start
LH: loop header
LB: loop body
LE: loop exit
PB: predicated region body
PF: predicated region fallthrough
CT: control target
= control target key end

     0   :  { %11 = vsyncpa [#allocation3], 0  ;;  %s7510_s0 = inlined_call_operand.vmem [shape: f32[4,6272], index: 0, kind: input, shape index: {}]   ;;  %s7511_s1 = inlined_call_operand.vmem [shape: f32[6272,10], index: 1, kind: input, shape index: {}]   ;;  %s7512_s2 = inlined_call_operand.vmem [shape: f32[1,10], index: 2, kind: input, shape index: {}]   ;;  %s7513_s3 = inlined_call_operand.vmem [shape: f32[100,19], index: 3, kind: input, shape index: {}]   ;;  %s7514_s4 = inlined_call_operand.hbm [shape: f32[2,19], index: 4, kind: output, shape index: {0}]   ;;  %s7515_s5 = inlined_call_operand.hbm [shape: f32[2,20], index: 5, kind: output, shape index: {1}]  }
   0x1   :  { %v62_v0 = vld [vmem:[%s7511_s1 + $0x80] sm:$0xff]  ;;  %v63_v1 = vld [vmem:[%s7511_s1 + $0x88] sm:$0xff]  ;;  %v64_v11 = vld [vmem:[%s7511_s1 + $0x90] sm:$0xff] }
   0x2   :  { %v46_v2 = vld [vmem:[%s7511_s1] sm:$0xff]  ;;  %v3899_v3 = vpack.c.bf16 %v63_v1, %v62_v0  ;;  %v47_v4 = vld [vmem:[%s7511_s1 + $0x8] sm:$0xff]  ;;  %v65_v13 = vld [vmem:[%s7511_s1 + $0x98] sm:$0xff] }
   0x3   :  { %v94_v5 = vld [vmem:[%s7511_s1 + $0x180] sm:$0xff]  ;;  %v95_v6 = vld [vmem:[%s7511_s1 + $0x188] sm:$0xff]  ;;  %v3901_v7 = vpack.c.bf16 %v47_v4, %v46_v2  ;;  %v48_v14 = vld [vmem:[%s7511_s1 + $0x10] sm:$0xff]  ;;  %v3903_v16 = vpack.c.bf16 %v65_v13, %v64_v11 }
   0x4   :  { %v3931_v8 = vpack.c.bf16 %v95_v6, %v94_v5  ;;  %v78_v9 = vld [vmem:[%s7511_s1 + $0x100] sm:$0xff]  ;;  %v79_v10 = vld [vmem:[%s7511_s1 + $0x108] sm:$0xff]  ;;  %3900 = vmatprep.subr.bf16.mxu0 %v3899_v3  ;;  %v49_v15 = vld [vmem:[%s7511_s1 + $0x18] sm:$0xff] }
   0x5   :  { %v3933_v12 = vpack.c.bf16 %v79_v10, %v78_v9  ;;  %3902 = vmatpush3.bf16.msra.mxu0 %v3901_v7  ;;  %v3905_v17 = vpack.c.bf16 %v49_v15, %v48_v14  ;;  %v96_v18 = vld [vmem:[%s7511_s1 + $0x190] sm:$0xff]  ;;  %v97_v19 = vld [vmem:[%s7511_s1 + $0x198] sm:$0xff]  ;;  %v66_v23 = vld [vmem:[%s7511_s1 + $0xa0] sm:$0xff] }
   0x6   :  { %3932 = vmatprep.subr.bf16.mxu1 %v3931_v8  ;;  %v80_v20 = vld [vmem:[%s7511_s1 + $0x110] sm:$0xff]  ;;  %v3935_v21 = vpack.c.bf16 %v97_v19, %v96_v18  ;;  %v81_v22 = vld [vmem:[%s7511_s1 + $0x118] sm:$0xff]  ;;  %v67_v24 = vld [vmem:[%s7511_s1 + $0xa8] sm:$0xff]  ;;  %3904 = vmatprep.subr.bf16.mxu0 %v3903_v16 }
   0x7   :  { %3934 = vmatpush3.bf16.msra.mxu1 %v3933_v12  ;;  %v3937_v25 = vpack.c.bf16 %v81_v22, %v80_v20  ;;  %v3907_v26 = vpack.c.bf16 %v67_v24, %v66_v23  ;;  %v50_v27 = vld [vmem:[%s7511_s1 + $0x20] sm:$0xff]  ;;  %v51_v28 = vld [vmem:[%s7511_s1 + $0x28] sm:$0xff]  ;;  %v68_v35 = vld [vmem:[%s7511_s1 + $0xb0] sm:$0xff] }
   0x8   :  { %v98_v29 = vld [vmem:[%s7511_s1 + $0x1a0] sm:$0xff]  ;;  %3936 = vmatprep.subr.bf16.mxu1 %v3935_v21  ;;  %v99_v30 = vld [vmem:[%s7511_s1 + $0x1a8] sm:$0xff]  ;;  %v3909_v33 = vpack.c.bf16 %v51_v28, %v50_v27  ;;  %v69_v36 = vld [vmem:[%s7511_s1 + $0xb8] sm:$0xff] }
   0x9   :  { %v82_v31 = vld [vmem:[%s7511_s1 + $0x120] sm:$0xff]  ;;  %v83_v32 = vld [vmem:[%s7511_s1 + $0x128] sm:$0xff]  ;;  %3906 = vmatpush3.bf16.msra.mxu0 %v3905_v17  ;;  %v3939_v34 = vpack.c.bf16 %v99_v30, %v98_v29  ;;  %v52_v37 = vld [vmem:[%s7511_s1 + $0x30] sm:$0xff]  ;;  %v3911_v39 = vpack.c.bf16 %v69_v36, %v68_v35 }
   0xa   :  { %3908 = vmatprep.subr.bf16.mxu0 %v3907_v26  ;;  %v3941_v38 = vpack.c.bf16 %v83_v32, %v82_v31  ;;  %v53_v40 = vld [vmem:[%s7511_s1 + $0x38] sm:$0xff]  ;;  %v100_v41 = vld [vmem:[%s7511_s1 + $0x1b0] sm:$0xff]  ;;  %v70_v46 = vld [vmem:[%s7511_s1 + $0xc0] sm:$0xff] }
   0xb   :  { %3938 = vmatpush3.bf16.msra.mxu1 %v3937_v25  ;;  %v101_v42 = vld [vmem:[%s7511_s1 + $0x1b8] sm:$0xff]  ;;  %v84_v44 = vld [vmem:[%s7511_s1 + $0x130] sm:$0xff]  ;;  %v71_v47 = vld [vmem:[%s7511_s1 + $0xc8] sm:$0xff]  ;;  %v3913_v48 = vpack.c.bf16 %v53_v40, %v52_v37 }
   0xc   :  { %3940 = vmatprep.subr.bf16.mxu1 %v3939_v34  ;;  %v3943_v43 = vpack.c.bf16 %v101_v42, %v100_v41  ;;  %v85_v45 = vld [vmem:[%s7511_s1 + $0x138] sm:$0xff]  ;;  %v102_v49 = vld [vmem:[%s7511_s1 + $0x1c0] sm:$0xff]  ;;  %v103_v50 = vld [vmem:[%s7511_s1 + $0x1c8] sm:$0xff]  ;;  %v3915_v52 = vpack.c.bf16 %v71_v47, %v70_v46 }
   0xd   :  { %3910 = vmatpush3.bf16.msra.mxu0 %v3909_v33  ;;  %v3945_v51 = vpack.c.bf16 %v85_v45, %v84_v44  ;;  %v54_v53 = vld [vmem:[%s7511_s1 + $0x40] sm:$0xff]  ;;  %v55_v54 = vld [vmem:[%s7511_s1 + $0x48] sm:$0xff]  ;;  %v3947_v56 = vpack.c.bf16 %v103_v50, %v102_v49  ;;  %v72_v58 = vld [vmem:[%s7511_s1 + $0xd0] sm:$0xff] }
   0xe   :  { %3912 = vmatprep.subr.bf16.mxu0 %v3911_v39  ;;  %v86_v55 = vld [vmem:[%s7511_s1 + $0x140] sm:$0xff]  ;;  %v87_v57 = vld [vmem:[%s7511_s1 + $0x148] sm:$0xff]  ;;  %v73_v59 = vld [vmem:[%s7511_s1 + $0xd8] sm:$0xff]  ;;  %v3917_v62 = vpack.c.bf16 %v55_v54, %v54_v53 }
   0xf   :  { %3942 = vmatpush3.bf16.msra.mxu1 %v3941_v38  ;;  %v104_v60 = vld [vmem:[%s7511_s1 + $0x1d0] sm:$0xff]  ;;  %v105_v61 = vld [vmem:[%s7511_s1 + $0x1d8] sm:$0xff]  ;;  %v3949_v63 = vpack.c.bf16 %v87_v57, %v86_v55  ;;  %v3919_v0 = vpack.c.bf16 %v73_v59, %v72_v58  ;;  %v74_v6 = vld [vmem:[%s7511_s1 + $0xe0] sm:$0xff] }
  0x10   :  { %3944 = vmatprep.subr.bf16.mxu1 %v3943_v43  ;;  %v56_v1 = vld [vmem:[%s7511_s1 + $0x50] sm:$0xff]  ;;  %v57_v2 = vld [vmem:[%s7511_s1 + $0x58] sm:$0xff]  ;;  %v3951_v4 = vpack.c.bf16 %v105_v61, %v104_v60  ;;  %v75_v7 = vld [vmem:[%s7511_s1 + $0xe8] sm:$0xff] }
  0x11   :  { %3914 = vmatpush3.bf16.msra.mxu0 %v3913_v48  ;;  %v88_v3 = vld [vmem:[%s7511_s1 + $0x150] sm:$0xff]  ;;  %v89_v5 = vld [vmem:[%s7511_s1 + $0x158] sm:$0xff]  ;;  %v106_v8 = vld [vmem:[%s7511_s1 + $0x1e0] sm:$0xff]  ;;  %v3921_v10 = vpack.c.bf16 %v57_v2, %v56_v1  ;;  %v3923_v14 = vpack.c.bf16 %v75_v7, %v74_v6 }
  0x12   :  { %3916 = vmatprep.subr.bf16.mxu0 %v3915_v52  ;;  %v107_v9 = vld [vmem:[%s7511_s1 + $0x1e8] sm:$0xff]  ;;  %v58_v11 = vld [vmem:[%s7511_s1 + $0x60] sm:$0xff]  ;;  %v3953_v13 = vpack.c.bf16 %v89_v5, %v88_v3  ;;  %v76_v20 = vld [vmem:[%s7511_s1 + $0xf0] sm:$0xff] }
  0x13   :  { %3946 = vmatpush3.bf16.msra.mxu1 %v3945_v51  ;;  %v5011_v12 = vld [vmem:[%s7510_s0] sm:$0xff]  ;;  %v59_v15 = vld [vmem:[%s7511_s1 + $0x68] sm:$0xff]  ;;  %v3955_v19 = vpack.c.bf16 %v107_v9, %v106_v8  ;;  %v77_v21 = vld [vmem:[%s7511_s1 + $0xf8] sm:$0xff] }
  0x14   :  { %3948 = vmatprep.subr.bf16.mxu1 %v3947_v56  ;;  %v90_v16 = vld [vmem:[%s7511_s1 + $0x160] sm:$0xff]  ;;  %v91_v17 = vld [vmem:[%s7511_s1 + $0x168] sm:$0xff]  ;;  %v861_v18 = vcombine.high %v5011_v12, %v5011_v12  ;;  %v108_v23 = vld [vmem:[%s7511_s1 + $0x1f0] sm:$0xff]  ;;  %v3925_v26 = vpack.c.bf16 %v59_v15, %v58_v11  ;;  %v3927_v28 = vpack.c.bf16 %v77_v21, %v76_v20 }
  0x15   :  { %3918 = vmatpush3.bf16.msra.mxu0 %v3917_v62  ;;  %v22_v22 = vld [vmem:[%s7510_s0 + $0x8] sm:$0xff]  ;;  %v109_v24 = vld [vmem:[%s7511_s1 + $0x1f8] sm:$0xff]  ;;  %v3957_v27 = vpack.c.bf16 %v91_v17, %v90_v16  ;;  %v60_v29 = vld [vmem:[%s7511_s1 + $0x70] sm:$0xff] }
  0x16   :  { %3920 = vmatprep.subr.bf16.mxu0 %v3919_v0  ;;  %973 = vmatprep.mubr.f32.mxu0 %v861_v18  ;;  %v862_v25 = vcombine.high %v22_v22, %v22_v22  ;;  %v61_v30 = vld [vmem:[%s7511_s1 + $0x78] sm:$0xff]  ;;  %v92_v31 = vld [vmem:[%s7511_s1 + $0x170] sm:$0xff]  ;;  %v3959_v32 = vpack.c.bf16 %v109_v24, %v108_v23  ;;  %v126_v34 = vld [vmem:[%s7511_s1 + $0x280] sm:$0xff] }
  0x17   :  { %3950 = vmatpush3.bf16.msra.mxu1 %v3949_v63  ;;  %v93_v33 = vld [vmem:[%s7511_s1 + $0x178] sm:$0xff]  ;;  %v127_v35 = vld [vmem:[%s7511_s1 + $0x288] sm:$0xff]  ;;  %v158_v36 = vld [vmem:[%s7511_s1 + $0x380] sm:$0xff]  ;;  %v3929_v38 = vpack.c.bf16 %v61_v30, %v60_v29 }
  0x18   :  { %3952 = vmatprep.subr.bf16.mxu1 %v3951_v4  ;;  %1043 = vmatprep.mubr.f32.mxu1 %v862_v25  ;;  %v159_v37 = vld [vmem:[%s7511_s1 + $0x388] sm:$0xff]  ;;  %v3961_v39 = vpack.c.bf16 %v93_v33, %v92_v31  ;;  %v3963_v40 = vpack.c.bf16 %v127_v35, %v126_v34  ;;  %v110_v41 = vld [vmem:[%s7511_s1 + $0x200] sm:$0xff]  ;;  %v128_v46 = vld [vmem:[%s7511_s1 + $0x290] sm:$0xff] }
  0x19   :  { %3922 = vmatpush3.bf16.msra.mxu0 %v3921_v10  ;;  %v111_v42 = vld [vmem:[%s7511_s1 + $0x208] sm:$0xff]  ;;  %v142_v43 = vld [vmem:[%s7511_s1 + $0x300] sm:$0xff]  ;;  %v3995_v44 = vpack.c.bf16 %v159_v37, %v158_v36  ;;  %v129_v47 = vld [vmem:[%s7511_s1 + $0x298] sm:$0xff] }
  0x1a   :  { %3924 = vmatprep.subr.bf16.mxu0 %v3923_v14  ;;  %v143_v45 = vld [vmem:[%s7511_s1 + $0x308] sm:$0xff]  ;;  %v160_v48 = vld [vmem:[%s7511_s1 + $0x390] sm:$0xff]  ;;  %v161_v49 = vld [vmem:[%s7511_s1 + $0x398] sm:$0xff]  ;;  %v3965_v50 = vpack.c.bf16 %v111_v42, %v110_v41  ;;  %v3967_v52 = vpack.c.bf16 %v129_v47, %v128_v46 }
  0x1b   :  { %3954 = vmatpush3.bf16.msra.mxu1 %v3953_v13  ;;  %v3997_v51 = vpack.c.bf16 %v143_v45, %v142_v43  ;;  %v112_v53 = vld [vmem:[%s7511_s1 + $0x210] sm:$0xff]  ;;  %v113_v54 = vld [vmem:[%s7511_s1 + $0x218] sm:$0xff]  ;;  %v3999_v56 = vpack.c.bf16 %v161_v49, %v160_v48  ;;  %v130_v58 = vld [vmem:[%s7511_s1 + $0x2a0] sm:$0xff] }
  0x1c   :  { %3956 = vmatprep.subr.bf16.mxu1 %v3955_v19  ;;  %v144_v55 = vld [vmem:[%s7511_s1 + $0x310] sm:$0xff]  ;;  %v145_v57 = vld [vmem:[%s7511_s1 + $0x318] sm:$0xff]  ;;  %v131_v59 = vld [vmem:[%s7511_s1 + $0x2a8] sm:$0xff]  ;;  %v3969_v62 = vpack.c.bf16 %v113_v54, %v112_v53 }
  0x1d   :  { %3926 = vmatpush3.bf16.msra.mxu0 %v3925_v26  ;;  %v162_v60 = vld [vmem:[%s7511_s1 + $0x3a0] sm:$0xff]  ;;  %v163_v61 = vld [vmem:[%s7511_s1 + $0x3a8] sm:$0xff]  ;;  %v4001_v63 = vpack.c.bf16 %v145_v57, %v144_v55  ;;  %v3971_v0 = vpack.c.bf16 %v131_v59, %v130_v58  ;;  %v132_v6 = vld [vmem:[%s7511_s1 + $0x2b0] sm:$0xff] }
  0x1e   :  { %3928 = vmatprep.subr.bf16.mxu0 %v3927_v28  ;;  %v114_v1 = vld [vmem:[%s7511_s1 + $0x220] sm:$0xff]  ;;  %v115_v2 = vld [vmem:[%s7511_s1 + $0x228] sm:$0xff]  ;;  %v4003_v4 = vpack.c.bf16 %v163_v61, %v162_v60  ;;  %v133_v7 = vld [vmem:[%s7511_s1 + $0x2b8] sm:$0xff] }
  0x1f   :  { %3958 = vmatpush3.bf16.msra.mxu1 %v3957_v27  ;;  %v146_v3 = vld [vmem:[%s7511_s1 + $0x320] sm:$0xff]  ;;  %v147_v5 = vld [vmem:[%s7511_s1 + $0x328] sm:$0xff]  ;;  %v164_v8 = vld [vmem:[%s7511_s1 + $0x3b0] sm:$0xff]  ;;  %v3973_v10 = vpack.c.bf16 %v115_v2, %v114_v1  ;;  %v3975_v13 = vpack.c.bf16 %v133_v7, %v132_v6 }
  0x20   :  { %3960 = vmatprep.subr.bf16.mxu1 %v3959_v32  ;;  %v165_v9 = vld [vmem:[%s7511_s1 + $0x3b8] sm:$0xff]  ;;  %v116_v11 = vld [vmem:[%s7511_s1 + $0x230] sm:$0xff]  ;;  %v134_v18 = vld [vmem:[%s7511_s1 + $0x2c0] sm:$0xff] }
  0x21   :  { %3930 = vmatpush3.bf16.msra.mxu0 %v3929_v38  ;;  %v117_v14 = vld [vmem:[%s7511_s1 + $0x238] sm:$0xff]  ;;  %v148_v15 = vld [vmem:[%s7511_s1 + $0x330] sm:$0xff]  ;;  %v4007_v17 = vpack.c.bf16 %v165_v9, %v164_v8  ;;  %v135_v19 = vld [vmem:[%s7511_s1 + $0x2c8] sm:$0xff] }
  0x22   :  { %3964 = vmatprep.subr.bf16.mxu0 %v3963_v40  ;;  %v149_v16 = vld [vmem:[%s7511_s1 + $0x338] sm:$0xff]  ;;  %v5157_v20 = vld [vmem:[%s7510_s0 + $0x10] sm:$0xff]  ;;  %v166_v21 = vld [vmem:[%s7511_s1 + $0x3c0] sm:$0xff]  ;;  %v3977_v24 = vpack.c.bf16 %v117_v14, %v116_v11  ;;  %v3979_v27 = vpack.c.bf16 %v135_v19, %v134_v18 }
  0x23   :  { %3962 = vmatpush3.bf16.msra.mxu1 %v3961_v39  ;;  %v863_v23 = vcombine.high %v5157_v20, %v5157_v20  ;;  %v5170_v25 = vld [vmem:[%s7510_s0 + $0x18] sm:$0xff]  ;;  %v4009_v26 = vpack.c.bf16 %v149_v16, %v148_v15  ;;  %v118_v28 = vld [vmem:[%s7511_s1 + $0x240] sm:$0xff]  ;;  %v119_v29 = vld [vmem:[%s7511_s1 + $0x248] sm:$0xff] }
  0x24   :  { %3996 = vmatprep.subr.bf16.mxu1 %v3995_v44  ;;  %974 = vmatmul.mubr.f32.vlgmr.msra.gmra.mrb[0].mxu0 %v5011_v12  ;;  %v4005_v12 = vpack.c.bf16 %v147_v5, %v146_v3  ;;  %v150_v30 = vld [vmem:[%s7511_s1 + $0x340] sm:$0xff]  ;;  %v864_v31 = vcombine.high %v5170_v25, %v5170_v25  ;;  %v151_v33 = vld [vmem:[%s7511_s1 + $0x348] sm:$0xff]  ;;  %v136_v34 = vld [vmem:[%s7511_s1 + $0x2d0] sm:$0xff]  ;;  %v3981_v38 = vpack.c.bf16 %v119_v29, %v118_v28 }
  0x25   :  { %3966 = vmatpush3.bf16.msra.mxu0 %v3965_v50  ;;  %v137_v35 = vld [vmem:[%s7511_s1 + $0x2d8] sm:$0xff]  ;;  %1113 = vmatprep.mubr.f32.mxu0 %v863_v23  ;;  %v168_v36 = vld [vmem:[%s7511_s1 + $0x3d0] sm:$0xff]  ;;  %v4013_v39 = vpack.c.bf16 %v151_v33, %v150_v30  ;;  %v138_v46 = vld [vmem:[%s7511_s1 + $0x2e0] sm:$0xff] }
  0x26   :  { %1044 = vmatmul.mubr.f32.vlgmr.msra.gmra.mrb[0].mxu1 %v22_v22  ;;  %3968 = vmatprep.subr.bf16.mxu0 %v3967_v52  ;;  %v167_v22 = vld [vmem:[%s7511_s1 + $0x3c8] sm:$0xff]  ;;  %v169_v37 = vld [vmem:[%s7511_s1 + $0x3d8] sm:$0xff]  ;;  %v3983_v40 = vpack.c.bf16 %v137_v35, %v136_v34  ;;  %v120_v41 = vld [vmem:[%s7511_s1 + $0x250] sm:$0xff] }
  0x27   :  { %3998 = vmatpush3.bf16.msra.mxu1 %v3997_v51  ;;  %v4011_v32 = vpack.c.bf16 %v167_v22, %v166_v21  ;;  %1183 = vmatprep.mubr.f32.mxu1 %v864_v31  ;;  %v121_v42 = vld [vmem:[%s7511_s1 + $0x258] sm:$0xff]  ;;  %v152_v43 = vld [vmem:[%s7511_s1 + $0x350] sm:$0xff]  ;;  %v4015_v44 = vpack.c.bf16 %v169_v37, %v168_v36  ;;  %v139_v47 = vld [vmem:[%s7511_s1 + $0x2e8] sm:$0xff] }
  0x28   :  { %4000 = vmatprep.subr.bf16.mxu1 %v3999_v56  ;;  %v153_v45 = vld [vmem:[%s7511_s1 + $0x358] sm:$0xff]  ;;  %v170_v48 = vld [vmem:[%s7511_s1 + $0x3e0] sm:$0xff]  ;;  %v171_v49 = vld [vmem:[%s7511_s1 + $0x3e8] sm:$0xff]  ;;  %v3985_v50 = vpack.c.bf16 %v121_v42, %v120_v41  ;;  %v3987_v52 = vpack.c.bf16 %v139_v47, %v138_v46 }
  0x29   :  { %3970 = vmatpush3.bf16.msra.mxu0 %v3969_v62  ;;  %v4017_v51 = vpack.c.bf16 %v153_v45, %v152_v43  ;;  %v122_v53 = vld [vmem:[%s7511_s1 + $0x260] sm:$0xff]  ;;  %v123_v54 = vld [vmem:[%s7511_s1 + $0x268] sm:$0xff]  ;;  %v4019_v56 = vpack.c.bf16 %v171_v49, %v170_v48  ;;  %v140_v58 = vld [vmem:[%s7511_s1 + $0x2f0] sm:$0xff] }
  0x2a   :  { %3972 = vmatprep.subr.bf16.mxu0 %v3971_v0  ;;  %v154_v55 = vld [vmem:[%s7511_s1 + $0x360] sm:$0xff]  ;;  %v155_v57 = vld [vmem:[%s7511_s1 + $0x368] sm:$0xff]  ;;  %v141_v59 = vld [vmem:[%s7511_s1 + $0x2f8] sm:$0xff]  ;;  %v3989_v62 = vpack.c.bf16 %v123_v54, %v122_v53 }
  0x2b   :  { %4002 = vmatpush3.bf16.msra.mxu1 %v4001_v63  ;;  %v172_v60 = vld [vmem:[%s7511_s1 + $0x3f0] sm:$0xff]  ;;  %v173_v61 = vld [vmem:[%s7511_s1 + $0x3f8] sm:$0xff]  ;;  %v4021_v63 = vpack.c.bf16 %v155_v57, %v154_v55  ;;  %v3991_v0 = vpack.c.bf16 %v141_v59, %v140_v58  ;;  %v190_v6 = vld [vmem:[%s7511_s1 + $0x480] sm:$0xff] }
  0x2c   :  { %4004 = vmatprep.subr.bf16.mxu1 %v4003_v4  ;;  %v124_v1 = vld [vmem:[%s7511_s1 + $0x270] sm:$0xff]  ;;  %v125_v2 = vld [vmem:[%s7511_s1 + $0x278] sm:$0xff]  ;;  %v4023_v4 = vpack.c.bf16 %v173_v61, %v172_v60  ;;  %v191_v7 = vld [vmem:[%s7511_s1 + $0x488] sm:$0xff] }
  0x2d   :  { %3974 = vmatpush3.bf16.msra.mxu0 %v3973_v10  ;;  %v156_v3 = vld [vmem:[%s7511_s1 + $0x370] sm:$0xff]  ;;  %v157_v5 = vld [vmem:[%s7511_s1 + $0x378] sm:$0xff]  ;;  %v222_v8 = vld [vmem:[%s7511_s1 + $0x580] sm:$0xff]  ;;  %v3993_v10 = vpack.c.bf16 %v125_v2, %v124_v1 }
  0x2e   :  { %3976 = vmatprep.subr.bf16.mxu0 %v3975_v13  ;;  %v223_v9 = vld [vmem:[%s7511_s1 + $0x588] sm:$0xff]  ;;  %v4025_v11 = vpack.c.bf16 %v157_v5, %v156_v3  ;;  %v174_v13 = vld [vmem:[%s7511_s1 + $0x400] sm:$0xff]  ;;  %v192_v18 = vld [vmem:[%s7511_s1 + $0x490] sm:$0xff] }
  0x2f   :  { %4006 = vmatpush3.bf16.msra.mxu1 %v4005_v12  ;;  %v4027_v12 = vpack.c.bf16 %v191_v7, %v190_v6  ;;  %v175_v14 = vld [vmem:[%s7511_s1 + $0x408] sm:$0xff]  ;;  %v206_v15 = vld [vmem:[%s7511_s1 + $0x500] sm:$0xff]  ;;  %v4059_v16 = vpack.c.bf16 %v223_v9, %v222_v8  ;;  %v193_v19 = vld [vmem:[%s7511_s1 + $0x498] sm:$0xff] }
  0x30   :  { %4008 = vmatprep.subr.bf16.mxu1 %v4007_v17  ;;  %v207_v17 = vld [vmem:[%s7511_s1 + $0x508] sm:$0xff]  ;;  %v224_v21 = vld [vmem:[%s7511_s1 + $0x590] sm:$0xff]  ;;  %v225_v22 = vld [vmem:[%s7511_s1 + $0x598] sm:$0xff]  ;;  %v4029_v23 = vpack.c.bf16 %v175_v14, %v174_v13  ;;  %v4031_v28 = vpack.c.bf16 %v193_v19, %v192_v18 }
  0x31   :  { %3978 = vmatpush3.bf16.msra.mxu0 %v3977_v24  ;;  %v176_v24 = vld [vmem:[%s7511_s1 + $0x410] sm:$0xff]  ;;  %v177_v29 = vld [vmem:[%s7511_s1 + $0x418] sm:$0xff]  ;;  %v194_v33 = vld [vmem:[%s7511_s1 + $0x4a0] sm:$0xff] }
  0x32   :  { %3980 = vmatprep.subr.bf16.mxu0 %v3979_v27  ;;  %v4061_v27 = vpack.c.bf16 %v207_v17, %v206_v15  ;;  %v208_v30 = vld [vmem:[%s7511_s1 + $0x510] sm:$0xff]  ;;  %v209_v31 = vld [vmem:[%s7511_s1 + $0x518] sm:$0xff]  ;;  %v195_v34 = vld [vmem:[%s7511_s1 + $0x4a8] sm:$0xff] }
  0x33   :  { %4010 = vmatpush3.bf16.msra.mxu1 %v4009_v26  ;;  %v5300_v26 = vld [vmem:[%s7510_s0 + $0x20] sm:$0xff]  ;;  %v5322_v36 = vld [vmem:[%s7510_s0 + $0x28] sm:$0xff]  ;;  %v4065_v41 = vpack.c.bf16 %v209_v31, %v208_v30  ;;  %v4035_v42 = vpack.c.bf16 %v195_v34, %v194_v33  ;;  %v196_v46 = vld [vmem:[%s7511_s1 + $0x4b0] sm:$0xff] }
  0x34   :  { %4012 = vmatprep.subr.bf16.mxu1 %v4011_v32  ;;  %v4063_v32 = vpack.c.bf16 %v225_v22, %v224_v21  ;;  %v865_v35 = vcombine.high %v5300_v26, %v5300_v26  ;;  %v226_v37 = vld [vmem:[%s7511_s1 + $0x5a0] sm:$0xff]  ;;  %v179_v43 = vld [vmem:[%s7511_s1 + $0x428] sm:$0xff]  ;;  %v197_v47 = vld [vmem:[%s7511_s1 + $0x4b8] sm:$0xff] }
  0x35   :  { %3982 = vmatpush3.bf16.msra.mxu0 %v3981_v38  ;;  %v227_v38 = vld [vmem:[%s7511_s1 + $0x5a8] sm:$0xff]  ;;  %v228_v48 = vld [vmem:[%s7511_s1 + $0x5b0] sm:$0xff]  ;;  %v229_v49 = vld [vmem:[%s7511_s1 + $0x5b8] sm:$0xff] }
  0x36   :  { %3984 = vmatprep.subr.bf16.mxu0 %v3983_v40  ;;  %v4033_v40 = vpack.c.bf16 %v177_v29, %v176_v24  ;;  %v4067_v45 = vpack.c.bf16 %v227_v38, %v226_v37  ;;  %v180_v53 = vld [vmem:[%s7511_s1 + $0x430] sm:$0xff]  ;;  %v181_v54 = vld [vmem:[%s7511_s1 + $0x438] sm:$0xff]  ;;  %v198_v58 = vld [vmem:[%s7511_s1 + $0x4c0] sm:$0xff] }
  0x37   :  { %4014 = vmatpush3.bf16.msra.mxu1 %v4013_v39  ;;  %v866_v39 = vcombine.high %v5322_v36, %v5322_v36  ;;  %v212_v55 = vld [vmem:[%s7511_s1 + $0x530] sm:$0xff]  ;;  %v213_v57 = vld [vmem:[%s7511_s1 + $0x538] sm:$0xff]  ;;  %v199_v59 = vld [vmem:[%s7511_s1 + $0x4c8] sm:$0xff] }
  0x38   :  { %4016 = vmatprep.subr.bf16.mxu1 %v4015_v44  ;;  %v210_v44 = vld [vmem:[%s7511_s1 + $0x520] sm:$0xff]  ;;  %v231_v61 = vld [vmem:[%s7511_s1 + $0x5c8] sm:$0xff]  ;;  %v200_v6 = vld [vmem:[%s7511_s1 + $0x4d0] sm:$0xff] }
  0x39   :  { %3986 = vmatpush3.bf16.msra.mxu0 %v3985_v50  ;;  %v230_v60 = vld [vmem:[%s7511_s1 + $0x5c0] sm:$0xff]  ;;  %v183_v2 = vld [vmem:[%s7511_s1 + $0x448] sm:$0xff]  ;;  %v201_v7 = vld [vmem:[%s7511_s1 + $0x4d8] sm:$0xff] }
  0x3a   :  { %3988 = vmatprep.subr.bf16.mxu0 %v3987_v52  ;;  %v4039_v52 = vpack.c.bf16 %v197_v47, %v196_v46  ;;  %v182_v1 = vld [vmem:[%s7511_s1 + $0x440] sm:$0xff]  ;;  %v215_v5 = vld [vmem:[%s7511_s1 + $0x548] sm:$0xff]  ;;  %v232_v8 = vld [vmem:[%s7511_s1 + $0x5d0] sm:$0xff] }
  0x3b   :  { %4018 = vmatpush3.bf16.msra.mxu1 %v4017_v51  ;;  %v214_v3 = vld [vmem:[%s7511_s1 + $0x540] sm:$0xff]  ;;  %v233_v9 = vld [vmem:[%s7511_s1 + $0x5d8] sm:$0xff]  ;;  %v184_v13 = vld [vmem:[%s7511_s1 + $0x450] sm:$0xff] }
  0x3c   :  { %4020 = vmatprep.subr.bf16.mxu1 %v4019_v56  ;;  %v4071_v56 = vpack.c.bf16 %v229_v49, %v228_v48  ;;  %v185_v14 = vld [vmem:[%s7511_s1 + $0x458] sm:$0xff]  ;;  %v216_v15 = vld [vmem:[%s7511_s1 + $0x550] sm:$0xff]  ;;  %v202_v18 = vld [vmem:[%s7511_s1 + $0x4e0] sm:$0xff] }
  0x3d   :  { %3990 = vmatpush3.bf16.msra.mxu0 %v3989_v62  ;;  %v4041_v62 = vpack.c.bf16 %v181_v54, %v180_v53  ;;  %v217_v17 = vld [vmem:[%s7511_s1 + $0x558] sm:$0xff]  ;;  %v203_v19 = vld [vmem:[%s7511_s1 + $0x4e8] sm:$0xff]  ;;  %v234_v21 = vld [vmem:[%s7511_s1 + $0x5e0] sm:$0xff] }
  0x3e   :  { %3992 = vmatprep.subr.bf16.mxu0 %v3991_v0  ;;  %v4043_v0 = vpack.c.bf16 %v199_v59, %v198_v58  ;;  %v235_v22 = vld [vmem:[%s7511_s1 + $0x5e8] sm:$0xff]  ;;  %v4081_v24 = vpack.c.bf16 %v217_v17, %v216_v15  ;;  %v218_v30 = vld [vmem:[%s7511_s1 + $0x560] sm:$0xff]  ;;  %v204_v33 = vld [vmem:[%s7511_s1 + $0x4f0] sm:$0xff] }
  0x3f   :  { %4022 = vmatpush3.bf16.msra.mxu1 %v4021_v63  ;;  %v4073_v63 = vpack.c.bf16 %v213_v57, %v212_v55  ;;  %v187_v29 = vld [vmem:[%s7511_s1 + $0x468] sm:$0xff]  ;;  %v4083_v31 = vpack.c.bf16 %v235_v22, %v234_v21  ;;  %v205_v34 = vld [vmem:[%s7511_s1 + $0x4f8] sm:$0xff]  ;;  %v286_v46 = vld [vmem:[%s7511_s1 + $0x780] sm:$0xff] }
  0x40   :  { %4024 = vmatprep.subr.bf16.mxu1 %v4023_v4  ;;  %v4075_v4 = vpack.c.bf16 %v231_v61, %v230_v60  ;;  %v237_v37 = vld [vmem:[%s7511_s1 + $0x5f8] sm:$0xff]  ;;  %v287_v47 = vld [vmem:[%s7511_s1 + $0x788] sm:$0xff]  ;;  %v270_v53 = vld [vmem:[%s7511_s1 + $0x700] sm:$0xff] }
  0x41   :  { %3994 = vmatpush3.bf16.msra.mxu0 %v3993_v10  ;;  %v4045_v10 = vpack.c.bf16 %v183_v2, %v182_v1  ;;  %v4123_v54 = vpack.c.bf16 %v287_v47, %v286_v46  ;;  %v271_v55 = vld [vmem:[%s7511_s1 + $0x708] sm:$0xff]  ;;  %v257_v57 = vld [vmem:[%s7511_s1 + $0x698] sm:$0xff]  ;;  %v288_v58 = vld [vmem:[%s7511_s1 + $0x790] sm:$0xff] }
  0x42   :  { %4028 = vmatprep.subr.bf16.mxu0 %v4027_v12  ;;  %v4047_v12 = vpack.c.bf16 %v201_v7, %v200_v6  ;;  %v289_v59 = vld [vmem:[%s7511_s1 + $0x798] sm:$0xff]  ;;  %v5505_v60 = vld [vmem:[%s7510_s0 + $0x30] sm:$0xff]  ;;  %v258_v6 = vld [vmem:[%s7511_s1 + $0x6a0] sm:$0xff] }
  0x43   :  { %4026 = vmatpush3.bf16.msra.mxu1 %v4025_v11  ;;  %v4077_v11 = vpack.c.bf16 %v215_v5, %v214_v3  ;;  %v240_v1 = vld [vmem:[%s7511_s1 + $0x610] sm:$0xff]  ;;  %v241_v2 = vld [vmem:[%s7511_s1 + $0x618] sm:$0xff]  ;;  %v259_v7 = vld [vmem:[%s7511_s1 + $0x6a8] sm:$0xff] }
  0x44   :  { %4060 = vmatprep.subr.bf16.mxu1 %v4059_v16  ;;  %1114 = vmatmul.mubr.f32.vlgmr.msra.gmra.mrb[2].mxu0 %v5157_v20  ;;  %v178_v20 = vld [vmem:[%s7511_s1 + $0x420] sm:$0xff]  ;;  %v4079_v16 = vpack.c.bf16 %v233_v9, %v232_v8  ;;  %v272_v3 = vld [vmem:[%s7511_s1 + $0x710] sm:$0xff]  ;;  %v273_v5 = vld [vmem:[%s7511_s1 + $0x718] sm:$0xff]  ;;  %v867_v8 = vcombine.high %v5505_v60, %v5505_v60 }
  0x45   :  { %4030 = vmatpush3.bf16.msra.mxu0 %v4029_v23  ;;  %1253 = vmatprep.mubr.f32.mxu0 %v865_v35  ;;  %v4037_v50 = vpack.c.bf16 %v179_v43, %v178_v20  ;;  %v4049_v23 = vpack.c.bf16 %v185_v14, %v184_v13  ;;  %v236_v35 = vld [vmem:[%s7511_s1 + $0x5f0] sm:$0xff]  ;;  %v290_v9 = vld [vmem:[%s7511_s1 + $0x7a0] sm:$0xff]  ;;  %v4129_v13 = vpack.c.bf16 %v273_v5, %v272_v3  ;;  %v243_v15 = vld [vmem:[%s7511_s1 + $0x628] sm:$0xff] }
  0x46   :  { %1184 = vmatmul.mubr.f32.vlgmr.msra.gmra.mrb[2].mxu1 %v5170_v25  ;;  %4032 = vmatprep.subr.bf16.mxu0 %v4031_v28  ;;  %v211_v25 = vld [vmem:[%s7511_s1 + $0x528] sm:$0xff]  ;;  %v186_v28 = vld [vmem:[%s7511_s1 + $0x460] sm:$0xff]  ;;  %v220_v20 = vld [vmem:[%s7511_s1 + $0x570] sm:$0xff]  ;;  %v4087_v43 = vpack.c.bf16 %v237_v37, %v236_v35  ;;  %v4099_v14 = vpack.c.bf16 %v259_v7, %v258_v6 }
  0x47   :  { %4062 = vmatpush3.bf16.msra.mxu1 %v4061_v27  ;;  %1323 = vmatprep.mubr.f32.mxu1 %v866_v39  ;;  %v4069_v51 = vpack.c.bf16 %v211_v25, %v210_v44  ;;  %v4051_v27 = vpack.c.bf16 %v203_v19, %v202_v18  ;;  %v4053_v38 = vpack.c.bf16 %v187_v29, %v186_v28  ;;  %v221_v44 = vld [vmem:[%s7511_s1 + $0x578] sm:$0xff]  ;;  %v255_v25 = vld [vmem:[%s7511_s1 + $0x688] sm:$0xff]  ;;  %v260_v18 = vld [vmem:[%s7511_s1 + $0x6b0] sm:$0xff] }
  0x48   :  { %4064 = vmatprep.subr.bf16.mxu1 %v4063_v32  ;;  %v219_v32 = vld [vmem:[%s7511_s1 + $0x568] sm:$0xff]  ;;  %v4089_v49 = vpack.c.bf16 %v221_v44, %v220_v20  ;;  %v261_v19 = vld [vmem:[%s7511_s1 + $0x6b8] sm:$0xff]  ;;  %v292_v21 = vld [vmem:[%s7511_s1 + $0x7b0] sm:$0xff] }
  0x49   :  { %4034 = vmatpush3.bf16.msra.mxu0 %v4033_v40  ;;  %v4085_v39 = vpack.c.bf16 %v219_v32, %v218_v30  ;;  %v4055_v40 = vpack.c.bf16 %v205_v34, %v204_v33  ;;  %v293_v22 = vld [vmem:[%s7511_s1 + $0x7b8] sm:$0xff]  ;;  %v244_v28 = vld [vmem:[%s7511_s1 + $0x630] sm:$0xff]  ;;  %v262_v33 = vld [vmem:[%s7511_s1 + $0x6c0] sm:$0xff] }
  0x4a   :  { %4036 = vmatprep.subr.bf16.mxu0 %v4035_v42  ;;  %v189_v42 = vld [vmem:[%s7511_s1 + $0x478] sm:$0xff]  ;;  %v276_v30 = vld [vmem:[%s7511_s1 + $0x730] sm:$0xff]  ;;  %v263_v34 = vld [vmem:[%s7511_s1 + $0x6c8] sm:$0xff] }
  0x4b   :  { %4066 = vmatpush3.bf16.msra.mxu1 %v4065_v41  ;;  %v188_v41 = vld [vmem:[%s7511_s1 + $0x470] sm:$0xff]  ;;  %v245_v29 = vld [vmem:[%s7511_s1 + $0x638] sm:$0xff]  ;;  %v294_v35 = vld [vmem:[%s7511_s1 + $0x7c0] sm:$0xff] }
  0x4c   :  { %4068 = vmatprep.subr.bf16.mxu1 %v4067_v45  ;;  %v254_v45 = vld [vmem:[%s7511_s1 + $0x680] sm:$0xff]  ;;  %v4057_v48 = vpack.c.bf16 %v189_v42, %v188_v41  ;;  %v277_v32 = vld [vmem:[%s7511_s1 + $0x738] sm:$0xff]  ;;  %v295_v37 = vld [vmem:[%s7511_s1 + $0x7c8] sm:$0xff] }
  0x4d   :  { %4038 = vmatpush3.bf16.msra.mxu0 %v4037_v50  ;;  %v4091_v50 = vpack.c.bf16 %v255_v25, %v254_v45  ;;  %v246_v41 = vld [vmem:[%s7511_s1 + $0x640] sm:$0xff]  ;;  %v247_v42 = vld [vmem:[%s7511_s1 + $0x648] sm:$0xff]  ;;  %v264_v45 = vld [vmem:[%s7511_s1 + $0x6d0] sm:$0xff] }
  0x4e   :  { %4040 = vmatprep.subr.bf16.mxu0 %v4039_v52  ;;  %v239_v52 = vld [vmem:[%s7511_s1 + $0x608] sm:$0xff]  ;;  %v278_v20 = vld [vmem:[%s7511_s1 + $0x740] sm:$0xff]  ;;  %v265_v25 = vld [vmem:[%s7511_s1 + $0x6d8] sm:$0xff] }
  0x4f   :  { %4070 = vmatpush3.bf16.msra.mxu1 %v4069_v51  ;;  %v238_v51 = vld [vmem:[%s7511_s1 + $0x600] sm:$0xff]  ;;  %v279_v44 = vld [vmem:[%s7511_s1 + $0x748] sm:$0xff]  ;;  %v296_v46 = vld [vmem:[%s7511_s1 + $0x7d0] sm:$0xff] }
  0x50   :  { %4072 = vmatprep.subr.bf16.mxu1 %v4071_v56  ;;  %v256_v56 = vld [vmem:[%s7511_s1 + $0x690] sm:$0xff]  ;;  %v4093_v61 = vpack.c.bf16 %v239_v52, %v238_v51  ;;  %v297_v47 = vld [vmem:[%s7511_s1 + $0x7d8] sm:$0xff]  ;;  %v282_v3 = vld [vmem:[%s7511_s1 + $0x760] sm:$0xff] }
  0x51   :  { %4042 = vmatpush3.bf16.msra.mxu0 %v4041_v62  ;;  %v5510_v62 = vld [vmem:[%s7510_s0 + $0x38] sm:$0xff]  ;;  %v248_v51 = vld [vmem:[%s7511_s1 + $0x650] sm:$0xff]  ;;  %v283_v5 = vld [vmem:[%s7511_s1 + $0x768] sm:$0xff] }
  0x52   :  { %4044 = vmatprep.subr.bf16.mxu0 %v4043_v0  ;;  %v4095_v0 = vpack.c.bf16 %v257_v57, %v256_v56  ;;  %v249_v52 = vld [vmem:[%s7511_s1 + $0x658] sm:$0xff]  ;;  %v266_v56 = vld [vmem:[%s7511_s1 + $0x6e0] sm:$0xff]  ;;  %v267_v57 = vld [vmem:[%s7511_s1 + $0x6e8] sm:$0xff] }
  0x53   :  { %4074 = vmatpush3.bf16.msra.mxu1 %v4073_v63  ;;  %v4125_v63 = vpack.c.bf16 %v271_v55, %v270_v53  ;;  %v280_v53 = vld [vmem:[%s7511_s1 + $0x750] sm:$0xff]  ;;  %v281_v55 = vld [vmem:[%s7511_s1 + $0x758] sm:$0xff] }
  0x54   :  { %4076 = vmatprep.subr.bf16.mxu1 %v4075_v4  ;;  %v4127_v4 = vpack.c.bf16 %v289_v59, %v288_v58  ;;  %v298_v58 = vld [vmem:[%s7511_s1 + $0x7e0] sm:$0xff]  ;;  %v299_v59 = vld [vmem:[%s7511_s1 + $0x7e8] sm:$0xff]  ;;  %v268_v6 = vld [vmem:[%s7511_s1 + $0x6f0] sm:$0xff] }
  0x55   :  { %4046 = vmatpush3.bf16.msra.mxu0 %v4045_v10  ;;  %v291_v10 = vld [vmem:[%s7511_s1 + $0x7a8] sm:$0xff]  ;;  %v269_v7 = vld [vmem:[%s7511_s1 + $0x6f8] sm:$0xff] }
  0x56   :  { %4048 = vmatprep.subr.bf16.mxu0 %v4047_v12  ;;  %v4097_v12 = vpack.c.bf16 %v241_v2, %v240_v1  ;;  %v4131_v17 = vpack.c.bf16 %v291_v10, %v290_v9  ;;  %v250_v1 = vld [vmem:[%s7511_s1 + $0x660] sm:$0xff]  ;;  %v251_v2 = vld [vmem:[%s7511_s1 + $0x668] sm:$0xff]  ;;  %v301_v9 = vld [vmem:[%s7511_s1 + $0x7f8] sm:$0xff] }
  0x57   :  { %4078 = vmatpush3.bf16.msra.mxu1 %v4077_v11  ;;  %v868_v11 = vcombine.high %v5510_v62, %v5510_v62  ;;  %v4117_v10 = vpack.c.bf16 %v251_v2, %v250_v1  ;;  %v308_v1 = vld [vmem:[%s7511_s1 + $0x830] sm:$0xff]  ;;  %v309_v2 = vld [vmem:[%s7511_s1 + $0x838] sm:$0xff] }
  0x58   :  { %4080 = vmatprep.subr.bf16.mxu1 %v4079_v16  ;;  %v274_v16 = vld [vmem:[%s7511_s1 + $0x720] sm:$0xff] }
  0x59   :  { %4050 = vmatpush3.bf16.msra.mxu0 %v4049_v23 }
  0x5a   :  { %4052 = vmatprep.subr.bf16.mxu0 %v4051_v27  ;;  %v4103_v27 = vpack.c.bf16 %v261_v19, %v260_v18  ;;  %v350_v18 = vld [vmem:[%s7511_s1 + $0x980] sm:$0xff]  ;;  %v351_v19 = vld [vmem:[%s7511_s1 + $0x988] sm:$0xff] }
  0x5b   :  { %4082 = vmatpush3.bf16.msra.mxu1 %v4081_v24 }
  0x5c   :  { %4084 = vmatprep.subr.bf16.mxu1 %v4083_v31  ;;  %v4135_v31 = vpack.c.bf16 %v293_v22, %v292_v21 }
  0x5d   :  { %4054 = vmatpush3.bf16.msra.mxu0 %v4053_v38  ;;  %v4105_v38 = vpack.c.bf16 %v245_v29, %v244_v28  ;;  %v334_v28 = vld [vmem:[%s7511_s1 + $0x900] sm:$0xff]  ;;  %v4187_v29 = vpack.c.bf16 %v351_v19, %v350_v18  ;;  %v360_v18 = vld [vmem:[%s7511_s1 + $0x9d0] sm:$0xff]  ;;  %v361_v19 = vld [vmem:[%s7511_s1 + $0x9d8] sm:$0xff] }
  0x5e   :  { %4056 = vmatprep.subr.bf16.mxu0 %v4055_v40  ;;  %v4107_v40 = vpack.c.bf16 %v263_v34, %v262_v33  ;;  %v352_v33 = vld [vmem:[%s7511_s1 + $0x990] sm:$0xff]  ;;  %v353_v34 = vld [vmem:[%s7511_s1 + $0x998] sm:$0xff] }
  0x5f   :  { %4086 = vmatpush3.bf16.msra.mxu1 %v4085_v39  ;;  %v4137_v39 = vpack.c.bf16 %v277_v32, %v276_v30  ;;  %v335_v30 = vld [vmem:[%s7511_s1 + $0x908] sm:$0xff]  ;;  %v321_v32 = vld [vmem:[%s7511_s1 + $0x898] sm:$0xff] }
  0x60   :  { %4088 = vmatprep.subr.bf16.mxu1 %v4087_v43  ;;  %v4139_v43 = vpack.c.bf16 %v295_v37, %v294_v35  ;;  %v5713_v35 = vld [vmem:[%s7510_s0 + $0x40] sm:$0xff] }
  0x61   :  { %4058 = vmatpush3.bf16.msra.mxu0 %v4057_v48  ;;  %v4109_v48 = vpack.c.bf16 %v247_v42, %v246_v41  ;;  %v304_v41 = vld [vmem:[%s7511_s1 + $0x810] sm:$0xff]  ;;  %v305_v42 = vld [vmem:[%s7511_s1 + $0x818] sm:$0xff] }
  0x62   :  { %4092 = vmatprep.subr.bf16.mxu0 %v4091_v50  ;;  %v4111_v50 = vpack.c.bf16 %v265_v25, %v264_v45  ;;  %v322_v45 = vld [vmem:[%s7511_s1 + $0x8a0] sm:$0xff]  ;;  %v323_v25 = vld [vmem:[%s7511_s1 + $0x8a8] sm:$0xff] }
  0x63   :  { %4090 = vmatpush3.bf16.msra.mxu1 %v4089_v49  ;;  %v4141_v49 = vpack.c.bf16 %v279_v44, %v278_v20  ;;  %v336_v20 = vld [vmem:[%s7511_s1 + $0x910] sm:$0xff]  ;;  %v337_v44 = vld [vmem:[%s7511_s1 + $0x918] sm:$0xff] }
  0x64   :  { %4124 = vmatprep.subr.bf16.mxu1 %v4123_v54  ;;  %1254 = vmatmul.mubr.f32.vlgmr.msra.gmra.mrb[4].mxu0 %v5300_v26  ;;  %v242_v26 = vld [vmem:[%s7511_s1 + $0x620] sm:$0xff]  ;;  %v4143_v54 = vpack.c.bf16 %v297_v47, %v296_v46  ;;  %v869_v46 = vcombine.high %v5713_v35, %v5713_v35 }
  0x65   :  { %4094 = vmatpush3.bf16.msra.mxu0 %v4093_v61  ;;  %1393 = vmatprep.mubr.f32.mxu0 %v867_v8  ;;  %v4101_v23 = vpack.c.bf16 %v243_v15, %v242_v26  ;;  %v4113_v61 = vpack.c.bf16 %v249_v52, %v248_v51  ;;  %v300_v8 = vld [vmem:[%s7511_s1 + $0x7f0] sm:$0xff]  ;;  %v354_v47 = vld [vmem:[%s7511_s1 + $0x9a0] sm:$0xff]  ;;  %v4193_v51 = vpack.c.bf16 %v337_v44, %v336_v20  ;;  %v347_v44 = vld [vmem:[%s7511_s1 + $0x968] sm:$0xff] }
  0x66   :  { %1324 = vmatmul.mubr.f32.vlgmr.msra.gmra.mrb[4].mxu1 %v5322_v36  ;;  %4096 = vmatprep.subr.bf16.mxu0 %v4095_v0  ;;  %v275_v36 = vld [vmem:[%s7511_s1 + $0x728] sm:$0xff]  ;;  %v4115_v0 = vpack.c.bf16 %v267_v57, %v266_v56  ;;  %v284_v26 = vld [vmem:[%s7511_s1 + $0x770] sm:$0xff]  ;;  %v4151_v15 = vpack.c.bf16 %v301_v9, %v300_v8  ;;  %v4163_v52 = vpack.c.bf16 %v323_v25, %v322_v45  ;;  %v325_v57 = vld [vmem:[%s7511_s1 + $0x8b8] sm:$0xff] }
  0x67   :  { %4126 = vmatpush3.bf16.msra.mxu1 %v4125_v63  ;;  %1463 = vmatprep.mubr.f32.mxu1 %v868_v11  ;;  %v4133_v24 = vpack.c.bf16 %v275_v36, %v274_v16  ;;  %v4145_v63 = vpack.c.bf16 %v281_v55, %v280_v53  ;;  %v4149_v11 = vpack.c.bf16 %v283_v5, %v282_v3  ;;  %v285_v16 = vld [vmem:[%s7511_s1 + $0x778] sm:$0xff]  ;;  %v319_v36 = vld [vmem:[%s7511_s1 + $0x888] sm:$0xff]  ;;  %v324_v56 = vld [vmem:[%s7511_s1 + $0x8b0] sm:$0xff] }
  0x68   :  { %4128 = vmatprep.subr.bf16.mxu1 %v4127_v4  ;;  %v4147_v4 = vpack.c.bf16 %v299_v59, %v298_v58  ;;  %v4153_v22 = vpack.c.bf16 %v285_v16, %v284_v26  ;;  %v307_v53 = vld [vmem:[%s7511_s1 + $0x828] sm:$0xff]  ;;  %v356_v58 = vld [vmem:[%s7511_s1 + $0x9b0] sm:$0xff]  ;;  %v357_v59 = vld [vmem:[%s7511_s1 + $0x9b8] sm:$0xff] }
  0x69   :  { %4098 = vmatpush3.bf16.msra.mxu0 %v4097_v12  ;;  %v4119_v12 = vpack.c.bf16 %v269_v7, %v268_v6  ;;  %v340_v3 = vld [vmem:[%s7511_s1 + $0x930] sm:$0xff]  ;;  %v341_v5 = vld [vmem:[%s7511_s1 + $0x938] sm:$0xff]  ;;  %v326_v6 = vld [vmem:[%s7511_s1 + $0x8c0] sm:$0xff] }
  0x6a   :  { %4100 = vmatprep.subr.bf16.mxu0 %v4099_v14  ;;  %v253_v14 = vld [vmem:[%s7511_s1 + $0x678] sm:$0xff]  ;;  %v327_v7 = vld [vmem:[%s7511_s1 + $0x8c8] sm:$0xff]  ;;  %v358_v8 = vld [vmem:[%s7511_s1 + $0x9c0] sm:$0xff] }
  0x6b   :  { %4130 = vmatpush3.bf16.msra.mxu1 %v4129_v13  ;;  %v252_v13 = vld [vmem:[%s7511_s1 + $0x670] sm:$0xff]  ;;  %v359_v9 = vld [vmem:[%s7511_s1 + $0x9c8] sm:$0xff]  ;;  %v342_v26 = vld [vmem:[%s7511_s1 + $0x940] sm:$0xff] }
  0x6c   :  { %4132 = vmatprep.subr.bf16.mxu1 %v4131_v17  ;;  %v318_v17 = vld [vmem:[%s7511_s1 + $0x880] sm:$0xff]  ;;  %v4121_v21 = vpack.c.bf16 %v253_v14, %v252_v13  ;;  %v311_v14 = vld [vmem:[%s7511_s1 + $0x848] sm:$0xff]  ;;  %v332_v45 = vld [vmem:[%s7511_s1 + $0x8f0] sm:$0xff] }
  0x6d   :  { %4102 = vmatpush3.bf16.msra.mxu0 %v4101_v23  ;;  %v4155_v23 = vpack.c.bf16 %v319_v36, %v318_v17  ;;  %v310_v13 = vld [vmem:[%s7511_s1 + $0x840] sm:$0xff]  ;;  %v343_v16 = vld [vmem:[%s7511_s1 + $0x948] sm:$0xff]  ;;  %v328_v17 = vld [vmem:[%s7511_s1 + $0x8d0] sm:$0xff] }
  0x6e   :  { %4104 = vmatprep.subr.bf16.mxu0 %v4103_v27  ;;  %v303_v27 = vld [vmem:[%s7511_s1 + $0x808] sm:$0xff]  ;;  %v329_v36 = vld [vmem:[%s7511_s1 + $0x8d8] sm:$0xff]  ;;  %v346_v20 = vld [vmem:[%s7511_s1 + $0x960] sm:$0xff] }
  0x6f   :  { %4134 = vmatpush3.bf16.msra.mxu1 %v4133_v24  ;;  %v302_v24 = vld [vmem:[%s7511_s1 + $0x800] sm:$0xff]  ;;  %v333_v25 = vld [vmem:[%s7511_s1 + $0x8f8] sm:$0xff] }
  0x70   :  { %4136 = vmatprep.subr.bf16.mxu1 %v4135_v31  ;;  %v320_v31 = vld [vmem:[%s7511_s1 + $0x890] sm:$0xff]  ;;  %v4157_v37 = vpack.c.bf16 %v303_v27, %v302_v24  ;;  %v313_v27 = vld [vmem:[%s7511_s1 + $0x858] sm:$0xff] }
  0x71   :  { %4106 = vmatpush3.bf16.msra.mxu0 %v4105_v38  ;;  %v5718_v38 = vld [vmem:[%s7510_s0 + $0x48] sm:$0xff]  ;;  %v312_v24 = vld [vmem:[%s7511_s1 + $0x850] sm:$0xff] }
  0x72   :  { %4108 = vmatprep.subr.bf16.mxu0 %v4107_v40  ;;  %v4159_v40 = vpack.c.bf16 %v321_v32, %v320_v31  ;;  %v330_v31 = vld [vmem:[%s7511_s1 + $0x8e0] sm:$0xff]  ;;  %v331_v32 = vld [vmem:[%s7511_s1 + $0x8e8] sm:$0xff] }
  0x73   :  { %4138 = vmatpush3.bf16.msra.mxu1 %v4137_v39  ;;  %v4189_v39 = vpack.c.bf16 %v335_v30, %v334_v28  ;;  %v344_v28 = vld [vmem:[%s7511_s1 + $0x950] sm:$0xff]  ;;  %v345_v30 = vld [vmem:[%s7511_s1 + $0x958] sm:$0xff] }
  0x74   :  { %4140 = vmatprep.subr.bf16.mxu1 %v4139_v43  ;;  %v4191_v43 = vpack.c.bf16 %v353_v34, %v352_v33  ;;  %v362_v33 = vld [vmem:[%s7511_s1 + $0x9e0] sm:$0xff]  ;;  %v363_v34 = vld [vmem:[%s7511_s1 + $0x9e8] sm:$0xff] }
  0x75   :  { %4110 = vmatpush3.bf16.msra.mxu0 %v4109_v48  ;;  %v355_v48 = vld [vmem:[%s7511_s1 + $0x9a8] sm:$0xff] }
  0x76   :  { %4112 = vmatprep.subr.bf16.mxu0 %v4111_v50  ;;  %v4161_v50 = vpack.c.bf16 %v305_v42, %v304_v41  ;;  %v4195_v55 = vpack.c.bf16 %v355_v48, %v354_v47  ;;  %v314_v41 = vld [vmem:[%s7511_s1 + $0x860] sm:$0xff]  ;;  %v315_v42 = vld [vmem:[%s7511_s1 + $0x868] sm:$0xff]  ;;  %v365_v47 = vld [vmem:[%s7511_s1 + $0x9f8] sm:$0xff] }
  0x77   :  { %4142 = vmatpush3.bf16.msra.mxu1 %v4141_v49  ;;  %v870_v49 = vcombine.high %v5718_v38, %v5718_v38  ;;  %v4181_v48 = vpack.c.bf16 %v315_v42, %v314_v41  ;;  %v372_v41 = vld [vmem:[%s7511_s1 + $0xa30] sm:$0xff]  ;;  %v373_v42 = vld [vmem:[%s7511_s1 + $0xa38] sm:$0xff] }
  0x78   :  { %4144 = vmatprep.subr.bf16.mxu1 %v4143_v54  ;;  %v338_v54 = vld [vmem:[%s7511_s1 + $0x920] sm:$0xff] }
  0x79   :  { %4114 = vmatpush3.bf16.msra.mxu0 %v4113_v61 }
  0x7a   :  { %4116 = vmatprep.subr.bf16.mxu0 %v4115_v0  ;;  %v4167_v0 = vpack.c.bf16 %v325_v57, %v324_v56  ;;  %v414_v56 = vld [vmem:[%s7511_s1 + $0xb80] sm:$0xff]  ;;  %v415_v57 = vld [vmem:[%s7511_s1 + $0xb88] sm:$0xff] }
  0x7b   :  { %4146 = vmatpush3.bf16.msra.mxu1 %v4145_v63 }
  0x7c   :  { %4148 = vmatprep.subr.bf16.mxu1 %v4147_v4  ;;  %v4199_v4 = vpack.c.bf16 %v357_v59, %v356_v58 }
  0x7d   :  { %4118 = vmatpush3.bf16.msra.mxu0 %v4117_v10  ;;  %v4169_v10 = vpack.c.bf16 %v309_v2, %v308_v1  ;;  %v398_v1 = vld [vmem:[%s7511_s1 + $0xb00] sm:$0xff]  ;;  %v4251_v2 = vpack.c.bf16 %v415_v57, %v414_v56  ;;  %v424_v56 = vld [vmem:[%s7511_s1 + $0xbd0] sm:$0xff]  ;;  %v425_v57 = vld [vmem:[%s7511_s1 + $0xbd8] sm:$0xff] }
  0x7e   :  { %4120 = vmatprep.subr.bf16.mxu0 %v4119_v12  ;;  %v4171_v12 = vpack.c.bf16 %v327_v7, %v326_v6  ;;  %v416_v6 = vld [vmem:[%s7511_s1 + $0xb90] sm:$0xff]  ;;  %v417_v7 = vld [vmem:[%s7511_s1 + $0xb98] sm:$0xff] }
  0x7f   :  { %4150 = vmatpush3.bf16.msra.mxu1 %v4149_v11  ;;  %v4201_v11 = vpack.c.bf16 %v341_v5, %v340_v3  ;;  %v399_v3 = vld [vmem:[%s7511_s1 + $0xb08] sm:$0xff]  ;;  %v385_v5 = vld [vmem:[%s7511_s1 + $0xa98] sm:$0xff] }
  0x80   :  { %4152 = vmatprep.subr.bf16.mxu1 %v4151_v15  ;;  %v4203_v15 = vpack.c.bf16 %v359_v9, %v358_v8  ;;  %v5921_v8 = vld [vmem:[%s7510_s0 + $0x50] sm:$0xff] }
  0x81   :  { %4122 = vmatpush3.bf16.msra.mxu0 %v4121_v21  ;;  %v4173_v21 = vpack.c.bf16 %v311_v14, %v310_v13  ;;  %v368_v13 = vld [vmem:[%s7511_s1 + $0xa10] sm:$0xff]  ;;  %v369_v14 = vld [vmem:[%s7511_s1 + $0xa18] sm:$0xff] }
  0x82   :  { %4156 = vmatprep.subr.bf16.mxu0 %v4155_v23  ;;  %v4175_v23 = vpack.c.bf16 %v329_v36, %v328_v17  ;;  %v386_v17 = vld [vmem:[%s7511_s1 + $0xaa0] sm:$0xff]  ;;  %v387_v36 = vld [vmem:[%s7511_s1 + $0xaa8] sm:$0xff] }
  0x83   :  { %4154 = vmatpush3.bf16.msra.mxu1 %v4153_v22  ;;  %v4205_v22 = vpack.c.bf16 %v343_v16, %v342_v26  ;;  %v400_v26 = vld [vmem:[%s7511_s1 + $0xb10] sm:$0xff]  ;;  %v401_v16 = vld [vmem:[%s7511_s1 + $0xb18] sm:$0xff] }
  0x84   :  { %4188 = vmatprep.subr.bf16.mxu1 %v4187_v29  ;;  %1394 = vmatmul.mubr.f32.vlgmr.msra.gmra.mrb[6].mxu0 %v5505_v60  ;;  %v306_v60 = vld [vmem:[%s7511_s1 + $0x820] sm:$0xff]  ;;  %v4207_v29 = vpack.c.bf16 %v361_v19, %v360_v18  ;;  %v871_v18 = vcombine.high %v5921_v8, %v5921_v8 }
  0x85   :  { %4158 = vmatpush3.bf16.msra.mxu0 %v4157_v37  ;;  %1533 = vmatprep.mubr.f32.mxu0 %v869_v46  ;;  %v4165_v61 = vpack.c.bf16 %v307_v53, %v306_v60  ;;  %v4177_v37 = vpack.c.bf16 %v313_v27, %v312_v24  ;;  %v364_v46 = vld [vmem:[%s7511_s1 + $0x9f0] sm:$0xff]  ;;  %v418_v19 = vld [vmem:[%s7511_s1 + $0xba0] sm:$0xff]  ;;  %v4257_v24 = vpack.c.bf16 %v401_v16, %v400_v26  ;;  %v411_v16 = vld [vmem:[%s7511_s1 + $0xb68] sm:$0xff] }
  0x86   :  { %1464 = vmatmul.mubr.f32.vlgmr.msra.gmra.mrb[6].mxu1 %v5510_v62  ;;  %4160 = vmatprep.subr.bf16.mxu0 %v4159_v40  ;;  %v339_v62 = vld [vmem:[%s7511_s1 + $0x928] sm:$0xff]  ;;  %v4179_v40 = vpack.c.bf16 %v331_v32, %v330_v31  ;;  %v348_v60 = vld [vmem:[%s7511_s1 + $0x970] sm:$0xff]  ;;  %v4215_v53 = vpack.c.bf16 %v365_v47, %v364_v46  ;;  %v4227_v27 = vpack.c.bf16 %v387_v36, %v386_v17  ;;  %v389_v32 = vld [vmem:[%s7511_s1 + $0xab8] sm:$0xff] }
  0x87   :  { %4190 = vmatpush3.bf16.msra.mxu1 %v4189_v39  ;;  %1603 = vmatprep.mubr.f32.mxu1 %v870_v49  ;;  %v4197_v63 = vpack.c.bf16 %v339_v62, %v338_v54  ;;  %v4209_v39 = vpack.c.bf16 %v345_v30, %v344_v28  ;;  %v4213_v49 = vpack.c.bf16 %v347_v44, %v346_v20  ;;  %v349_v54 = vld [vmem:[%s7511_s1 + $0x978] sm:$0xff]  ;;  %v383_v62 = vld [vmem:[%s7511_s1 + $0xa88] sm:$0xff]  ;;  %v388_v31 = vld [vmem:[%s7511_s1 + $0xab0] sm:$0xff] }
  0x88   :  { %4192 = vmatprep.subr.bf16.mxu1 %v4191_v43  ;;  %v4211_v43 = vpack.c.bf16 %v363_v34, %v362_v33  ;;  %v4217_v59 = vpack.c.bf16 %v349_v54, %v348_v60  ;;  %v371_v28 = vld [vmem:[%s7511_s1 + $0xa28] sm:$0xff]  ;;  %v420_v33 = vld [vmem:[%s7511_s1 + $0xbb0] sm:$0xff]  ;;  %v421_v34 = vld [vmem:[%s7511_s1 + $0xbb8] sm:$0xff] }
  0x89   :  { %4162 = vmatpush3.bf16.msra.mxu0 %v4161_v50  ;;  %v4183_v50 = vpack.c.bf16 %v333_v25, %v332_v45  ;;  %v404_v20 = vld [vmem:[%s7511_s1 + $0xb30] sm:$0xff]  ;;  %v405_v44 = vld [vmem:[%s7511_s1 + $0xb38] sm:$0xff]  ;;  %v390_v45 = vld [vmem:[%s7511_s1 + $0xac0] sm:$0xff] }
  0x8a   :  { %4164 = vmatprep.subr.bf16.mxu0 %v4163_v52  ;;  %v317_v52 = vld [vmem:[%s7511_s1 + $0x878] sm:$0xff]  ;;  %v391_v25 = vld [vmem:[%s7511_s1 + $0xac8] sm:$0xff]  ;;  %v422_v46 = vld [vmem:[%s7511_s1 + $0xbc0] sm:$0xff] }
  0x8b   :  { %4194 = vmatpush3.bf16.msra.mxu1 %v4193_v51  ;;  %v316_v51 = vld [vmem:[%s7511_s1 + $0x870] sm:$0xff]  ;;  %v423_v47 = vld [vmem:[%s7511_s1 + $0xbc8] sm:$0xff]  ;;  %v406_v60 = vld [vmem:[%s7511_s1 + $0xb40] sm:$0xff] }
  0x8c   :  { %4196 = vmatprep.subr.bf16.mxu1 %v4195_v55  ;;  %v382_v55 = vld [vmem:[%s7511_s1 + $0xa80] sm:$0xff]  ;;  %v4185_v58 = vpack.c.bf16 %v317_v52, %v316_v51  ;;  %v375_v52 = vld [vmem:[%s7511_s1 + $0xa48] sm:$0xff]  ;;  %v396_v17 = vld [vmem:[%s7511_s1 + $0xaf0] sm:$0xff] }
  0x8d   :  { %4166 = vmatpush3.bf16.msra.mxu0 %v4165_v61  ;;  %v4219_v61 = vpack.c.bf16 %v383_v62, %v382_v55  ;;  %v374_v51 = vld [vmem:[%s7511_s1 + $0xa40] sm:$0xff]  ;;  %v407_v54 = vld [vmem:[%s7511_s1 + $0xb48] sm:$0xff]  ;;  %v392_v55 = vld [vmem:[%s7511_s1 + $0xad0] sm:$0xff] }
  0x8e   :  { %4168 = vmatprep.subr.bf16.mxu0 %v4167_v0  ;;  %v367_v0 = vld [vmem:[%s7511_s1 + $0xa08] sm:$0xff]  ;;  %v393_v62 = vld [vmem:[%s7511_s1 + $0xad8] sm:$0xff]  ;;  %v410_v26 = vld [vmem:[%s7511_s1 + $0xb60] sm:$0xff] }
  0x8f   :  { %4198 = vmatpush3.bf16.msra.mxu1 %v4197_v63  ;;  %v366_v63 = vld [vmem:[%s7511_s1 + $0xa00] sm:$0xff]  ;;  %v397_v36 = vld [vmem:[%s7511_s1 + $0xaf8] sm:$0xff] }
  0x90   :  { %4200 = vmatprep.subr.bf16.mxu1 %v4199_v4  ;;  %v384_v4 = vld [vmem:[%s7511_s1 + $0xa90] sm:$0xff]  ;;  %v4221_v9 = vpack.c.bf16 %v367_v0, %v366_v63  ;;  %v377_v0 = vld [vmem:[%s7511_s1 + $0xa58] sm:$0xff] }
  0x91   :  { %4170 = vmatpush3.bf16.msra.mxu0 %v4169_v10  ;;  %v5926_v10 = vld [vmem:[%s7510_s0 + $0x58] sm:$0xff]  ;;  %v376_v63 = vld [vmem:[%s7511_s1 + $0xa50] sm:$0xff] }
  0x92   :  { %4172 = vmatprep.subr.bf16.mxu0 %v4171_v12  ;;  %v4223_v12 = vpack.c.bf16 %v385_v5, %v384_v4  ;;  %v394_v4 = vld [vmem:[%s7511_s1 + $0xae0] sm:$0xff]  ;;  %v395_v5 = vld [vmem:[%s7511_s1 + $0xae8] sm:$0xff] }
  0x93   :  { %4202 = vmatpush3.bf16.msra.mxu1 %v4201_v11  ;;  %v4253_v11 = vpack.c.bf16 %v399_v3, %v398_v1  ;;  %v408_v1 = vld [vmem:[%s7511_s1 + $0xb50] sm:$0xff]  ;;  %v409_v3 = vld [vmem:[%s7511_s1 + $0xb58] sm:$0xff] }
  0x94   :  { %4204 = vmatprep.subr.bf16.mxu1 %v4203_v15  ;;  %v4255_v15 = vpack.c.bf16 %v417_v7, %v416_v6  ;;  %v426_v6 = vld [vmem:[%s7511_s1 + $0xbe0] sm:$0xff]  ;;  %v427_v7 = vld [vmem:[%s7511_s1 + $0xbe8] sm:$0xff] }
  0x95   :  { %4174 = vmatpush3.bf16.msra.mxu0 %v4173_v21  ;;  %v419_v21 = vld [vmem:[%s7511_s1 + $0xba8] sm:$0xff] }
  0x96   :  { %4176 = vmatprep.subr.bf16.mxu0 %v4175_v23  ;;  %v4225_v23 = vpack.c.bf16 %v369_v14, %v368_v13  ;;  %v4259_v30 = vpack.c.bf16 %v419_v21, %v418_v19  ;;  %v378_v13 = vld [vmem:[%s7511_s1 + $0xa60] sm:$0xff]  ;;  %v379_v14 = vld [vmem:[%s7511_s1 + $0xa68] sm:$0xff]  ;;  %v429_v19 = vld [vmem:[%s7511_s1 + $0xbf8] sm:$0xff] }
  0x97   :  { %4206 = vmatpush3.bf16.msra.mxu1 %v4205_v22  ;;  %v872_v22 = vcombine.high %v5926_v10, %v5926_v10  ;;  %v4245_v21 = vpack.c.bf16 %v379_v14, %v378_v13  ;;  %v436_v13 = vld [vmem:[%s7511_s1 + $0xc30] sm:$0xff]  ;;  %v437_v14 = vld [vmem:[%s7511_s1 + $0xc38] sm:$0xff] }
  0x98   :  { %4208 = vmatprep.subr.bf16.mxu1 %v4207_v29  ;;  %v402_v29 = vld [vmem:[%s7511_s1 + $0xb20] sm:$0xff] }
  0x99   :  { %4178 = vmatpush3.bf16.msra.mxu0 %v4177_v37 }
  0x9a   :  { %4180 = vmatprep.subr.bf16.mxu0 %v4179_v40  ;;  %v4231_v40 = vpack.c.bf16 %v389_v32, %v388_v31  ;;  %v478_v31 = vld [vmem:[%s7511_s1 + $0xd80] sm:$0xff]  ;;  %v479_v32 = vld [vmem:[%s7511_s1 + $0xd88] sm:$0xff] }
  0x9b   :  { %4210 = vmatpush3.bf16.msra.mxu1 %v4209_v39 }
  0x9c   :  { %4212 = vmatprep.subr.bf16.mxu1 %v4211_v43  ;;  %v4263_v43 = vpack.c.bf16 %v421_v34, %v420_v33 }
  0x9d   :  { %4182 = vmatpush3.bf16.msra.mxu0 %v4181_v48  ;;  %v4233_v48 = vpack.c.bf16 %v373_v42, %v372_v41  ;;  %v462_v41 = vld [vmem:[%s7511_s1 + $0xd00] sm:$0xff]  ;;  %v4315_v42 = vpack.c.bf16 %v479_v32, %v478_v31  ;;  %v488_v31 = vld [vmem:[%s7511_s1 + $0xdd0] sm:$0xff]  ;;  %v489_v32 = vld [vmem:[%s7511_s1 + $0xdd8] sm:$0xff] }
  0x9e   :  { %4184 = vmatprep.subr.bf16.mxu0 %v4183_v50  ;;  %v4235_v50 = vpack.c.bf16 %v391_v25, %v390_v45  ;;  %v480_v45 = vld [vmem:[%s7511_s1 + $0xd90] sm:$0xff]  ;;  %v481_v25 = vld [vmem:[%s7511_s1 + $0xd98] sm:$0xff] }
  0x9f   :  { %4214 = vmatpush3.bf16.msra.mxu1 %v4213_v49  ;;  %v4265_v49 = vpack.c.bf16 %v405_v44, %v404_v20  ;;  %v463_v20 = vld [vmem:[%s7511_s1 + $0xd08] sm:$0xff]  ;;  %v449_v44 = vld [vmem:[%s7511_s1 + $0xc98] sm:$0xff] }
  0xa0   :  { %4216 = vmatprep.subr.bf16.mxu1 %v4215_v53  ;;  %v4267_v53 = vpack.c.bf16 %v423_v47, %v422_v46  ;;  %v6129_v46 = vld [vmem:[%s7510_s0 + $0x60] sm:$0xff] }
  0xa1   :  { %4186 = vmatpush3.bf16.msra.mxu0 %v4185_v58  ;;  %v4237_v58 = vpack.c.bf16 %v375_v52, %v374_v51  ;;  %v432_v51 = vld [vmem:[%s7511_s1 + $0xc10] sm:$0xff]  ;;  %v433_v52 = vld [vmem:[%s7511_s1 + $0xc18] sm:$0xff] }
  0xa2   :  { %4220 = vmatprep.subr.bf16.mxu0 %v4219_v61  ;;  %v4239_v61 = vpack.c.bf16 %v393_v62, %v392_v55  ;;  %v450_v55 = vld [vmem:[%s7511_s1 + $0xca0] sm:$0xff]  ;;  %v451_v62 = vld [vmem:[%s7511_s1 + $0xca8] sm:$0xff] }
  0xa3   :  { %4218 = vmatpush3.bf16.msra.mxu1 %v4217_v59  ;;  %v4269_v59 = vpack.c.bf16 %v407_v54, %v406_v60  ;;  %v464_v60 = vld [vmem:[%s7511_s1 + $0xd10] sm:$0xff]  ;;  %v465_v54 = vld [vmem:[%s7511_s1 + $0xd18] sm:$0xff] }
  0xa4   :  { %4252 = vmatprep.subr.bf16.mxu1 %v4251_v2  ;;  %1534 = vmatmul.mubr.f32.vlgmr.msra.gmra.mrb[8].mxu0 %v5713_v35  ;;  %v370_v35 = vld [vmem:[%s7511_s1 + $0xa20] sm:$0xff]  ;;  %v4271_v2 = vpack.c.bf16 %v425_v57, %v424_v56  ;;  %v873_v56 = vcombine.high %v6129_v46, %v6129_v46 }
  0xa5   :  { %4222 = vmatpush3.bf16.msra.mxu0 %v4221_v9  ;;  %1673 = vmatprep.mubr.f32.mxu0 %v871_v18  ;;  %v4229_v37 = vpack.c.bf16 %v371_v28, %v370_v35  ;;  %v4241_v9 = vpack.c.bf16 %v377_v0, %v376_v63  ;;  %v428_v18 = vld [vmem:[%s7511_s1 + $0xbf0] sm:$0xff]  ;;  %v482_v57 = vld [vmem:[%s7511_s1 + $0xda0] sm:$0xff]  ;;  %v4321_v63 = vpack.c.bf16 %v465_v54, %v464_v60  ;;  %v475_v54 = vld [vmem:[%s7511_s1 + $0xd68] sm:$0xff] }
  0xa6   :  { %1604 = vmatmul.mubr.f32.vlgmr.msra.gmra.mrb[8].mxu1 %v5718_v38  ;;  %4224 = vmatprep.subr.bf16.mxu0 %v4223_v12  ;;  %v403_v38 = vld [vmem:[%s7511_s1 + $0xb28] sm:$0xff]  ;;  %v4243_v12 = vpack.c.bf16 %v395_v5, %v394_v4  ;;  %v412_v35 = vld [vmem:[%s7511_s1 + $0xb70] sm:$0xff]  ;;  %v4279_v28 = vpack.c.bf16 %v429_v19, %v428_v18  ;;  %v4291_v0 = vpack.c.bf16 %v451_v62, %v450_v55  ;;  %v453_v5 = vld [vmem:[%s7511_s1 + $0xcb8] sm:$0xff] }
  0xa7   :  { %4254 = vmatpush3.bf16.msra.mxu1 %v4253_v11  ;;  %1743 = vmatprep.mubr.f32.mxu1 %v872_v22  ;;  %v4261_v39 = vpack.c.bf16 %v403_v38, %v402_v29  ;;  %v4273_v11 = vpack.c.bf16 %v409_v3, %v408_v1  ;;  %v4277_v22 = vpack.c.bf16 %v411_v16, %v410_v26  ;;  %v413_v29 = vld [vmem:[%s7511_s1 + $0xb78] sm:$0xff]  ;;  %v447_v38 = vld [vmem:[%s7511_s1 + $0xc88] sm:$0xff]  ;;  %v452_v4 = vld [vmem:[%s7511_s1 + $0xcb0] sm:$0xff] }
  0xa8   :  { %4256 = vmatprep.subr.bf16.mxu1 %v4255_v15  ;;  %v4275_v15 = vpack.c.bf16 %v427_v7, %v426_v6  ;;  %v4281_v34 = vpack.c.bf16 %v413_v29, %v412_v35  ;;  %v435_v1 = vld [vmem:[%s7511_s1 + $0xc28] sm:$0xff]  ;;  %v484_v6 = vld [vmem:[%s7511_s1 + $0xdb0] sm:$0xff]  ;;  %v485_v7 = vld [vmem:[%s7511_s1 + $0xdb8] sm:$0xff] }
  0xa9   :  { %4226 = vmatpush3.bf16.msra.mxu0 %v4225_v23  ;;  %v4247_v23 = vpack.c.bf16 %v397_v36, %v396_v17  ;;  %v468_v26 = vld [vmem:[%s7511_s1 + $0xd30] sm:$0xff]  ;;  %v469_v16 = vld [vmem:[%s7511_s1 + $0xd38] sm:$0xff]  ;;  %v454_v17 = vld [vmem:[%s7511_s1 + $0xcc0] sm:$0xff] }
  0xaa   :  { %4228 = vmatprep.subr.bf16.mxu0 %v4227_v27  ;;  %v381_v27 = vld [vmem:[%s7511_s1 + $0xa78] sm:$0xff]  ;;  %v455_v36 = vld [vmem:[%s7511_s1 + $0xcc8] sm:$0xff]  ;;  %v486_v18 = vld [vmem:[%s7511_s1 + $0xdc0] sm:$0xff] }
  0xab   :  { %4258 = vmatpush3.bf16.msra.mxu1 %v4257_v24  ;;  %v380_v24 = vld [vmem:[%s7511_s1 + $0xa70] sm:$0xff]  ;;  %v487_v19 = vld [vmem:[%s7511_s1 + $0xdc8] sm:$0xff]  ;;  %v470_v35 = vld [vmem:[%s7511_s1 + $0xd40] sm:$0xff] }
  0xac   :  { %4260 = vmatprep.subr.bf16.mxu1 %v4259_v30  ;;  %v446_v30 = vld [vmem:[%s7511_s1 + $0xc80] sm:$0xff]  ;;  %v4249_v33 = vpack.c.bf16 %v381_v27, %v380_v24  ;;  %v439_v27 = vld [vmem:[%s7511_s1 + $0xc48] sm:$0xff]  ;;  %v460_v55 = vld [vmem:[%s7511_s1 + $0xcf0] sm:$0xff] }
  0xad   :  { %4230 = vmatpush3.bf16.msra.mxu0 %v4229_v37  ;;  %v4283_v37 = vpack.c.bf16 %v447_v38, %v446_v30  ;;  %v438_v24 = vld [vmem:[%s7511_s1 + $0xc40] sm:$0xff]  ;;  %v471_v29 = vld [vmem:[%s7511_s1 + $0xd48] sm:$0xff]  ;;  %v456_v30 = vld [vmem:[%s7511_s1 + $0xcd0] sm:$0xff] }
  0xae   :  { %4232 = vmatprep.subr.bf16.mxu0 %v4231_v40  ;;  %v431_v40 = vld [vmem:[%s7511_s1 + $0xc08] sm:$0xff]  ;;  %v457_v38 = vld [vmem:[%s7511_s1 + $0xcd8] sm:$0xff]  ;;  %v474_v60 = vld [vmem:[%s7511_s1 + $0xd60] sm:$0xff] }
  0xaf   :  { %4262 = vmatpush3.bf16.msra.mxu1 %v4261_v39  ;;  %v430_v39 = vld [vmem:[%s7511_s1 + $0xc00] sm:$0xff]  ;;  %v461_v62 = vld [vmem:[%s7511_s1 + $0xcf8] sm:$0xff] }
  0xb0   :  { %4264 = vmatprep.subr.bf16.mxu1 %v4263_v43  ;;  %v448_v43 = vld [vmem:[%s7511_s1 + $0xc90] sm:$0xff]  ;;  %v4285_v47 = vpack.c.bf16 %v431_v40, %v430_v39  ;;  %v441_v40 = vld [vmem:[%s7511_s1 + $0xc58] sm:$0xff] }
  0xb1   :  { %4234 = vmatpush3.bf16.msra.mxu0 %v4233_v48  ;;  %v6134_v48 = vld [vmem:[%s7510_s0 + $0x68] sm:$0xff]  ;;  %v440_v39 = vld [vmem:[%s7511_s1 + $0xc50] sm:$0xff] }
  0xb2   :  { %4236 = vmatprep.subr.bf16.mxu0 %v4235_v50  ;;  %v4287_v50 = vpack.c.bf16 %v449_v44, %v448_v43  ;;  %v458_v43 = vld [vmem:[%s7511_s1 + $0xce0] sm:$0xff]  ;;  %v459_v44 = vld [vmem:[%s7511_s1 + $0xce8] sm:$0xff] }
  0xb3   :  { %4266 = vmatpush3.bf16.msra.mxu1 %v4265_v49  ;;  %v4317_v49 = vpack.c.bf16 %v463_v20, %v462_v41  ;;  %v472_v41 = vld [vmem:[%s7511_s1 + $0xd50] sm:$0xff]  ;;  %v473_v20 = vld [vmem:[%s7511_s1 + $0xd58] sm:$0xff] }
  0xb4   :  { %4268 = vmatprep.subr.bf16.mxu1 %v4267_v53  ;;  %v4319_v53 = vpack.c.bf16 %v481_v25, %v480_v45  ;;  %v490_v45 = vld [vmem:[%s7511_s1 + $0xde0] sm:$0xff]  ;;  %v491_v25 = vld [vmem:[%s7511_s1 + $0xde8] sm:$0xff] }
  0xb5   :  { %4238 = vmatpush3.bf16.msra.mxu0 %v4237_v58  ;;  %v483_v58 = vld [vmem:[%s7511_s1 + $0xda8] sm:$0xff] }
  0xb6   :  { %4240 = vmatprep.subr.bf16.mxu0 %v4239_v61  ;;  %v4289_v61 = vpack.c.bf16 %v433_v52, %v432_v51  ;;  %v4323_v3 = vpack.c.bf16 %v483_v58, %v482_v57  ;;  %v442_v51 = vld [vmem:[%s7511_s1 + $0xc60] sm:$0xff]  ;;  %v443_v52 = vld [vmem:[%s7511_s1 + $0xc68] sm:$0xff]  ;;  %v493_v57 = vld [vmem:[%s7511_s1 + $0xdf8] sm:$0xff] }
  0xb7   :  { %4270 = vmatpush3.bf16.msra.mxu1 %v4269_v59  ;;  %v874_v59 = vcombine.high %v6134_v48, %v6134_v48  ;;  %v4309_v58 = vpack.c.bf16 %v443_v52, %v442_v51  ;;  %v500_v51 = vld [vmem:[%s7511_s1 + $0xe30] sm:$0xff]  ;;  %v501_v52 = vld [vmem:[%s7511_s1 + $0xe38] sm:$0xff] }
  0xb8   :  { %4272 = vmatprep.subr.bf16.mxu1 %v4271_v2  ;;  %v466_v2 = vld [vmem:[%s7511_s1 + $0xd20] sm:$0xff] }
  0xb9   :  { %4242 = vmatpush3.bf16.msra.mxu0 %v4241_v9 }
  0xba   :  { %4244 = vmatprep.subr.bf16.mxu0 %v4243_v12  ;;  %v4295_v12 = vpack.c.bf16 %v453_v5, %v452_v4  ;;  %v542_v4 = vld [vmem:[%s7511_s1 + $0xf80] sm:$0xff]  ;;  %v543_v5 = vld [vmem:[%s7511_s1 + $0xf88] sm:$0xff] }
  0xbb   :  { %4274 = vmatpush3.bf16.msra.mxu1 %v4273_v11 }
  0xbc   :  { %4276 = vmatprep.subr.bf16.mxu1 %v4275_v15  ;;  %v4327_v15 = vpack.c.bf16 %v485_v7, %v484_v6 }
  0xbd   :  { %4246 = vmatpush3.bf16.msra.mxu0 %v4245_v21  ;;  %v4297_v21 = vpack.c.bf16 %v437_v14, %v436_v13  ;;  %v526_v13 = vld [vmem:[%s7511_s1 + $0xf00] sm:$0xff]  ;;  %v4379_v14 = vpack.c.bf16 %v543_v5, %v542_v4  ;;  %v552_v4 = vld [vmem:[%s7511_s1 + $0xfd0] sm:$0xff]  ;;  %v553_v5 = vld [vmem:[%s7511_s1 + $0xfd8] sm:$0xff] }
  0xbe   :  { %4248 = vmatprep.subr.bf16.mxu0 %v4247_v23  ;;  %v4299_v23 = vpack.c.bf16 %v455_v36, %v454_v17  ;;  %v544_v17 = vld [vmem:[%s7511_s1 + $0xf90] sm:$0xff]  ;;  %v545_v36 = vld [vmem:[%s7511_s1 + $0xf98] sm:$0xff] }
  0xbf   :  { %4278 = vmatpush3.bf16.msra.mxu1 %v4277_v22  ;;  %v4329_v22 = vpack.c.bf16 %v469_v16, %v468_v26  ;;  %v527_v26 = vld [vmem:[%s7511_s1 + $0xf08] sm:$0xff]  ;;  %v513_v16 = vld [vmem:[%s7511_s1 + $0xe98] sm:$0xff] }
  0xc0   :  { %4280 = vmatprep.subr.bf16.mxu1 %v4279_v28  ;;  %v4331_v28 = vpack.c.bf16 %v487_v19, %v486_v18  ;;  %v6337_v18 = vld [vmem:[%s7510_s0 + $0x70] sm:$0xff] }
  0xc1   :  { %4250 = vmatpush3.bf16.msra.mxu0 %v4249_v33  ;;  %v4301_v33 = vpack.c.bf16 %v439_v27, %v438_v24  ;;  %v496_v24 = vld [vmem:[%s7511_s1 + $0xe10] sm:$0xff]  ;;  %v497_v27 = vld [vmem:[%s7511_s1 + $0xe18] sm:$0xff] }
  0xc2   :  { %4284 = vmatprep.subr.bf16.mxu0 %v4283_v37  ;;  %v4303_v37 = vpack.c.bf16 %v457_v38, %v456_v30  ;;  %v514_v30 = vld [vmem:[%s7511_s1 + $0xea0] sm:$0xff]  ;;  %v515_v38 = vld [vmem:[%s7511_s1 + $0xea8] sm:$0xff] }
  0xc3   :  { %4282 = vmatpush3.bf16.msra.mxu1 %v4281_v34  ;;  %v4333_v34 = vpack.c.bf16 %v471_v29, %v470_v35  ;;  %v528_v35 = vld [vmem:[%s7511_s1 + $0xf10] sm:$0xff]  ;;  %v529_v29 = vld [vmem:[%s7511_s1 + $0xf18] sm:$0xff] }
  0xc4   :  { %4316 = vmatprep.subr.bf16.mxu1 %v4315_v42  ;;  %1674 = vmatmul.mubr.f32.vlgmr.msra.gmra.mrb[10].mxu0 %v5921_v8  ;;  %v434_v8 = vld [vmem:[%s7511_s1 + $0xc20] sm:$0xff]  ;;  %v4335_v42 = vpack.c.bf16 %v489_v32, %v488_v31  ;;  %v875_v31 = vcombine.high %v6337_v18, %v6337_v18 }
  0xc5   :  { %4286 = vmatpush3.bf16.msra.mxu0 %v4285_v47  ;;  %1813 = vmatprep.mubr.f32.mxu0 %v873_v56  ;;  %v4293_v9 = vpack.c.bf16 %v435_v1, %v434_v8  ;;  %v4305_v47 = vpack.c.bf16 %v441_v40, %v440_v39  ;;  %v492_v56 = vld [vmem:[%s7511_s1 + $0xdf0] sm:$0xff]  ;;  %v546_v32 = vld [vmem:[%s7511_s1 + $0xfa0] sm:$0xff]  ;;  %v4385_v39 = vpack.c.bf16 %v529_v29, %v528_v35 }
  0xc6   :  { %1744 = vmatmul.mubr.f32.vlgmr.msra.gmra.mrb[10].mxu1 %v5926_v10  ;;  %4288 = vmatprep.subr.bf16.mxu0 %v4287_v50  ;;  %v467_v10 = vld [vmem:[%s7511_s1 + $0xd28] sm:$0xff]  ;;  %v4307_v50 = vpack.c.bf16 %v459_v44, %v458_v43  ;;  %v476_v8 = vld [vmem:[%s7511_s1 + $0xd70] sm:$0xff]  ;;  %v4343_v1 = vpack.c.bf16 %v493_v57, %v492_v56  ;;  %v4355_v40 = vpack.c.bf16 %v515_v38, %v514_v30  ;;  %v517_v44 = vld [vmem:[%s7511_s1 + $0xeb8] sm:$0xff] }
  0xc7   :  { %4318 = vmatpush3.bf16.msra.mxu1 %v4317_v49  ;;  %1883 = vmatprep.mubr.f32.mxu1 %v874_v59  ;;  %v4325_v11 = vpack.c.bf16 %v467_v10, %v466_v2  ;;  %v4337_v49 = vpack.c.bf16 %v473_v20, %v472_v41  ;;  %v4341_v59 = vpack.c.bf16 %v475_v54, %v474_v60  ;;  %v477_v2 = vld [vmem:[%s7511_s1 + $0xd78] sm:$0xff]  ;;  %v511_v10 = vld [vmem:[%s7511_s1 + $0xe88] sm:$0xff]  ;;  %v516_v43 = vld [vmem:[%s7511_s1 + $0xeb0] sm:$0xff] }
  0xc8   :  { %4320 = vmatprep.subr.bf16.mxu1 %v4319_v53  ;;  %v4339_v53 = vpack.c.bf16 %v491_v25, %v490_v45  ;;  %v4345_v7 = vpack.c.bf16 %v477_v2, %v476_v8  ;;  %v499_v41 = vld [vmem:[%s7511_s1 + $0xe28] sm:$0xff]  ;;  %v548_v45 = vld [vmem:[%s7511_s1 + $0xfb0] sm:$0xff]  ;;  %v549_v25 = vld [vmem:[%s7511_s1 + $0xfb8] sm:$0xff] }
  0xc9   :  { %4290 = vmatpush3.bf16.msra.mxu0 %v4289_v61  ;;  %v4311_v61 = vpack.c.bf16 %v461_v62, %v460_v55  ;;  %v532_v60 = vld [vmem:[%s7511_s1 + $0xf30] sm:$0xff]  ;;  %v533_v54 = vld [vmem:[%s7511_s1 + $0xf38] sm:$0xff]  ;;  %v518_v55 = vld [vmem:[%s7511_s1 + $0xec0] sm:$0xff] }
  0xca   :  { %4292 = vmatprep.subr.bf16.mxu0 %v4291_v0  ;;  %v445_v0 = vld [vmem:[%s7511_s1 + $0xc78] sm:$0xff]  ;;  %v519_v62 = vld [vmem:[%s7511_s1 + $0xec8] sm:$0xff]  ;;  %v550_v56 = vld [vmem:[%s7511_s1 + $0xfc0] sm:$0xff] }
  0xcb   :  { %4322 = vmatpush3.bf16.msra.mxu1 %v4321_v63  ;;  %v444_v63 = vld [vmem:[%s7511_s1 + $0xc70] sm:$0xff]  ;;  %v551_v57 = vld [vmem:[%s7511_s1 + $0xfc8] sm:$0xff]  ;;  %v534_v8 = vld [vmem:[%s7511_s1 + $0xf40] sm:$0xff] }
  0xcc   :  { %4324 = vmatprep.subr.bf16.mxu1 %v4323_v3  ;;  %v510_v3 = vld [vmem:[%s7511_s1 + $0xe80] sm:$0xff]  ;;  %v4313_v6 = vpack.c.bf16 %v445_v0, %v444_v63  ;;  %v503_v0 = vld [vmem:[%s7511_s1 + $0xe48] sm:$0xff]  ;;  %v524_v38 = vld [vmem:[%s7511_s1 + $0xef0] sm:$0xff] }
  0xcd   :  { %4294 = vmatpush3.bf16.msra.mxu0 %v4293_v9  ;;  %v4347_v9 = vpack.c.bf16 %v511_v10, %v510_v3  ;;  %v502_v63 = vld [vmem:[%s7511_s1 + $0xe40] sm:$0xff]  ;;  %v535_v2 = vld [vmem:[%s7511_s1 + $0xf48] sm:$0xff]  ;;  %v520_v3 = vld [vmem:[%s7511_s1 + $0xed0] sm:$0xff] }
  0xce   :  { %4296 = vmatprep.subr.bf16.mxu0 %v4295_v12  ;;  %v495_v12 = vld [vmem:[%s7511_s1 + $0xe08] sm:$0xff]  ;;  %v521_v10 = vld [vmem:[%s7511_s1 + $0xed8] sm:$0xff]  ;;  %v538_v35 = vld [vmem:[%s7511_s1 + $0xf60] sm:$0xff] }
  0xcf   :  { %4326 = vmatpush3.bf16.msra.mxu1 %v4325_v11  ;;  %v494_v11 = vld [vmem:[%s7511_s1 + $0xe00] sm:$0xff]  ;;  %v539_v30 = vld [vmem:[%s7511_s1 + $0xf68] sm:$0xff] }
  0xd0   :  { %4328 = vmatprep.subr.bf16.mxu1 %v4327_v15  ;;  %v512_v15 = vld [vmem:[%s7511_s1 + $0xe90] sm:$0xff]  ;;  %v4349_v19 = vpack.c.bf16 %v495_v12, %v494_v11  ;;  %v505_v12 = vld [vmem:[%s7511_s1 + $0xe58] sm:$0xff] }
  0xd1   :  { %4298 = vmatpush3.bf16.msra.mxu0 %v4297_v21  ;;  %v6342_v21 = vld [vmem:[%s7510_s0 + $0x78] sm:$0xff]  ;;  %v504_v11 = vld [vmem:[%s7511_s1 + $0xe50] sm:$0xff] }
  0xd2   :  { %4300 = vmatprep.subr.bf16.mxu0 %v4299_v23  ;;  %v4351_v23 = vpack.c.bf16 %v513_v16, %v512_v15  ;;  %v522_v15 = vld [vmem:[%s7511_s1 + $0xee0] sm:$0xff]  ;;  %v523_v16 = vld [vmem:[%s7511_s1 + $0xee8] sm:$0xff] }
  0xd3   :  { %4330 = vmatpush3.bf16.msra.mxu1 %v4329_v22  ;;  %v4381_v22 = vpack.c.bf16 %v527_v26, %v526_v13  ;;  %v536_v13 = vld [vmem:[%s7511_s1 + $0xf50] sm:$0xff]  ;;  %v537_v26 = vld [vmem:[%s7511_s1 + $0xf58] sm:$0xff] }
  0xd4   :  { %4332 = vmatprep.subr.bf16.mxu1 %v4331_v28  ;;  %v4383_v28 = vpack.c.bf16 %v545_v36, %v544_v17  ;;  %v554_v17 = vld [vmem:[%s7511_s1 + $0xfe0] sm:$0xff]  ;;  %v555_v36 = vld [vmem:[%s7511_s1 + $0xfe8] sm:$0xff] }
  0xd5   :  { %4302 = vmatpush3.bf16.msra.mxu0 %v4301_v33  ;;  %v547_v33 = vld [vmem:[%s7511_s1 + $0xfa8] sm:$0xff]  ;;  %v4403_v29 = vpack.c.bf16 %v555_v36, %v554_v17 }
  0xd6   :  { %4304 = vmatprep.subr.bf16.mxu0 %v4303_v37  ;;  %v4353_v37 = vpack.c.bf16 %v497_v27, %v496_v24  ;;  %v4387_v20 = vpack.c.bf16 %v547_v33, %v546_v32  ;;  %v506_v24 = vld [vmem:[%s7511_s1 + $0xe60] sm:$0xff]  ;;  %v507_v27 = vld [vmem:[%s7511_s1 + $0xe68] sm:$0xff] }
  0xd7   :  { %4334 = vmatpush3.bf16.msra.mxu1 %v4333_v34  ;;  %v876_v34 = vcombine.high %v6342_v21, %v6342_v21  ;;  %v2946_v32 = vld [vmem:[%s7512_s2] ss:$0 sm:$0xff] }
  0xd8   :  { %4336 = vmatprep.subr.bf16.mxu1 %v4335_v42  ;;  %v530_v42 = vld [vmem:[%s7511_s1 + $0xf20] sm:$0xff] }
  0xd9   :  { %4306 = vmatpush3.bf16.msra.mxu0 %v4305_v47 }
  0xda   :  { %4308 = vmatprep.subr.bf16.mxu0 %v4307_v50  ;;  %v4359_v50 = vpack.c.bf16 %v517_v44, %v516_v43  ;;  %v508_v43 = vld [vmem:[%s7511_s1 + $0xe70] sm:$0xff]  ;;  %v509_v44 = vld [vmem:[%s7511_s1 + $0xe78] sm:$0xff] }
  0xdb   :  { %4338 = vmatpush3.bf16.msra.mxu1 %v4337_v49 }
  0xdc   :  { %4340 = vmatprep.subr.bf16.mxu1 %v4339_v53  ;;  %v4391_v53 = vpack.c.bf16 %v549_v25, %v548_v45  ;;  %v540_v45 = vld [vmem:[%s7511_s1 + $0xf70] sm:$0xff] }
  0xdd   :  { %4310 = vmatpush3.bf16.msra.mxu0 %v4309_v58  ;;  %v4361_v58 = vpack.c.bf16 %v501_v52, %v500_v51  ;;  %v575_v51 = vld [vmem:[%s7511_s1 + $0x1088] sm:$0xff]  ;;  %v606_v52 = vld [vmem:[%s7511_s1 + $0x1180] sm:$0xff] }
  0xde   :  { %4312 = vmatprep.subr.bf16.mxu0 %v4311_v61  ;;  %v4363_v61 = vpack.c.bf16 %v519_v62, %v518_v55 }
  0xdf   :  { %4342 = vmatpush3.bf16.msra.mxu1 %v4341_v59  ;;  %v4393_v59 = vpack.c.bf16 %v533_v54, %v532_v60  ;;  %v607_v60 = vld [vmem:[%s7511_s1 + $0x1188] sm:$0xff]  ;;  %v4377_v54 = vpack.c.bf16 %v509_v44, %v508_v43 }
  0xe0   :  { %4344 = vmatprep.subr.bf16.mxu1 %v4343_v1  ;;  %v4395_v1 = vpack.c.bf16 %v551_v57, %v550_v56  ;;  %v558_v56 = vld [vmem:[%s7511_s1 + $0x1000] sm:$0xff]  ;;  %v559_v57 = vld [vmem:[%s7511_s1 + $0x1008] sm:$0xff] }
  0xe1   :  { %4314 = vmatpush3.bf16.msra.mxu0 %v4313_v6  ;;  %v4365_v6 = vpack.c.bf16 %v503_v0, %v502_v63  ;;  %v576_v63 = vld [vmem:[%s7511_s1 + $0x1090] sm:$0xff]  ;;  %v577_v0 = vld [vmem:[%s7511_s1 + $0x1098] sm:$0xff] }
  0xe2   :  { %4348 = vmatprep.subr.bf16.mxu0 %v4347_v9  ;;  %v4367_v9 = vpack.c.bf16 %v521_v10, %v520_v3  ;;  %v4413_v3 = vpack.c.bf16 %v559_v57, %v558_v56  ;;  %v6555_v10 = vld [vmem:[%s7510_s0 + $0x88] sm:$0xff] }
  0xe3   :  { %4346 = vmatpush3.bf16.msra.mxu1 %v4345_v7  ;;  %v4397_v7 = vpack.c.bf16 %v535_v2, %v534_v8  ;;  %v608_v8 = vld [vmem:[%s7511_s1 + $0x1190] sm:$0xff]  ;;  %v6550_v2 = vld [vmem:[%s7510_s0 + $0x80] sm:$0xff]  ;;  %v878_v17 = vcombine.high %v6555_v10, %v6555_v10 }
  0xe4   :  { %4380 = vmatprep.subr.bf16.mxu1 %v4379_v14  ;;  %1814 = vmatmul.mubr.f32.vlgmr.msra.gmra.mrb[12].mxu0 %v6129_v46  ;;  %v498_v46 = vld [vmem:[%s7511_s1 + $0xe20] sm:$0xff]  ;;  %v4399_v14 = vpack.c.bf16 %v553_v5, %v552_v4  ;;  %v4415_v5 = vpack.c.bf16 %v577_v0, %v576_v63 }
  0xe5   :  { %4350 = vmatpush3.bf16.msra.mxu0 %v4349_v19  ;;  %1953 = vmatprep.mubr.f32.mxu0 %v875_v31  ;;  %v4357_v47 = vpack.c.bf16 %v499_v41, %v498_v46  ;;  %v4369_v19 = vpack.c.bf16 %v505_v12, %v504_v11  ;;  %v525_v31 = vld [vmem:[%s7511_s1 + $0xef8] sm:$0xff]  ;;  %v4373_v41 = vpack.c.bf16 %v507_v27, %v506_v24  ;;  %v594_v24 = vld [vmem:[%s7511_s1 + $0x1120] sm:$0xff] }
  0xe6   :  { %1884 = vmatmul.mubr.f32.vlgmr.msra.gmra.mrb[12].mxu1 %v6134_v48  ;;  %4352 = vmatprep.subr.bf16.mxu0 %v4351_v23  ;;  %v531_v48 = vld [vmem:[%s7511_s1 + $0xf28] sm:$0xff]  ;;  %v4371_v23 = vpack.c.bf16 %v523_v16, %v522_v15  ;;  %v593_v12 = vld [vmem:[%s7511_s1 + $0x1118] sm:$0xff]  ;;  %v610_v15 = vld [vmem:[%s7511_s1 + $0x11a0] sm:$0xff] }
  0xe7   :  { %4382 = vmatpush3.bf16.msra.mxu1 %v4381_v22  ;;  %2023 = vmatprep.mubr.f32.mxu1 %v876_v34  ;;  %v4389_v49 = vpack.c.bf16 %v531_v48, %v530_v42  ;;  %v4401_v22 = vpack.c.bf16 %v537_v26, %v536_v13  ;;  %v4375_v48 = vpack.c.bf16 %v525_v31, %v524_v38  ;;  %v578_v13 = vld [vmem:[%s7511_s1 + $0x10a0] sm:$0xff]  ;;  %v611_v16 = vld [vmem:[%s7511_s1 + $0x11a8] sm:$0xff]  ;;  %v564_v31 = vld [vmem:[%s7511_s1 + $0x1030] sm:$0xff] }
  0xe8   :  { %4384 = vmatprep.subr.bf16.mxu1 %v4383_v28  ;;  %v877_v26 = vcombine.high %v6550_v2, %v6550_v2  ;;  %v4451_v27 = vpack.c.bf16 %v611_v16, %v610_v15 }
  0xe9   :  { %4354 = vmatpush3.bf16.msra.mxu0 %v4353_v37  ;;  %v556_v37 = vld [vmem:[%s7511_s1 + $0xff0] sm:$0xff] }
  0xea   :  { %4356 = vmatprep.subr.bf16.mxu0 %v4355_v40 }
  0xeb   :  { %4386 = vmatpush3.bf16.msra.mxu1 %v4385_v39  ;;  %v557_v39 = vld [vmem:[%s7511_s1 + $0xff8] sm:$0xff] }
  0xec   :  { %4388 = vmatprep.subr.bf16.mxu1 %v4387_v20  ;;  %v4405_v20 = vpack.c.bf16 %v539_v30, %v538_v35  ;;  %v580_v35 = vld [vmem:[%s7511_s1 + $0x10b0] sm:$0xff]  ;;  %v613_v30 = vld [vmem:[%s7511_s1 + $0x11b8] sm:$0xff] }
  0xed   :  { %4358 = vmatpush3.bf16.msra.mxu0 %v4357_v47  ;;  %v4407_v47 = vpack.c.bf16 %v557_v39, %v556_v37  ;;  %v596_v37 = vld [vmem:[%s7511_s1 + $0x1130] sm:$0xff]  ;;  %v597_v39 = vld [vmem:[%s7511_s1 + $0x1138] sm:$0xff] }
  0xee   :  { %4360 = vmatprep.subr.bf16.mxu0 %v4359_v50  ;;  %v574_v50 = vld [vmem:[%s7511_s1 + $0x1080] sm:$0xff] }
  0xef   :  { %4390 = vmatpush3.bf16.msra.mxu1 %v4389_v49  ;;  %v541_v49 = vld [vmem:[%s7511_s1 + $0xf78] sm:$0xff]  ;;  %v4411_v62 = vpack.c.bf16 %v575_v51, %v574_v50 }
  0xf0   :  { %4392 = vmatprep.subr.bf16.mxu1 %v4391_v53  ;;  %v4409_v55 = vpack.c.bf16 %v541_v49, %v540_v45 }
  0xf1   :  { %4362 = vmatpush3.bf16.msra.mxu0 %v4361_v58  ;;  %v590_v58 = vld [vmem:[%s7511_s1 + $0x1100] sm:$0xff] }
  0xf2   :  { %4364 = vmatprep.subr.bf16.mxu0 %v4363_v61  ;;  %v591_v61 = vld [vmem:[%s7511_s1 + $0x1108] sm:$0xff] }
  0xf3   :  { %4394 = vmatpush3.bf16.msra.mxu1 %v4393_v59  ;;  %v4443_v59 = vpack.c.bf16 %v607_v60, %v606_v52  ;;  %v4445_v4 = vpack.c.bf16 %v591_v61, %v590_v58 }
  0xf4   :  { %4396 = vmatprep.subr.bf16.mxu1 %v4395_v1  ;;  %v609_v1 = vld [vmem:[%s7511_s1 + $0x1198] sm:$0xff] }
  0xf5   :  { %4366 = vmatpush3.bf16.msra.mxu0 %v4365_v6  ;;  %v560_v6 = vld [vmem:[%s7511_s1 + $0x1010] sm:$0xff]  ;;  %v4447_v11 = vpack.c.bf16 %v609_v1, %v608_v8 }
  0xf6   :  { %4368 = vmatprep.subr.bf16.mxu0 %v4367_v9  ;;  %v592_v9 = vld [vmem:[%s7511_s1 + $0x1110] sm:$0xff] }
  0xf7   :  { %4398 = vmatpush3.bf16.msra.mxu1 %v4397_v7  ;;  %v2986_v28 = vpop.f32.mrb[0].mxu0  ;;  %v561_v7 = vld [vmem:[%s7511_s1 + $0x1018] sm:$0xff] }
  0xf8   :  { %4400 = vmatprep.subr.bf16.mxu1 %v4399_v14  ;;  %v2987_v33 = vpop.f32.mrb[1].mxu0  ;;  %v579_v14 = vld [vmem:[%s7511_s1 + $0x10a8] sm:$0xff]  ;;  %v4417_v36 = vpack.c.bf16 %v561_v7, %v560_v6 }
  0xf9   :  { %v3021_v34 = vpop.f32.mrb[0].mxu1  ;;  %v2988_v40 = vadd.f32 %v2987_v33, %v2986_v28  ;;  %4370 = vmatpush3.bf16.msra.mxu0 %v4369_v19  ;;  %v4449_v19 = vpack.c.bf16 %v593_v12, %v592_v9  ;;  %v581_v28 = vld [vmem:[%s7511_s1 + $0x10b8] sm:$0xff] }
  0xfa   :  { %v3022_v46 = vpop.f32.mrb[1].mxu1  ;;  %4372 = vmatprep.subr.bf16.mxu0 %v4371_v23  ;;  %v563_v23 = vld [vmem:[%s7511_s1 + $0x1028] sm:$0xff]  ;;  %v4423_v33 = vpack.c.bf16 %v581_v28, %v580_v35 }
  0xfb   :  { %v3023_v42 = vadd.f32 %v3022_v46, %v3021_v34  ;;  %4402 = vmatpush3.bf16.msra.mxu1 %v4401_v22  ;;  %v976_v25 = vadd.f32 %v2988_v40, %v2946_v32  ;;  %v4419_v22 = vpack.c.bf16 %v579_v14, %v578_v13  ;;  %v565_v34 = vld [vmem:[%s7511_s1 + $0x1038] sm:$0xff]  ;;  %v582_v46 = vld [vmem:[%s7511_s1 + $0x10c0] sm:$0xff] }
  0xfc   :  { %4404 = vmatprep.subr.bf16.mxu1 %v4403_v29  ;;  %v612_v29 = vld [vmem:[%s7511_s1 + $0x11b0] sm:$0xff] }
  0xfd   :  { %v6521_v53 = vadd.f32 %v3023_v42, %v976_v25  ;;  %4374 = vmatpush3.bf16.msra.mxu0 %v4373_v41  ;;  %v4455_v40 = vpack.c.bf16 %v613_v30, %v612_v29  ;;  %v583_v41 = vld [vmem:[%s7511_s1 + $0x10c8] sm:$0xff] }
  0xfe   :  { %4376 = vmatprep.subr.bf16.mxu0 %v4375_v48 }
  0xff   :  { %4406 = vmatpush3.bf16.msra.mxu1 %v4405_v20 }
 0x100   :  { %4408 = vmatprep.subr.bf16.mxu1 %v4407_v47 }
 0x101   :  { %4378 = vmatpush3.bf16.msra.mxu0 %v4377_v54 }
 0x102   :  { %4412 = vmatprep.subr.bf16.mxu0 %v4411_v62 }
 0x103   :  { %4410 = vmatpush3.bf16.msra.mxu1 %v4409_v55 }
 0x104   :  { %4444 = vmatprep.subr.bf16.mxu1 %v4443_v59  ;;  %1954 = vmatmul.mubr.f32.vlgmr.msra.gmra.mrb[14].mxu0 %v6337_v18  ;;  %v562_v18 = vld [vmem:[%s7511_s1 + $0x1020] sm:$0xff] }
 0x105   :  { %4414 = vmatpush3.bf16.msra.mxu0 %v4413_v3  ;;  %2093 = vmatprep.mubr.f32.mxu0 %v877_v26  ;;  %v4421_v38 = vpack.c.bf16 %v563_v23, %v562_v18 }
 0x106   :  { %2024 = vmatmul.mubr.f32.vlgmr.msra.gmra.mrb[14].mxu1 %v6342_v21  ;;  %4416 = vmatprep.subr.bf16.mxu0 %v4415_v5  ;;  %v595_v21 = vld [vmem:[%s7511_s1 + $0x1128] sm:$0xff] }
 0x107   :  { %4446 = vmatpush3.bf16.msra.mxu1 %v4445_v4  ;;  %2163 = vmatprep.mubr.f32.mxu1 %v878_v17  ;;  %v4453_v32 = vpack.c.bf16 %v595_v21, %v594_v24 }
 0x108   :  { %4448 = vmatprep.subr.bf16.mxu1 %v4447_v11 }
 0x109   :  { %4418 = vmatpush3.bf16.msra.mxu0 %v4417_v36 }
 0x10a   :  { %4420 = vmatprep.subr.bf16.mxu0 %v4419_v22 }
 0x10b   :  { %4450 = vmatpush3.bf16.msra.mxu1 %v4449_v19 }
 0x10c   :  { %4452 = vmatprep.subr.bf16.mxu1 %v4451_v27 }
 0x10d   :  { %12 = vsyncpa [#allocation5], 0  ;;  %v614_v42 = vld [vmem:[%s7511_s1 + $0x11c0] sm:$0xff]  ;;  %v615_v20 = vld [vmem:[%s7511_s1 + $0x11c8] sm:$0xff]  ;;  %4422 = vmatpush3.bf16.msra.mxu0 %v4421_v38  ;;  %v4425_v48 = vpack.c.bf16 %v565_v34, %v564_v31  ;;  %v4457_v43 = vpack.c.bf16 %v597_v39, %v596_v37  ;;  %v4427_v44 = vpack.c.bf16 %v583_v41, %v582_v46  ;;  %vm4805_vm0 = vmmov 0   ;;  %s4810_s16 = smov 20  }
 0x10e   :  { %4424 = vmatprep.subr.bf16.mxu0 %v4423_v33  ;;  %v566_v45 = vld [vmem:[%s7511_s1 + $0x1040] sm:$0xff]  ;;  %v567_v25 = vld [vmem:[%s7511_s1 + $0x1048] sm:$0xff]  ;;  %v4459_v49 = vpack.c.bf16 %v615_v20, %v614_v42  ;;  %v584_v51 = vld [vmem:[%s7511_s1 + $0x10d0] sm:$0xff]  ;;  %vm2659_vm1 = vcmask 76800   ;;  %vm2703_vm8 = vcmask 1041408   ;;  %vm2676_vm10 = vcmask 80896  }
 0x10f   :  { %4454 = vmatpush3.bf16.msra.mxu1 %v4453_v32  ;;  %v598_v47 = vld [vmem:[%s7511_s1 + $0x1140] sm:$0xff]  ;;  %v599_v50 = vld [vmem:[%s7511_s1 + $0x1148] sm:$0xff]  ;;  %v585_v52 = vld [vmem:[%s7511_s1 + $0x10d8] sm:$0xff]  ;;  %v4429_v55 = vpack.c.bf16 %v567_v25, %v566_v45  ;;  %s4811_s17 = smov 40   ;;  %s4812_s2 = smov 50   ;;  %vm2842_vm11 = vcmask 1043456  }
 0x110   :  { %4456 = vmatprep.subr.bf16.mxu1 %v4455_v40  ;;  %v616_v60 = vld [vmem:[%s7511_s1 + $0x11d0] sm:$0xff]  ;;  %v617_v54 = vld [vmem:[%s7511_s1 + $0x11d8] sm:$0xff]  ;;  %v4461_v62 = vpack.c.bf16 %v599_v50, %v598_v47  ;;  %v4431_v56 = vpack.c.bf16 %v585_v52, %v584_v51  ;;  %v586_v0 = vld [vmem:[%s7511_s1 + $0x10e0] sm:$0xff]  ;;  %s4813_s18 = smov 60   ;;  %s4814_s27 = smov 70   ;;  %vm2678_vm12 = vcmask 156672  }
 0x111   :  { %4426 = vmatpush3.bf16.msra.mxu0 %v4425_v48  ;;  %v568_v57 = vld [vmem:[%s7511_s1 + $0x1050] sm:$0xff]  ;;  %v569_v58 = vld [vmem:[%s7511_s1 + $0x1058] sm:$0xff]  ;;  %v4463_v61 = vpack.c.bf16 %v617_v54, %v616_v60  ;;  %v587_v8 = vld [vmem:[%s7511_s1 + $0x10e8] sm:$0xff]  ;;  %s4815_s7 = smov 80   ;;  %s4816_s12 = smov 90   ;;  %vm2805_vm13 = vcmask 162816  }
 0x112   :  { %4428 = vmatprep.subr.bf16.mxu0 %v4427_v44  ;;  %v600_v59 = vld [vmem:[%s7511_s1 + $0x1150] sm:$0xff]  ;;  %v601_v63 = vld [vmem:[%s7511_s1 + $0x1158] sm:$0xff]  ;;  %v618_v1 = vld [vmem:[%s7511_s1 + $0x11e0] sm:$0xff]  ;;  %v4433_v4 = vpack.c.bf16 %v569_v58, %v568_v57  ;;  %v4435_v6 = vpack.c.bf16 %v587_v8, %v586_v0  ;;  %vm2807_vm14 = vcmask 244736   ;;  %vm2809_vm15 = vcmask 326656  }
 0x113   :  { %4458 = vmatpush3.bf16.msra.mxu1 %v4457_v43  ;;  %v619_v3 = vld [vmem:[%s7511_s1 + $0x11e8] sm:$0xff]  ;;  %v4465_v5 = vpack.c.bf16 %v601_v63, %v600_v59  ;;  %v570_v7 = vld [vmem:[%s7511_s1 + $0x1060] sm:$0xff]  ;;  %v588_v26 = vld [vmem:[%s7511_s1 + $0x10f0] sm:$0xff] }
 0x114   :  { %4460 = vmatprep.subr.bf16.mxu1 %v4459_v49  ;;  %v571_v9 = vld [vmem:[%s7511_s1 + $0x1068] sm:$0xff]  ;;  %v602_v11 = vld [vmem:[%s7511_s1 + $0x1160] sm:$0xff]  ;;  %v4467_v13 = vpack.c.bf16 %v619_v3, %v618_v1  ;;  %v589_v15 = vld [vmem:[%s7511_s1 + $0x10f8] sm:$0xff] }
 0x115   :  { %4430 = vmatpush3.bf16.msra.mxu0 %v4429_v55  ;;  %v603_v14 = vld [vmem:[%s7511_s1 + $0x1168] sm:$0xff]  ;;  %v620_v36 = vld [vmem:[%s7511_s1 + $0x11f0] sm:$0xff]  ;;  %v621_v19 = vld [vmem:[%s7511_s1 + $0x11f8] sm:$0xff]  ;;  %v4437_v23 = vpack.c.bf16 %v571_v9, %v570_v7  ;;  %v4439_v21 = vpack.c.bf16 %v589_v15, %v588_v26 }
 0x116   :  { %4432 = vmatprep.subr.bf16.mxu0 %v4431_v56  ;;  %v4469_v27 = vpack.c.bf16 %v603_v14, %v602_v11  ;;  %v572_v35 = vld [vmem:[%s7511_s1 + $0x1070] sm:$0xff]  ;;  %v573_v28 = vld [vmem:[%s7511_s1 + $0x1078] sm:$0xff]  ;;  %v4471_v38 = vpack.c.bf16 %v621_v19, %v620_v36  ;;  %v638_v32 = vld [vmem:[%s7511_s1 + $0x1280] sm:$0xff] }
 0x117   :  { %4462 = vmatpush3.bf16.msra.mxu1 %v4461_v62  ;;  %v3056_v12 = vpop.f32.mrb[2].mxu0  ;;  %v604_v29 = vld [vmem:[%s7511_s1 + $0x1170] sm:$0xff]  ;;  %v605_v31 = vld [vmem:[%s7511_s1 + $0x1178] sm:$0xff]  ;;  %v639_v33 = vld [vmem:[%s7511_s1 + $0x1288] sm:$0xff]  ;;  %v4441_v39 = vpack.c.bf16 %v573_v28, %v572_v35 }
 0x118   :  { %4464 = vmatprep.subr.bf16.mxu1 %v4463_v61  ;;  %v3057_v16 = vpop.f32.mrb[3].mxu0  ;;  %v670_v34 = vld [vmem:[%s7511_s1 + $0x1380] sm:$0xff]  ;;  %v4473_v40 = vpack.c.bf16 %v605_v31, %v604_v29  ;;  %v4475_v46 = vpack.c.bf16 %v639_v33, %v638_v32  ;;  %v623_v42 = vld [vmem:[%s7511_s1 + $0x1208] sm:$0xff]  ;;  %v640_v44 = vld [vmem:[%s7511_s1 + $0x1290] sm:$0xff] }
 0x119   :  { %v3091_v17 = vpop.f32.mrb[2].mxu1  ;;  %v3058_v22 = vadd.f32 %v3057_v16, %v3056_v12  ;;  %4434 = vmatpush3.bf16.msra.mxu0 %v4433_v4  ;;  %v622_v41 = vld [vmem:[%s7511_s1 + $0x1200] sm:$0xff]  ;;  %v655_v43 = vld [vmem:[%s7511_s1 + $0x1308] sm:$0xff]  ;;  %v641_v45 = vld [vmem:[%s7511_s1 + $0x1298] sm:$0xff] }
 0x11a   :  { %v3092_v18 = vpop.f32.mrb[3].mxu1  ;;  %4436 = vmatprep.subr.bf16.mxu0 %v4435_v6  ;;  %v654_v20 = vld [vmem:[%s7511_s1 + $0x1300] sm:$0xff]  ;;  %v672_v25 = vld [vmem:[%s7511_s1 + $0x1390] sm:$0xff]  ;;  %v673_v47 = vld [vmem:[%s7511_s1 + $0x1398] sm:$0xff]  ;;  %v4477_v50 = vpack.c.bf16 %v623_v42, %v622_v41  ;;  %v4479_v60 = vpack.c.bf16 %v641_v45, %v640_v44 }
 0x11b   :  { %v3093_v24 = vadd.f32 %v3092_v18, %v3091_v17  ;;  %4466 = vmatpush3.bf16.msra.mxu1 %v4465_v5  ;;  %v1116_v30 = vadd.f32 %v3058_v22, %v6521_v53  ;;  %v671_v53 = vld [vmem:[%s7511_s1 + $0x1388] sm:$0xff]  ;;  %v6761_v49 = vld [vmem:[%s7510_s0 + $0x90] sm:$0xff]  ;;  %v6766_v51 = vld [vmem:[%s7510_s0 + $0x98] sm:$0xff]  ;;  %v4509_v52 = vpack.c.bf16 %v655_v43, %v654_v20  ;;  %v4511_v56 = vpack.c.bf16 %v673_v47, %v672_v25 }
 0x11c   :  { %4468 = vmatprep.subr.bf16.mxu1 %v4467_v13  ;;  %v4507_v48 = vpack.c.bf16 %v671_v53, %v670_v34  ;;  %v624_v54 = vld [vmem:[%s7511_s1 + $0x1210] sm:$0xff]  ;;  %v625_v55 = vld [vmem:[%s7511_s1 + $0x1218] sm:$0xff]  ;;  %v642_v58 = vld [vmem:[%s7511_s1 + $0x12a0] sm:$0xff]  ;;  %v879_v61 = vcombine.high %v6761_v49, %v6761_v49  ;;  %v880_v8 = vcombine.high %v6766_v51, %v6766_v51 }
 0x11d   :  { %v6732_v37 = vadd.f32 %v3093_v24, %v1116_v30  ;;  %4438 = vmatpush3.bf16.msra.mxu0 %v4437_v23  ;;  %v656_v62 = vld [vmem:[%s7511_s1 + $0x1310] sm:$0xff]  ;;  %v657_v57 = vld [vmem:[%s7511_s1 + $0x1318] sm:$0xff]  ;;  %v643_v59 = vld [vmem:[%s7511_s1 + $0x12a8] sm:$0xff]  ;;  %v4481_v1 = vpack.c.bf16 %v625_v55, %v624_v54 }
 0x11e   :  { %4440 = vmatprep.subr.bf16.mxu0 %v4439_v21  ;;  %v674_v63 = vld [vmem:[%s7511_s1 + $0x13a0] sm:$0xff]  ;;  %v675_v0 = vld [vmem:[%s7511_s1 + $0x13a8] sm:$0xff]  ;;  %v4513_v3 = vpack.c.bf16 %v657_v57, %v656_v62  ;;  %v4483_v4 = vpack.c.bf16 %v643_v59, %v642_v58  ;;  %v644_v9 = vld [vmem:[%s7511_s1 + $0x12b0] sm:$0xff] }
 0x11f   :  { %4470 = vmatpush3.bf16.msra.mxu1 %v4469_v27  ;;  %v627_v5 = vld [vmem:[%s7511_s1 + $0x1228] sm:$0xff]  ;;  %v658_v6 = vld [vmem:[%s7511_s1 + $0x1320] sm:$0xff]  ;;  %v4515_v7 = vpack.c.bf16 %v675_v0, %v674_v63  ;;  %v645_v11 = vld [vmem:[%s7511_s1 + $0x12b8] sm:$0xff] }
 0x120   :  { %4472 = vmatprep.subr.bf16.mxu1 %v4471_v38  ;;  %v676_v12 = vld [vmem:[%s7511_s1 + $0x13b0] sm:$0xff]  ;;  %v677_v13 = vld [vmem:[%s7511_s1 + $0x13b8] sm:$0xff]  ;;  %v4487_v15 = vpack.c.bf16 %v645_v11, %v644_v9  ;;  %v646_v18 = vld [vmem:[%s7511_s1 + $0x12c0] sm:$0xff] }
 0x121   :  { %4442 = vmatpush3.bf16.msra.mxu0 %v4441_v39  ;;  %v628_v16 = vld [vmem:[%s7511_s1 + $0x1230] sm:$0xff]  ;;  %v629_v17 = vld [vmem:[%s7511_s1 + $0x1238] sm:$0xff]  ;;  %v4519_v19 = vpack.c.bf16 %v677_v13, %v676_v12  ;;  %v647_v23 = vld [vmem:[%s7511_s1 + $0x12c8] sm:$0xff] }
 0x122   :  { %4476 = vmatprep.subr.bf16.mxu0 %v4475_v46  ;;  %v660_v36 = vld [vmem:[%s7511_s1 + $0x1330] sm:$0xff]  ;;  %v661_v22 = vld [vmem:[%s7511_s1 + $0x1338] sm:$0xff]  ;;  %v678_v24 = vld [vmem:[%s7511_s1 + $0x13c0] sm:$0xff]  ;;  %v4489_v21 = vpack.c.bf16 %v629_v17, %v628_v16  ;;  %v4491_v28 = vpack.c.bf16 %v647_v23, %v646_v18 }
 0x123   :  { %4474 = vmatpush3.bf16.msra.mxu1 %v4473_v40  ;;  %v679_v27 = vld [vmem:[%s7511_s1 + $0x13c8] sm:$0xff]  ;;  %v4521_v35 = vpack.c.bf16 %v661_v22, %v660_v36  ;;  %v630_v29 = vld [vmem:[%s7511_s1 + $0x1240] sm:$0xff]  ;;  %v648_v33 = vld [vmem:[%s7511_s1 + $0x12d0] sm:$0xff] }
 0x124   :  { %4508 = vmatprep.subr.bf16.mxu1 %v4507_v48  ;;  %2094 = vmatmul.mubr.f32.vlgmr.msra.gmra.mrb[16].mxu0 %v6550_v2  ;;  %v626_v2 = vld [vmem:[%s7511_s1 + $0x1220] sm:$0xff]  ;;  %v631_v30 = vld [vmem:[%s7511_s1 + $0x1248] sm:$0xff]  ;;  %v4523_v31 = vpack.c.bf16 %v679_v27, %v678_v24  ;;  %v649_v34 = vld [vmem:[%s7511_s1 + $0x12d8] sm:$0xff] }
 0x125   :  { %4478 = vmatpush3.bf16.msra.mxu0 %v4477_v50  ;;  %2233 = vmatprep.mubr.f32.mxu0 %v879_v61  ;;  %v4485_v14 = vpack.c.bf16 %v627_v5, %v626_v2  ;;  %v662_v38 = vld [vmem:[%s7511_s1 + $0x1340] sm:$0xff]  ;;  %v663_v32 = vld [vmem:[%s7511_s1 + $0x1348] sm:$0xff]  ;;  %v680_v53 = vld [vmem:[%s7511_s1 + $0x13d0] sm:$0xff]  ;;  %v4493_v40 = vpack.c.bf16 %v631_v30, %v630_v29  ;;  %v4495_v41 = vpack.c.bf16 %v649_v34, %v648_v33 }
 0x126   :  { %2164 = vmatmul.mubr.f32.vlgmr.msra.gmra.mrb[16].mxu1 %v6555_v10  ;;  %4480 = vmatprep.subr.bf16.mxu0 %v4479_v60  ;;  %v659_v10 = vld [vmem:[%s7511_s1 + $0x1328] sm:$0xff]  ;;  %v681_v39 = vld [vmem:[%s7511_s1 + $0x13d8] sm:$0xff]  ;;  %v4525_v46 = vpack.c.bf16 %v663_v32, %v662_v38  ;;  %v632_v42 = vld [vmem:[%s7511_s1 + $0x1250] sm:$0xff] }
 0x127   :  { %4510 = vmatpush3.bf16.msra.mxu1 %v4509_v52  ;;  %2303 = vmatprep.mubr.f32.mxu1 %v880_v8  ;;  %v4517_v26 = vpack.c.bf16 %v659_v10, %v658_v6  ;;  %v633_v20 = vld [vmem:[%s7511_s1 + $0x1258] sm:$0xff]  ;;  %v664_v48 = vld [vmem:[%s7511_s1 + $0x1350] sm:$0xff]  ;;  %v4527_v43 = vpack.c.bf16 %v681_v39, %v680_v53  ;;  %v650_v45 = vld [vmem:[%s7511_s1 + $0x12e0] sm:$0xff] }
 0x128   :  { %4512 = vmatprep.subr.bf16.mxu1 %v4511_v56  ;;  %v665_v44 = vld [vmem:[%s7511_s1 + $0x1358] sm:$0xff]  ;;  %v651_v25 = vld [vmem:[%s7511_s1 + $0x12e8] sm:$0xff]  ;;  %v682_v47 = vld [vmem:[%s7511_s1 + $0x13e0] sm:$0xff]  ;;  %v4497_v52 = vpack.c.bf16 %v633_v20, %v632_v42 }
 0x129   :  { %4482 = vmatpush3.bf16.msra.mxu0 %v4481_v1  ;;  %v683_v50 = vld [vmem:[%s7511_s1 + $0x13e8] sm:$0xff]  ;;  %v4529_v60 = vpack.c.bf16 %v665_v44, %v664_v48  ;;  %v4499_v54 = vpack.c.bf16 %v651_v25, %v650_v45  ;;  %v634_v55 = vld [vmem:[%s7511_s1 + $0x1260] sm:$0xff]  ;;  %v652_v61 = vld [vmem:[%s7511_s1 + $0x12f0] sm:$0xff] }
 0x12a   :  { %4484 = vmatprep.subr.bf16.mxu0 %v4483_v4  ;;  %v635_v62 = vld [vmem:[%s7511_s1 + $0x1268] sm:$0xff]  ;;  %v666_v56 = vld [vmem:[%s7511_s1 + $0x1360] sm:$0xff]  ;;  %v4531_v58 = vpack.c.bf16 %v683_v50, %v682_v47  ;;  %v653_v63 = vld [vmem:[%s7511_s1 + $0x12f8] sm:$0xff] }
 0x12b   :  { %4514 = vmatpush3.bf16.msra.mxu1 %v4513_v3  ;;  %v667_v59 = vld [vmem:[%s7511_s1 + $0x1368] sm:$0xff]  ;;  %v684_v1 = vld [vmem:[%s7511_s1 + $0x13f0] sm:$0xff]  ;;  %v685_v3 = vld [vmem:[%s7511_s1 + $0x13f8] sm:$0xff]  ;;  %v4501_v5 = vpack.c.bf16 %v635_v62, %v634_v55  ;;  %v4503_v10 = vpack.c.bf16 %v653_v63, %v652_v61 }
 0x12c   :  { %4516 = vmatprep.subr.bf16.mxu1 %v4515_v7  ;;  %v4533_v7 = vpack.c.bf16 %v667_v59, %v666_v56  ;;  %v636_v9 = vld [vmem:[%s7511_s1 + $0x1270] sm:$0xff]  ;;  %v637_v11 = vld [vmem:[%s7511_s1 + $0x1278] sm:$0xff]  ;;  %v703_v16 = vld [vmem:[%s7511_s1 + $0x1488] sm:$0xff] }
 0x12d   :  { %4486 = vmatpush3.bf16.msra.mxu0 %v4485_v14  ;;  %v668_v12 = vld [vmem:[%s7511_s1 + $0x1370] sm:$0xff]  ;;  %v4535_v14 = vpack.c.bf16 %v685_v3, %v684_v1  ;;  %v734_v17 = vld [vmem:[%s7511_s1 + $0x1580] sm:$0xff]  ;;  %v687_v24 = vld [vmem:[%s7511_s1 + $0x1408] sm:$0xff] }
 0x12e   :  { %4488 = vmatprep.subr.bf16.mxu0 %v4487_v15  ;;  %v702_v15 = vld [vmem:[%s7511_s1 + $0x1480] sm:$0xff]  ;;  %v705_v29 = vld [vmem:[%s7511_s1 + $0x1498] sm:$0xff]  ;;  %v736_v30 = vld [vmem:[%s7511_s1 + $0x1590] sm:$0xff] }
 0x12f   :  { %4518 = vmatpush3.bf16.msra.mxu1 %v4517_v26  ;;  %v669_v26 = vld [vmem:[%s7511_s1 + $0x1378] sm:$0xff]  ;;  %v4539_v18 = vpack.c.bf16 %v703_v16, %v702_v15  ;;  %v686_v23 = vld [vmem:[%s7511_s1 + $0x1400] sm:$0xff]  ;;  %v6977_v33 = vld [vmem:[%s7510_s0 + $0xa8] sm:$0xff] }
 0x130   :  { %4520 = vmatprep.subr.bf16.mxu1 %v4519_v19  ;;  %v4505_v19 = vpack.c.bf16 %v637_v11, %v636_v9  ;;  %v4537_v22 = vpack.c.bf16 %v669_v26, %v668_v12  ;;  %v718_v27 = vld [vmem:[%s7511_s1 + $0x1500] sm:$0xff]  ;;  %v737_v38 = vld [vmem:[%s7511_s1 + $0x1598] sm:$0xff]  ;;  %v4541_v32 = vpack.c.bf16 %v687_v24, %v686_v23  ;;  %v688_v39 = vld [vmem:[%s7511_s1 + $0x1410] sm:$0xff]  ;;  %v882_v25 = vcombine.high %v6977_v33, %v6977_v33 }
 0x131   :  { %4490 = vmatpush3.bf16.msra.mxu0 %v4489_v21  ;;  %v721_v42 = vld [vmem:[%s7511_s1 + $0x1518] sm:$0xff]  ;;  %v706_v20 = vld [vmem:[%s7511_s1 + $0x14a0] sm:$0xff]  ;;  %v707_v48 = vld [vmem:[%s7511_s1 + $0x14a8] sm:$0xff] }
 0x132   :  { %4492 = vmatprep.subr.bf16.mxu0 %v4491_v28  ;;  %v704_v28 = vld [vmem:[%s7511_s1 + $0x1490] sm:$0xff]  ;;  %v738_v44 = vld [vmem:[%s7511_s1 + $0x15a0] sm:$0xff]  ;;  %v739_v45 = vld [vmem:[%s7511_s1 + $0x15a8] sm:$0xff] }
 0x133   :  { %4522 = vmatpush3.bf16.msra.mxu1 %v4521_v35  ;;  %v719_v35 = vld [vmem:[%s7511_s1 + $0x1508] sm:$0xff]  ;;  %v4543_v53 = vpack.c.bf16 %v705_v29, %v704_v28  ;;  %v4579_v55 = vpack.c.bf16 %v739_v45, %v738_v44  ;;  %v708_v62 = vld [vmem:[%s7511_s1 + $0x14b0] sm:$0xff]  ;;  %v709_v56 = vld [vmem:[%s7511_s1 + $0x14b8] sm:$0xff] }
 0x134   :  { %4524 = vmatprep.subr.bf16.mxu1 %v4523_v31  ;;  %v6972_v31 = vld [vmem:[%s7510_s0 + $0xa0] sm:$0xff]  ;;  %v4573_v34 = vpack.c.bf16 %v719_v35, %v718_v27  ;;  %v4551_v63 = vpack.c.bf16 %v709_v56, %v708_v62  ;;  %v724_v1 = vld [vmem:[%s7511_s1 + $0x1530] sm:$0xff]  ;;  %v727_v15 = vld [vmem:[%s7511_s1 + $0x1548] sm:$0xff] }
 0x135   :  { %4494 = vmatpush3.bf16.msra.mxu0 %v4493_v40  ;;  %v689_v40 = vld [vmem:[%s7511_s1 + $0x1418] sm:$0xff]  ;;  %v694_v12 = vld [vmem:[%s7511_s1 + $0x1440] sm:$0xff]  ;;  %v712_v16 = vld [vmem:[%s7511_s1 + $0x14d0] sm:$0xff] }
 0x136   :  { %4496 = vmatprep.subr.bf16.mxu0 %v4495_v41  ;;  %v4575_v41 = vpack.c.bf16 %v737_v38, %v736_v30  ;;  %v4545_v47 = vpack.c.bf16 %v689_v40, %v688_v39  ;;  %v696_v24 = vld [vmem:[%s7511_s1 + $0x1450] sm:$0xff]  ;;  %v697_v27 = vld [vmem:[%s7511_s1 + $0x1458] sm:$0xff]  ;;  %v714_v29 = vld [vmem:[%s7511_s1 + $0x14e0] sm:$0xff] }
 0x137   :  { %4526 = vmatpush3.bf16.msra.mxu1 %v4525_v46  ;;  %v3126_v57 = vpop.f32.mrb[4].mxu0  ;;  %v720_v46 = vld [vmem:[%s7511_s1 + $0x1510] sm:$0xff]  ;;  %v729_v28 = vld [vmem:[%s7511_s1 + $0x1558] sm:$0xff]  ;;  %v715_v30 = vld [vmem:[%s7511_s1 + $0x14e8] sm:$0xff] }
 0x138   :  { %4528 = vmatprep.subr.bf16.mxu1 %v4527_v43  ;;  %v3127_v0 = vpop.f32.mrb[5].mxu0  ;;  %v881_v43 = vcombine.high %v6972_v31, %v6972_v31  ;;  %v4577_v50 = vpack.c.bf16 %v721_v42, %v720_v46  ;;  %v746_v38 = vld [vmem:[%s7511_s1 + $0x15e0] sm:$0xff]  ;;  %v4563_v39 = vpack.c.bf16 %v715_v30, %v714_v29  ;;  %v699_v46 = vld [vmem:[%s7511_s1 + $0x1468] sm:$0xff]  ;;  %v717_v44 = vld [vmem:[%s7511_s1 + $0x14f8] sm:$0xff] }
 0x139   :  { %v3161_v8 = vpop.f32.mrb[4].mxu1  ;;  %v3128_v4 = vadd.f32 %v3127_v0, %v3126_v57  ;;  %4498 = vmatpush3.bf16.msra.mxu0 %v4497_v52  ;;  %v4547_v52 = vpack.c.bf16 %v707_v48, %v706_v20  ;;  %v740_v57 = vld [vmem:[%s7511_s1 + $0x15b0] sm:$0xff]  ;;  %v698_v40 = vld [vmem:[%s7511_s1 + $0x1460] sm:$0xff]  ;;  %v731_v48 = vld [vmem:[%s7511_s1 + $0x1568] sm:$0xff] }
 0x13a   :  { %v3162_v2 = vpop.f32.mrb[5].mxu1  ;;  %4500 = vmatprep.subr.bf16.mxu0 %v4499_v54  ;;  %v722_v54 = vld [vmem:[%s7511_s1 + $0x1520] sm:$0xff]  ;;  %v692_v0 = vld [vmem:[%s7511_s1 + $0x1430] sm:$0xff]  ;;  %v701_v56 = vld [vmem:[%s7511_s1 + $0x1478] sm:$0xff] }
 0x13b   :  { %v3163_v6 = vadd.f32 %v3162_v2, %v3161_v8  ;;  %4530 = vmatpush3.bf16.msra.mxu1 %v4529_v60  ;;  %v1256_v13 = vadd.f32 %v3128_v4, %v6732_v37  ;;  %v735_v37 = vld [vmem:[%s7511_s1 + $0x1588] sm:$0xff]  ;;  %v693_v8 = vld [vmem:[%s7511_s1 + $0x1438] sm:$0xff]  ;;  %v710_v2 = vld [vmem:[%s7511_s1 + $0x14c0] sm:$0xff] }
 0x13c   :  { %4532 = vmatprep.subr.bf16.mxu1 %v4531_v58  ;;  %v4571_v21 = vpack.c.bf16 %v735_v37, %v734_v17  ;;  %v691_v60 = vld [vmem:[%s7511_s1 + $0x1428] sm:$0xff]  ;;  %v741_v58 = vld [vmem:[%s7511_s1 + $0x15b8] sm:$0xff]  ;;  %v744_v37 = vld [vmem:[%s7511_s1 + $0x15d0] sm:$0xff] }
 0x13d   :  { %v6943_v36 = vadd.f32 %v3163_v6, %v1256_v13  ;;  %4502 = vmatpush3.bf16.msra.mxu0 %v4501_v5  ;;  %v4583_v3 = vpack.c.bf16 %v741_v58, %v740_v57  ;;  %v725_v4 = vld [vmem:[%s7511_s1 + $0x1538] sm:$0xff]  ;;  %v711_v5 = vld [vmem:[%s7511_s1 + $0x14c8] sm:$0xff]  ;;  %v742_v6 = vld [vmem:[%s7511_s1 + $0x15c0] sm:$0xff] }
 0x13e   :  { %4504 = vmatprep.subr.bf16.mxu0 %v4503_v10  ;;  %v4553_v10 = vpack.c.bf16 %v693_v8, %v692_v0  ;;  %v4585_v9 = vpack.c.bf16 %v725_v4, %v724_v1  ;;  %v4555_v11 = vpack.c.bf16 %v711_v5, %v710_v2  ;;  %v695_v13 = vld [vmem:[%s7511_s1 + $0x1448] sm:$0xff]  ;;  %v713_v17 = vld [vmem:[%s7511_s1 + $0x14d8] sm:$0xff]  ;;  %v700_v62 = vld [vmem:[%s7511_s1 + $0x1470] sm:$0xff] }
 0x13f   :  { %4534 = vmatpush3.bf16.msra.mxu1 %v4533_v7  ;;  %v743_v7 = vld [vmem:[%s7511_s1 + $0x15c8] sm:$0xff]  ;;  %v4559_v23 = vpack.c.bf16 %v713_v17, %v712_v16  ;;  %v732_v57 = vld [vmem:[%s7511_s1 + $0x1570] sm:$0xff]  ;;  %v798_v8 = vld [vmem:[%s7511_s1 + $0x1780] sm:$0xff] }
 0x140   :  { %4536 = vmatprep.subr.bf16.mxu1 %v4535_v14  ;;  %v726_v14 = vld [vmem:[%s7511_s1 + $0x1540] sm:$0xff]  ;;  %v4587_v26 = vpack.c.bf16 %v743_v7, %v742_v6  ;;  %v767_v0 = vld [vmem:[%s7511_s1 + $0x1688] sm:$0xff]  ;;  %v7188_v16 = vld [vmem:[%s7510_s0 + $0xb8] sm:$0xff] }
 0x141   :  { %4506 = vmatpush3.bf16.msra.mxu0 %v4505_v19  ;;  %v745_v19 = vld [vmem:[%s7511_s1 + $0x15d8] sm:$0xff]  ;;  %v750_v5 = vld [vmem:[%s7511_s1 + $0x1600] sm:$0xff]  ;;  %v751_v6 = vld [vmem:[%s7511_s1 + $0x1608] sm:$0xff]  ;;  %v884_v30 = vcombine.high %v7188_v16, %v7188_v16 }
 0x142   :  { %4540 = vmatprep.subr.bf16.mxu0 %v4539_v18  ;;  %v4589_v18 = vpack.c.bf16 %v727_v15, %v726_v14  ;;  %v4591_v35 = vpack.c.bf16 %v745_v19, %v744_v37  ;;  %v782_v7 = vld [vmem:[%s7511_s1 + $0x1700] sm:$0xff]  ;;  %v801_v14 = vld [vmem:[%s7511_s1 + $0x1798] sm:$0xff]  ;;  %v4605_v15 = vpack.c.bf16 %v751_v6, %v750_v5  ;;  %v752_v19 = vld [vmem:[%s7511_s1 + $0x1610] sm:$0xff] }
 0x143   :  { %4538 = vmatpush3.bf16.msra.mxu1 %v4537_v22  ;;  %v4557_v22 = vpack.c.bf16 %v695_v13, %v694_v12  ;;  %v769_v12 = vld [vmem:[%s7511_s1 + $0x1698] sm:$0xff]  ;;  %v800_v13 = vld [vmem:[%s7511_s1 + $0x1790] sm:$0xff]  ;;  %v803_v29 = vld [vmem:[%s7511_s1 + $0x17a8] sm:$0xff] }
 0x144   :  { %4572 = vmatprep.subr.bf16.mxu1 %v4571_v21  ;;  %2234 = vmatmul.mubr.f32.vlgmr.msra.gmra.mrb[18].mxu0 %v6761_v49  ;;  %v690_v49 = vld [vmem:[%s7511_s1 + $0x1420] sm:$0xff]  ;;  %v728_v21 = vld [vmem:[%s7511_s1 + $0x1550] sm:$0xff] }
 0x145   :  { %4542 = vmatpush3.bf16.msra.mxu0 %v4541_v32  ;;  %2373 = vmatprep.mubr.f32.mxu0 %v881_v43  ;;  %v4549_v59 = vpack.c.bf16 %v691_v60, %v690_v49  ;;  %v747_v32 = vld [vmem:[%s7511_s1 + $0x15e8] sm:$0xff]  ;;  %v716_v43 = vld [vmem:[%s7511_s1 + $0x14f0] sm:$0xff]  ;;  %v4565_v60 = vpack.c.bf16 %v699_v46, %v698_v40 }
 0x146   :  { %2304 = vmatmul.mubr.f32.vlgmr.msra.gmra.mrb[18].mxu1 %v6766_v51  ;;  %4544 = vmatprep.subr.bf16.mxu0 %v4543_v53  ;;  %v723_v51 = vld [vmem:[%s7511_s1 + $0x1528] sm:$0xff]  ;;  %v4593_v53 = vpack.c.bf16 %v729_v28, %v728_v21  ;;  %v4595_v20 = vpack.c.bf16 %v747_v32, %v746_v38  ;;  %v802_v28 = vld [vmem:[%s7511_s1 + $0x17a0] sm:$0xff]  ;;  %v772_v46 = vld [vmem:[%s7511_s1 + $0x16b0] sm:$0xff] }
 0x147   :  { %4574 = vmatpush3.bf16.msra.mxu1 %v4573_v34  ;;  %2443 = vmatprep.mubr.f32.mxu1 %v882_v25  ;;  %v4581_v61 = vpack.c.bf16 %v723_v51, %v722_v54  ;;  %v4561_v34 = vpack.c.bf16 %v697_v27, %v696_v24  ;;  %v4567_v51 = vpack.c.bf16 %v717_v44, %v716_v43  ;;  %v785_v24 = vld [vmem:[%s7511_s1 + $0x1718] sm:$0xff]  ;;  %v770_v27 = vld [vmem:[%s7511_s1 + $0x16a0] sm:$0xff]  ;;  %v771_v21 = vld [vmem:[%s7511_s1 + $0x16a8] sm:$0xff] }
 0x148   :  { %4576 = vmatprep.subr.bf16.mxu1 %v4575_v41  ;;  %v730_v41 = vld [vmem:[%s7511_s1 + $0x1560] sm:$0xff]  ;;  %v4643_v40 = vpack.c.bf16 %v803_v29, %v802_v28  ;;  %v760_v6 = vld [vmem:[%s7511_s1 + $0x1650] sm:$0xff]  ;;  %v781_v28 = vld [vmem:[%s7511_s1 + $0x16f8] sm:$0xff] }
 0x149   :  { %4546 = vmatpush3.bf16.msra.mxu0 %v4545_v47  ;;  %v748_v47 = vld [vmem:[%s7511_s1 + $0x15f0] sm:$0xff] }
 0x14a   :  { %4548 = vmatprep.subr.bf16.mxu0 %v4547_v52 }
 0x14b   :  { %4578 = vmatpush3.bf16.msra.mxu1 %v4577_v50  ;;  %v749_v50 = vld [vmem:[%s7511_s1 + $0x15f8] sm:$0xff] }
 0x14c   :  { %4580 = vmatprep.subr.bf16.mxu1 %v4579_v55  ;;  %v4597_v55 = vpack.c.bf16 %v731_v48, %v730_v41  ;;  %v773_v41 = vld [vmem:[%s7511_s1 + $0x16b8] sm:$0xff] }
 0x14d   :  { %4550 = vmatpush3.bf16.msra.mxu0 %v4549_v59  ;;  %v4599_v59 = vpack.c.bf16 %v749_v50, %v748_v47  ;;  %v4615_v44 = vpack.c.bf16 %v773_v41, %v772_v46  ;;  %v788_v47 = vld [vmem:[%s7511_s1 + $0x1730] sm:$0xff]  ;;  %v765_v41 = vld [vmem:[%s7511_s1 + $0x1678] sm:$0xff] }
 0x14e   :  { %4552 = vmatprep.subr.bf16.mxu0 %v4551_v63  ;;  %v766_v63 = vld [vmem:[%s7511_s1 + $0x1680] sm:$0xff]  ;;  %v764_v46 = vld [vmem:[%s7511_s1 + $0x1670] sm:$0xff] }
 0x14f   :  { %4582 = vmatpush3.bf16.msra.mxu1 %v4581_v61  ;;  %v733_v61 = vld [vmem:[%s7511_s1 + $0x1578] sm:$0xff]  ;;  %v4603_v2 = vpack.c.bf16 %v767_v0, %v766_v63  ;;  %v791_v63 = vld [vmem:[%s7511_s1 + $0x1748] sm:$0xff]  ;;  %v776_v0 = vld [vmem:[%s7511_s1 + $0x16d0] sm:$0xff] }
 0x150   :  { %4584 = vmatprep.subr.bf16.mxu1 %v4583_v3  ;;  %v4569_v3 = vpack.c.bf16 %v701_v56, %v700_v62  ;;  %v4601_v4 = vpack.c.bf16 %v733_v61, %v732_v57  ;;  %v758_v57 = vld [vmem:[%s7511_s1 + $0x1640] sm:$0xff] }
 0x151   :  { %4554 = vmatpush3.bf16.msra.mxu0 %v4553_v10 }
 0x152   :  { %4556 = vmatprep.subr.bf16.mxu0 %v4555_v11  ;;  %v768_v11 = vld [vmem:[%s7511_s1 + $0x1690] sm:$0xff] }
 0x153   :  { %4586 = vmatpush3.bf16.msra.mxu1 %v4585_v9  ;;  %v783_v9 = vld [vmem:[%s7511_s1 + $0x1708] sm:$0xff]  ;;  %v4607_v37 = vpack.c.bf16 %v769_v12, %v768_v11  ;;  %v793_v11 = vld [vmem:[%s7511_s1 + $0x1758] sm:$0xff]  ;;  %v778_v12 = vld [vmem:[%s7511_s1 + $0x16e0] sm:$0xff] }
 0x154   :  { %4588 = vmatprep.subr.bf16.mxu1 %v4587_v26  ;;  %v7183_v26 = vld [vmem:[%s7510_s0 + $0xb0] sm:$0xff]  ;;  %v4637_v17 = vpack.c.bf16 %v783_v9, %v782_v7  ;;  %v761_v7 = vld [vmem:[%s7511_s1 + $0x1658] sm:$0xff] }
 0x155   :  { %4558 = vmatpush3.bf16.msra.mxu0 %v4557_v22  ;;  %v753_v22 = vld [vmem:[%s7511_s1 + $0x1618] sm:$0xff] }
 0x156   :  { %4560 = vmatprep.subr.bf16.mxu0 %v4559_v23  ;;  %v4639_v23 = vpack.c.bf16 %v801_v14, %v800_v13  ;;  %v4609_v38 = vpack.c.bf16 %v753_v22, %v752_v19  ;;  %v779_v13 = vld [vmem:[%s7511_s1 + $0x16e8] sm:$0xff]  ;;  %v810_v14 = vld [vmem:[%s7511_s1 + $0x17e0] sm:$0xff] }
 0x157   :  { %4590 = vmatpush3.bf16.msra.mxu1 %v4589_v18  ;;  %v3196_v42 = vpop.f32.mrb[6].mxu0  ;;  %v784_v18 = vld [vmem:[%s7511_s1 + $0x1710] sm:$0xff]  ;;  %v4627_v19 = vpack.c.bf16 %v779_v13, %v778_v12  ;;  %v762_v22 = vld [vmem:[%s7511_s1 + $0x1660] sm:$0xff]  ;;  %v829_v12 = vld [vmem:[%s7511_s1 + $0x1878] sm:$0xff] }
 0x158   :  { %4592 = vmatprep.subr.bf16.mxu1 %v4591_v35  ;;  %v3197_v45 = vpop.f32.mrb[7].mxu0  ;;  %v883_v35 = vcombine.high %v7183_v26, %v7183_v26  ;;  %v4641_v32 = vpack.c.bf16 %v785_v24, %v784_v18  ;;  %v763_v18 = vld [vmem:[%s7511_s1 + $0x1668] sm:$0xff] }
 0x159   :  { %v3231_v25 = vpop.f32.mrb[6].mxu1  ;;  %v3198_v52 = vadd.f32 %v3197_v45, %v3196_v42  ;;  %4562 = vmatpush3.bf16.msra.mxu0 %v4561_v34  ;;  %v4611_v34 = vpack.c.bf16 %v771_v21, %v770_v27  ;;  %v804_v42 = vld [vmem:[%s7511_s1 + $0x17b0] sm:$0xff]  ;;  %v795_v21 = vld [vmem:[%s7511_s1 + $0x1768] sm:$0xff] }
 0x15a   :  { %v3232_v49 = vpop.f32.mrb[7].mxu1  ;;  %4564 = vmatprep.subr.bf16.mxu0 %v4563_v39  ;;  %v786_v39 = vld [vmem:[%s7511_s1 + $0x1720] sm:$0xff]  ;;  %v756_v45 = vld [vmem:[%s7511_s1 + $0x1630] sm:$0xff] }
 0x15b   :  { %v3233_v54 = vadd.f32 %v3232_v49, %v3231_v25  ;;  %4594 = vmatpush3.bf16.msra.mxu1 %v4593_v53  ;;  %v1396_v58 = vadd.f32 %v3198_v52, %v6943_v36  ;;  %v799_v36 = vld [vmem:[%s7511_s1 + $0x1788] sm:$0xff]  ;;  %v757_v25 = vld [vmem:[%s7511_s1 + $0x1638] sm:$0xff]  ;;  %v774_v49 = vld [vmem:[%s7511_s1 + $0x16c0] sm:$0xff] }
 0x15c   :  { %4596 = vmatprep.subr.bf16.mxu1 %v4595_v20  ;;  %v4635_v10 = vpack.c.bf16 %v799_v36, %v798_v8  ;;  %v755_v53 = vld [vmem:[%s7511_s1 + $0x1628] sm:$0xff]  ;;  %v805_v20 = vld [vmem:[%s7511_s1 + $0x17b8] sm:$0xff]  ;;  %v808_v36 = vld [vmem:[%s7511_s1 + $0x17d0] sm:$0xff] }
 0x15d   :  { %v7154_v1 = vadd.f32 %v3233_v54, %v1396_v58  ;;  %4566 = vmatpush3.bf16.msra.mxu0 %v4565_v60  ;;  %v4647_v50 = vpack.c.bf16 %v805_v20, %v804_v42  ;;  %v789_v52 = vld [vmem:[%s7511_s1 + $0x1738] sm:$0xff]  ;;  %v775_v60 = vld [vmem:[%s7511_s1 + $0x16c8] sm:$0xff]  ;;  %v806_v54 = vld [vmem:[%s7511_s1 + $0x17c0] sm:$0xff] }
 0x15e   :  { %4568 = vmatprep.subr.bf16.mxu0 %v4567_v51  ;;  %v4617_v51 = vpack.c.bf16 %v757_v25, %v756_v45  ;;  %v4649_v62 = vpack.c.bf16 %v789_v52, %v788_v47  ;;  %v4619_v56 = vpack.c.bf16 %v775_v60, %v774_v49  ;;  %v759_v58 = vld [vmem:[%s7511_s1 + $0x1648] sm:$0xff]  ;;  %v777_v8 = vld [vmem:[%s7511_s1 + $0x16d8] sm:$0xff]  ;;  %v4633_v45 = vpack.c.bf16 %v765_v41, %v764_v46  ;;  %v816_v49 = vld [vmem:[%s7511_s1 + $0x1810] sm:$0xff] }
 0x15f   :  { %4598 = vmatpush3.bf16.msra.mxu1 %v4597_v55  ;;  %v807_v55 = vld [vmem:[%s7511_s1 + $0x17c8] sm:$0xff]  ;;  %v4623_v5 = vpack.c.bf16 %v777_v8, %v776_v0  ;;  %v4804_v52 = vmov 0.0|0.0   ;;  %v817_v60 = vld [vmem:[%s7511_s1 + $0x1818] sm:$0xff] }
 0x160   :  { %4600 = vmatprep.subr.bf16.mxu1 %v4599_v59  ;;  %v790_v59 = vld [vmem:[%s7511_s1 + $0x1740] sm:$0xff]  ;;  %v4651_v61 = vpack.c.bf16 %v807_v55, %v806_v54  ;;  %v815_v47 = vld [vmem:[%s7511_s1 + $0x1808] sm:$0xff]  ;;  %v4671_v54 = vpack.c.bf16 %v817_v60, %v816_v49  ;;  %v825_v0 = vld [vmem:[%s7511_s1 + $0x1858] sm:$0xff] }
 0x161   :  { %4570 = vmatpush3.bf16.msra.mxu0 %v4569_v3  ;;  %v809_v3 = vld [vmem:[%s7511_s1 + $0x17d8] sm:$0xff]  ;;  %v818_v55 = vld [vmem:[%s7511_s1 + $0x1820] sm:$0xff] }
 0x162   :  { %4604 = vmatprep.subr.bf16.mxu0 %v4603_v2  ;;  %v4653_v2 = vpack.c.bf16 %v791_v63, %v790_v59  ;;  %v4655_v9 = vpack.c.bf16 %v809_v3, %v808_v36  ;;  %v823_v59 = vld [vmem:[%s7511_s1 + $0x1848] sm:$0xff]  ;;  %v824_v63 = vld [vmem:[%s7511_s1 + $0x1850] sm:$0xff]  ;;  %v826_v36 = vld [vmem:[%s7511_s1 + $0x1860] sm:$0xff] }
 0x163   :  { %4602 = vmatpush3.bf16.msra.mxu1 %v4601_v4  ;;  %v4621_v4 = vpack.c.bf16 %v759_v58, %v758_v57  ;;  %v822_v58 = vld [vmem:[%s7511_s1 + $0x1840] sm:$0xff]  ;;  %v4683_v8 = vpack.c.bf16 %v825_v0, %v824_v63  ;;  %v827_v3 = vld [vmem:[%s7511_s1 + $0x1868] sm:$0xff] }
 0x164   :  { %4636 = vmatprep.subr.bf16.mxu1 %v4635_v10  ;;  %2374 = vmatmul.mubr.f32.vlgmr.msra.gmra.mrb[20].mxu0 %v6972_v31  ;;  %v754_v31 = vld [vmem:[%s7511_s1 + $0x1620] sm:$0xff]  ;;  %v792_v10 = vld [vmem:[%s7511_s1 + $0x1750] sm:$0xff] }
 0x165   :  { %4606 = vmatpush3.bf16.msra.mxu0 %v4605_v15  ;;  %2513 = vmatprep.mubr.f32.mxu0 %v883_v35  ;;  %v4613_v48 = vpack.c.bf16 %v755_v53, %v754_v31  ;;  %v811_v15 = vld [vmem:[%s7511_s1 + $0x17e8] sm:$0xff]  ;;  %v780_v35 = vld [vmem:[%s7511_s1 + $0x16f0] sm:$0xff]  ;;  %v4629_v53 = vpack.c.bf16 %v763_v18, %v762_v22 }
 0x166   :  { %2444 = vmatmul.mubr.f32.vlgmr.msra.gmra.mrb[20].mxu1 %v6977_v33  ;;  %4608 = vmatprep.subr.bf16.mxu0 %v4607_v37  ;;  %v787_v33 = vld [vmem:[%s7511_s1 + $0x1728] sm:$0xff]  ;;  %v4657_v37 = vpack.c.bf16 %v793_v11, %v792_v10  ;;  %v4659_v27 = vpack.c.bf16 %v811_v15, %v810_v14  ;;  %v4686_v10 = vpack.c.bf16 %v827_v3, %v826_v36  ;;  %v828_v11 = vld [vmem:[%s7511_s1 + $0x1870] sm:$0xff] }
 0x167   :  { %4638 = vmatpush3.bf16.msra.mxu1 %v4637_v17  ;;  %2583 = vmatprep.mubr.f32.mxu1 %v884_v30  ;;  %v4645_v43 = vpack.c.bf16 %v787_v33, %v786_v39  ;;  %v4625_v17 = vpack.c.bf16 %v761_v7, %v760_v6  ;;  %v4631_v33 = vpack.c.bf16 %v781_v28, %v780_v35 }
 0x168   :  { %4640 = vmatprep.subr.bf16.mxu1 %v4639_v23  ;;  %v794_v23 = vld [vmem:[%s7511_s1 + $0x1760] sm:$0xff]  ;;  %v4689_v15 = vpack.c.bf16 %v829_v12, %v828_v11 }
 0x169   :  { %4610 = vmatpush3.bf16.msra.mxu0 %v4609_v38  ;;  %v812_v38 = vld [vmem:[%s7511_s1 + $0x17f0] sm:$0xff] }
 0x16a   :  { %4612 = vmatprep.subr.bf16.mxu0 %v4611_v34 }
 0x16b   :  { %4642 = vmatpush3.bf16.msra.mxu1 %v4641_v32  ;;  %v813_v32 = vld [vmem:[%s7511_s1 + $0x17f8] sm:$0xff] }
 0x16c   :  { %4644 = vmatprep.subr.bf16.mxu1 %v4643_v40  ;;  %v4661_v40 = vpack.c.bf16 %v795_v21, %v794_v23  ;;  %v4663_v20 = vpack.c.bf16 %v813_v32, %v812_v38 }
 0x16d   :  { %4614 = vmatpush3.bf16.msra.mxu0 %v4613_v48  ;;  %v796_v48 = vld [vmem:[%s7511_s1 + $0x1770] sm:$0xff] }
 0x16e   :  { %4616 = vmatprep.subr.bf16.mxu0 %v4615_v44 }
 0x16f   :  { %4646 = vmatpush3.bf16.msra.mxu1 %v4645_v43  ;;  %v797_v43 = vld [vmem:[%s7511_s1 + $0x1778] sm:$0xff] }
 0x170   :  { %4648 = vmatprep.subr.bf16.mxu1 %v4647_v50  ;;  %v4665_v25 = vpack.c.bf16 %v797_v43, %v796_v48 }
 0x171   :  { %4618 = vmatpush3.bf16.msra.mxu0 %v4617_v51  ;;  %v819_v51 = vld [vmem:[%s7511_s1 + $0x1828] sm:$0xff] }
 0x172   :  { %4620 = vmatprep.subr.bf16.mxu0 %v4619_v56  ;;  %v821_v56 = vld [vmem:[%s7511_s1 + $0x1838] sm:$0xff] }
 0x173   :  { %4650 = vmatpush3.bf16.msra.mxu1 %v4649_v62  ;;  %v4806_v62 = vmov 0.0  }
 0x174   :  { %4652 = vmatprep.subr.bf16.mxu1 %v4651_v61  ;;  %v4680_v61 = vpack.c.bf16 %v823_v59, %v822_v58 }
 0x175   :  { %4622 = vmatpush3.bf16.msra.mxu0 %v4621_v4 }
 0x176   :  { %4624 = vmatprep.subr.bf16.mxu0 %v4623_v5 }
 0x177   :  { %4654 = vmatpush3.bf16.msra.mxu1 %v4653_v2  ;;  %v3266_v24 = vpop.f32.mrb[8].mxu0 }
 0x178   :  { %4656 = vmatprep.subr.bf16.mxu1 %v4655_v9  ;;  %v3267_v29 = vpop.f32.mrb[9].mxu0 }
 0x179   :  { %v3301_v30 = vpop.f32.mrb[8].mxu1  ;;  %v3268_v34 = vadd.f32 %v3267_v29, %v3266_v24  ;;  %4626 = vmatpush3.bf16.msra.mxu0 %v4625_v17  ;;  %v45_v17 = vld [vmem:[%s7510_s0 + $0xc0] sm:$0xf]  ;;  %s4808_s0 = smov 30  }
 0x17a   :  { %v3302_v31 = vpop.f32.mrb[9].mxu1  ;;  %4628 = vmatprep.subr.bf16.mxu0 %v4627_v19 }
 0x17b   :  { %v3303_v39 = vadd.f32 %v3302_v31, %v3301_v30  ;;  %4658 = vmatpush3.bf16.msra.mxu1 %v4657_v37  ;;  %v1536_v42 = vadd.f32 %v3268_v34, %v7154_v1  ;;  %v814_v1 = vld [vmem:[%s7511_s1 + $0x1800] sm:$0xff] }
 0x17c   :  { %4660 = vmatprep.subr.bf16.mxu1 %v4659_v27  ;;  %v4668_v50 = vpack.c.bf16 %v815_v47, %v814_v1 }
 0x17d   :  { %v1606_v44 = vadd.f32 %v3303_v39, %v1536_v42  ;;  %4630 = vmatpush3.bf16.msra.mxu0 %v4629_v53 }
 0x17e   :  { %4632 = vmatprep.subr.bf16.mxu0 %v4631_v33 }
 0x17f   :  { %4662 = vmatpush3.bf16.msra.mxu1 %v4661_v40 }
 0x180   :  { %4664 = vmatprep.subr.bf16.mxu1 %v4663_v20 }
 0x181   :  { %4634 = vmatpush3.bf16.msra.mxu0 %v4633_v45 }
 0x182   :  { %4667 = vmatprep.subr.bf16.mxu0 %v4804_v52 }
 0x183   :  { %4666 = vmatpush3.bf16.msra.mxu1 %v4665_v25 }
 0x184   :  { %4691 = vmatprep.subr.bf16.mxu1 %v4804_v52  ;;  %2514 = vmatmul.mubr.f32.vlgmr.msra.gmra.mrb[22].mxu0 %v7183_v26  ;;  %v4674_v26 = vpack.c.bf16 %v819_v51, %v818_v55 }
 0x185   :  { %4669 = vmatpush3.bf16.msra.mxu0 %v4668_v50  ;;  %3860 = vmatprep.mubr.msk.f32.mxu0 %vm4805_vm0, %v4806_v62 }
 0x186   :  { %2584 = vmatmul.mubr.f32.vlgmr.msra.gmra.mrb[22].mxu1 %v7188_v16  ;;  %4670 = vmatprep.subr.bf16.mxu0 %v4804_v52  ;;  %v820_v16 = vld [vmem:[%s7511_s1 + $0x1830] sm:$0xff]  ;;  %s4809_s1 = smov 10  }
 0x187   :  { %3867 = vmatprep.mubr.msk.f32.mxu1 %vm4805_vm0, %v4806_v62  ;;  %v4677_v57 = vpack.c.bf16 %v821_v56, %v820_v16 }
 0x189   :  { %4672 = vmatpush3.bf16.msra.mxu0 %v4671_v54 }
 0x18a   :  { %4673 = vmatprep.subr.bf16.mxu0 %v4804_v52 }
 0x18d   :  { %4675 = vmatpush3.bf16.msra.mxu0 %v4674_v26 }
 0x18e   :  { %4676 = vmatprep.subr.bf16.mxu0 %v4804_v52 }
 0x191   :  { %4678 = vmatpush3.bf16.msra.mxu0 %v4677_v57 }
 0x192   :  { %4679 = vmatprep.subr.bf16.mxu0 %v4804_v52 }
 0x195   :  { %4681 = vmatpush3.bf16.msra.mxu0 %v4680_v61 }
 0x196   :  { %4682 = vmatprep.subr.bf16.mxu0 %v4804_v52 }
 0x197   :  { %v3336_v4 = vpop.f32.mrb[10].mxu0 }
 0x198   :  { %v3337_v2 = vpop.f32.mrb[11].mxu0 }
 0x199   :  { %v3371_v5 = vpop.f32.mrb[10].mxu1  ;;  %v3338_v6 = vadd.f32 %v3337_v2, %v3336_v4  ;;  %4684 = vmatpush3.bf16.msra.mxu0 %v4683_v8 }
 0x19a   :  { %v3372_v7 = vpop.f32.mrb[11].mxu1  ;;  %4685 = vmatprep.subr.bf16.mxu0 %v4804_v52 }
 0x19b   :  { %v3373_v9 = vadd.f32 %v3372_v7, %v3371_v5  ;;  %v1676_v13 = vadd.f32 %v3338_v6, %v1606_v44 }
 0x19d   :  { %v1746_v14 = vadd.f32 %v3373_v9, %v1676_v13  ;;  %4687 = vmatpush3.bf16.msra.mxu0 %v4686_v10  ;;  %v2680_v9 = vlaneseq }
 0x19e   :  { %4688 = vmatprep.subr.bf16.mxu0 %v4804_v52 }
 0x19f   :  { %v2681_v11 = vshrl.u32 %v2680_v9, 7 }
 0x1a1   :  { %4690 = vmatpush3.bf16.msra.mxu0 %v4689_v15 }
 0x1a4   :  { %3861 = vmatmul.mubr.f32.vlgmr.msra.gmra.mrb[24].mxu0 %v45_v17  ;;  %v2684_v17 = vand.u32 127, %v2680_v9 }
 0x1b7   :  { %v3406_v37 = vpop.f32.mrb[12].mxu0 }
 0x1b8   :  { %v3407_v19 = vpop.f32.mrb[13].mxu0 }
 0x1b9   :  { %v3441_v22 = vpop.f32.mrb[12].mxu1  ;;  %v3408_v18 = vadd.f32 %v3407_v19, %v3406_v37 }
 0x1ba   :  { %v3442_v23 = vpop.f32.mrb[13].mxu1 }
 0x1bb   :  { %v3443_v24 = vadd.f32 %v3442_v23, %v3441_v22  ;;  %v1816_v27 = vadd.f32 %v3408_v18, %v1746_v14  ;;  %v2682_v14 = vadd.s32 8, %v2681_v11  ;;  %v2689_v22 = vadd.s32 1, %v2681_v11 }
 0x1bc   :  { %v2685_v23 = vmul.u32 10, %v2681_v11 }
 0x1bd   :  { %v1886_v21 = vadd.f32 %v3443_v24, %v1816_v27  ;;  %v2690_v15 = vadd.s32 1, %v2682_v14  ;;  %v2686_v37 = vmul.u32 10, %v2682_v14  ;;  %v2691_v24 = vmul.u32 10, %v2689_v22 }
 0x1be   :  { %vm2687_vm5 = vcmp.ge.s32.totalorder %v2684_v17, %v2685_v23  ;;  %v4807_v27 = vmov 1.0  }
 0x1bf   :  { %v2692_v19 = vmul.u32 10, %v2690_v15  ;;  %vm2688_vm2 = vcmp.ge.s32.totalorder %v2684_v17, %v2686_v37  ;;  %vm2693_vm6 = vcmp.lt.s32.totalorder %v2684_v17, %v2691_v24 }
 0x1c0   :  { %vm2695_vm7 = vmand %vm2687_vm5, %vm2693_vm6  ;;  %vm2838_vm5 = vcmask 818176  }
 0x1c1   :  { %vm2694_vm3 = vcmp.lt.s32.totalorder %v2684_v17, %v2692_v19  ;;  %vm4693_vm9 = vmpackc.low %vm2703_vm8, %vm2695_vm7 }
 0x1c2   :  { %vm2696_vm4 = vmand %vm2688_vm2, %vm2694_vm3  ;;  %vm2815_vm2 = vcmask 572416   ;;  %vm2817_vm3 = vcmask 654336  }
 0x1c3   :  { %v2948_v18 = vsel %vm2696_vm4, 1.0, %v4806_v62  ;;  %vm2819_vm4 = vcmask 736256  }
 0x1d7   :  { %v3476_v35 = vpop.f32.mrb[14].mxu0 }
 0x1d8   :  { %v3477_v28 = vpop.f32.mrb[15].mxu0 }
 0x1d9   :  { %v3511_v29 = vpop.f32.mrb[14].mxu1  ;;  %v3478_v30 = vadd.f32 %v3477_v28, %v3476_v35 }
 0x1da   :  { %v3512_v38 = vpop.f32.mrb[15].mxu1 }
 0x1db   :  { %v3513_v32 = vadd.f32 %v3512_v38, %v3511_v29  ;;  %v1956_v34 = vadd.f32 %v3478_v30, %v1886_v21  ;;  %v4692_v21 = vpack.c.bf16 %v2948_v18, %v4807_v27  ;;  %v2825_v38 = vld [vmem:[%s7513_s3] sm:$0xff] }
 0x1dd   :  { %v2026_v31 = vadd.f32 %v3513_v32, %v1956_v34  ;;  %4694 = vmatpush3.bf16.msk.msra.mxu1 %vm4693_vm9, %v4692_v21  ;;  %v2826_v32 = vld [vmem:[%s7513_s3 + $0x8] sm:$0xff]  ;;  %v2827_v34 = vld [vmem:[%s7513_s3 + $0x10] sm:$0xff] }
 0x1de   :  { %4695 = vmatprep.subr.bf16.mxu1 %v4804_v52 }
 0x1f7   :  { %v3546_v53 = vpop.f32.mrb[16].mxu0 }
 0x1f8   :  { %v3547_v39 = vpop.f32.mrb[17].mxu0 }
 0x1f9   :  { %v3581_v40 = vpop.f32.mrb[16].mxu1  ;;  %v3548_v33 = vadd.f32 %v3547_v39, %v3546_v53  ;;  %v2828_v53 = vld [vmem:[%s7513_s3 + $0x18] sm:$0xff] }
 0x1fa   :  { %v3582_v46 = vpop.f32.mrb[17].mxu1  ;;  %v4699_v39 = vpack.c.bf16 %v2828_v53, %v2827_v34 }
 0x1fb   :  { %v3583_v41 = vadd.f32 %v3582_v46, %v3581_v40  ;;  %v2096_v42 = vadd.f32 %v3548_v33, %v2026_v31  ;;  %v4696_v31 = vpack.c.bf16 %v2826_v32, %v2825_v38  ;;  %v2829_v40 = vld [vmem:[%s7513_s3 + $0x20] sm:$0xff]  ;;  %v2830_v33 = vld [vmem:[%s7513_s3 + $0x28] sm:$0xff] }
 0x1fc   :  { %v4702_v46 = vpack.c.bf16 %v2830_v33, %v2829_v40 }
 0x1fd   :  { %v2166_v20 = vadd.f32 %v3583_v41, %v2096_v42  ;;  %v2831_v41 = vld [vmem:[%s7513_s3 + $0x30] sm:$0xff]  ;;  %v2832_v42 = vld [vmem:[%s7513_s3 + $0x38] sm:$0xff] }
 0x217   :  { %v3616_v48 = vpop.f32.mrb[18].mxu0 }
 0x218   :  { %v3617_v43 = vpop.f32.mrb[19].mxu0 }
 0x219   :  { %v3651_v44 = vpop.f32.mrb[18].mxu1  ;;  %v3618_v45 = vadd.f32 %v3617_v43, %v3616_v48  ;;  %v2833_v48 = vld [vmem:[%s7513_s3 + $0x40] sm:$0xff]  ;;  %v2834_v43 = vld [vmem:[%s7513_s3 + $0x48] sm:$0xff] }
 0x21a   :  { %v3652_v25 = vpop.f32.mrb[19].mxu1 }
 0x21b   :  { %v3653_v1 = vadd.f32 %v3652_v25, %v3651_v44  ;;  %v2236_v47 = vadd.f32 %v3618_v45, %v2166_v20  ;;  %v4705_v20 = vpack.c.bf16 %v2832_v42, %v2831_v41  ;;  %v4708_v44 = vpack.c.bf16 %v2834_v43, %v2833_v48  ;;  %v2835_v45 = vld [vmem:[%s7513_s3 + $0x50] sm:$0xff]  ;;  %v2836_v25 = vld [vmem:[%s7513_s3 + $0x58] sm:$0xff] }
 0x21d   :  { %v2306_v50 = vadd.f32 %v3653_v1, %v2236_v47  ;;  %v4711_v1 = vpack.c.bf16 %v2836_v25, %v2835_v45  ;;  %v2837_v47 = vld [vmem:[%s7513_s3 + $0x60] sm:$0xf]  ;;  %s4817_s3 = smov [#allocation4]  }
 0x21e   :  { %s2934_s20 = sshll.u32 %s4817_s3, 4  ;;  %s2935_s20 = int_to_ptr.vmem [resolvable:$true] %s2934_s20 }
 0x21f   :  { %s4756_s21 = scalar_lea.vmem %s2935_s20, 32  ;;  %p4761_p1 = scmp.lt.s32.totalorder %s2935_s20, %s2935_s20 }
 0x220   :  { %p4757_p0 = scmp.ne.s32.totalorder %s2935_s20, %s4756_s21  ;;  %p4762_p2 = scmp.lt.s32.totalorder %s4756_s21, %s4756_s21 }
 0x222   :  { %p4763_p3 = por %p4762_p2, %p4761_p1 }
 0x224   :  { %p4764_p4 = pnand %p4763_p3, %p4757_p0 }
 0x237   :  { %v3686_v49 = vpop.f32.mrb[20].mxu0 }
 0x238   :  { %v3687_v60 = vpop.f32.mrb[21].mxu0 }
 0x239   :  { %v3721_v54 = vpop.f32.mrb[20].mxu1  ;;  %v3688_v55 = vadd.f32 %v3687_v60, %v3686_v49 }
 0x23a   :  { %v3722_v51 = vpop.f32.mrb[21].mxu1 }
 0x23b   :  { %v3723_v26 = vadd.f32 %v3722_v51, %v3721_v54  ;;  %v2376_v16 = vadd.f32 %v3688_v55, %v2306_v50 }
 0x23d   :  { %v2446_v56 = vadd.f32 %v3723_v26, %v2376_v16 }
 0x257   :  { %v3756_v57 = vpop.f32.mrb[22].mxu0 }
 0x258   :  { %v3757_v58 = vpop.f32.mrb[23].mxu0 }
 0x259   :  { %v3791_v59 = vpop.f32.mrb[22].mxu1  ;;  %v3758_v61 = vadd.f32 %v3757_v58, %v3756_v57 }
 0x25a   :  { %v3792_v63 = vpop.f32.mrb[23].mxu1 }
 0x25b   :  { %v3793_v0 = vadd.f32 %v3792_v63, %v3791_v59  ;;  %v2516_v8 = vadd.f32 %v3758_v61, %v2446_v56 }
 0x25d   :  { %v2586_v36 = vadd.f32 %v3793_v0, %v2516_v8 }
 0x277   :  { %v2655_v3 = vpop.f32.mrb[24].mxu0 }
 0x278   :  { %v2656_v4 = vadd.f32 %v2655_v3, %v2586_v36  ;;  %v3862_v2 = vpop.f32.mrb[25].mxu0 }
 0x27a   :  { %v2660_v5 = vsel %vm2659_vm1, %v2656_v4, -inf }
 0x27b   :  { %2661 = vmax.xlane.f32.xlu0 %v2660_v5 }
 0x308   :  { %v2662_v6 = vpop.xlane.xlu0 %2661 }
 0x309   :  { %v2663_v7 = vsub.f32 %v2656_v4, %v2662_v6 }
 0x30b   :  { %v2664_v10 = vmul.f32 1.442695, %v2663_v7 }
 0x30d   :  { %4752 = vpow2.f32 %v2664_v10 }
 0x317   :  { %v4753_v12 = vpop.eup %4752 }
 0x318   :  { %v2666_v13 = vsel %vm2659_vm1, %v4753_v12, 0.0  ;;  %vm2813_vm1 = vcmask 490496  }
 0x319   :  { %2667 = vadd.xlane.f32.xlu0 %v2666_v13 }
 0x3a6   :  { %v2668_v35 = vpop.xlane.xlu0 %2667 }
 0x3a7   :  { %4754 = vrcp.f32 %v2668_v35 }
 0x3b1   :  { %v4755_v28 = vpop.eup %4754 }
 0x3b2   :  { %v7421_v29 = vmul.f32 %v4755_v28, %v4753_v12 }
 0x3b4   :  { %2783 = vrot.lane.b32.xlu0 %v7421_v29, %s4808_s0  ;;  %2777 = vrot.lane.b32.xlu1 %v7421_v29, %s4809_s1  ;;  %v2672_v30 = vrot.slane %v7421_v29, 2 }
 0x3b5   :  { %3868 = vmatmul.mubr.msk.f32.vlgmr.msra.gmra.mrb[24].mxu1 %vm2676_vm10, %v7421_v29 }
 0x3b6   :  { %3896 = vmatprep.mubr.msk.f32.mxu1 %vm4805_vm0, %v4806_v62  ;;  %4697 = vmatpush3.bf16.msra.mxu1 %v4696_v31  ;;  %vm2811_vm0 = vcmask 408576  }
 0x3b7   :  { %4698 = vmatprep.subr.bf16.mxu1 %v4804_v52 }
 0x3b8   :  { %2780 = vrot.lane.b32.xlu1 %v7421_v29, %s4810_s16  ;;  %2673 = vrot.lane.b32.xlu0 %v2672_v30, %s4809_s1 }
 0x3ba   :  { %4700 = vmatpush3.bf16.msra.mxu1 %v4699_v39 }
 0x3bb   :  { %4701 = vmatprep.subr.bf16.mxu1 %v4804_v52 }
 0x3bc   :  { %2786 = vrot.lane.b32.xlu1 %v7421_v29, %s4811_s17 }
 0x3be   :  { %4703 = vmatpush3.bf16.msra.mxu1 %v4702_v46 }
 0x3bf   :  { %4704 = vmatprep.subr.bf16.mxu1 %v4804_v52 }
 0x3c0   :  { %2789 = vrot.lane.b32.xlu1 %v7421_v29, %s4812_s2 }
 0x3c2   :  { %4706 = vmatpush3.bf16.msra.mxu1 %v4705_v20 }
 0x3c3   :  { %4707 = vmatprep.subr.bf16.mxu1 %v4804_v52 }
 0x3c4   :  { %2792 = vrot.lane.b32.xlu1 %v7421_v29, %s4813_s18 }
 0x3c6   :  { %4709 = vmatpush3.bf16.msra.mxu1 %v4708_v44 }
 0x3c7   :  { %4710 = vmatprep.subr.bf16.mxu1 %v4804_v52 }
 0x3c8   :  { %2795 = vrot.lane.b32.xlu1 %v7421_v29, %s4814_s27 }
 0x3ca   :  { %4712 = vmatpush3.bf16.msra.mxu1 %v4711_v1 }
 0x3cb   :  { %3894 = vmatprep.subr.mxu1 %v4806_v62 }
 0x3cc   :  { %2798 = vrot.lane.b32.xlu1 %v7421_v29, %s4815_s7 }
 0x3ce   :  { %3895 = vmatpush3.msk.msra.mxu1 %vm2842_vm11, %v2837_v47 }
 0x3d0   :  { %2801 = vrot.lane.b32.xlu1 %v7421_v29, %s4816_s12 }
 0x426   :  { %v2784_v50 = vpop.permute.xlu0 %2783  ;;  %v2778_v54 = vpop.permute.xlu1 %2777 }
 0x427   :  { %v2804_v62 = vsel %vm2676_vm10, %v7421_v29, %v2778_v54 }
 0x42a   :  { %v2674_v49 = vpop.permute.xlu0 %2673  ;;  %v2781_v55 = vpop.permute.xlu1 %2780 }
 0x42b   :  { %v2677_v60 = vsel %vm2676_vm10, %v7421_v29, %v2674_v49  ;;  %v2806_v56 = vsel %vm2805_vm13, %v2804_v62, %v2781_v55 }
 0x42c   :  { %2679 = vst.msk [vmem:[#allocation4] sm:$0x3] %vm2678_vm12, %v2677_v60  ;;  %v2808_v58 = vsel %vm2807_vm14, %v2806_v56, %v2784_v50 }
 0x42e   :  { %v2787_v51 = vpop.permute.xlu1 %2786 }
 0x42f   :  { %v2810_v59 = vsel %vm2809_vm15, %v2808_v58, %v2787_v51 }
 0x432   :  { %v2790_v52 = vpop.permute.xlu1 %2789 }
 0x433   :  { %v2812_v61 = vsel %vm2811_vm0, %v2810_v59, %v2790_v52 }
 0x436   :  { %v2793_v26 = vpop.permute.xlu1 %2792 }
 0x437   :  { %v2814_v63 = vsel %vm2813_vm1, %v2812_v61, %v2793_v26 }
 0x43a   :  { %v2796_v16 = vpop.permute.xlu1 %2795 }
 0x43b   :  { %v2816_v8 = vsel %vm2815_vm2, %v2814_v63, %v2796_v16 }
 0x43e   :  { %v2799_v57 = vpop.permute.xlu1 %2798 }
 0x43f   :  { %v2818_v36 = vsel %vm2817_vm3, %v2816_v8, %v2799_v57 }
 0x442   :  { %v2802_v0 = vpop.permute.xlu1 %2801 }
 0x443   :  { %v2820_v3 = vsel %vm2819_vm4, %v2818_v36, %v2802_v0 }
 0x444   :  { %v2822_v4 = vrot.slane %v2820_v3, 2 }
 0x488   :  { %v2773_v2 = vpop.f32.mrb[24].mxu1 }
 0x489   :  { %v2824_v5 = vmul.f32 %v2822_v4, %v2773_v2  ;;  %v3869_v6 = vpop.f32.mrb[25].mxu1 }
 0x48b   :  { %3897 = vmatmul.mubr.msk.f32.vlgmr.msra.gmra.mrb[26].mxu1 %vm2838_vm5, %v2824_v5 }
 0x48c   :  { %4767 = shalt.err (!%p4764_p4)
}
 0x48d   :  { %s4768_s24 = scalar_lea.hbm %s7515_s5, 32 }
 0x48e   :  { %p4769_p5 = scmp.ne.s32.totalorder %s7515_s5, %s4768_s24  ;;  %p4772_p6 = scmp.lt.u32.totalorder %s4768_s24, %s7515_s5 }
 0x490   :  { %p4774_p7 = pnand %p4772_p6, %p4769_p5 }
 0x492   :  { %4777 = shalt.err (!%p4774_p7)
}
 0x493   :  { %2937 = dma.vmem_to_hbm [thread:$0]  %s2935_s20, 32, %s7515_s5, [#allocation5]   ;;  %vm2916_vm6 = vcmask 148480  }
 0x494   :  { %s4818_s6 = smov [#allocation2]  }
 0x495   :  { %s2924_s7 = sshll.u32 %s4818_s6, 4  ;;  %s2925_s7 = int_to_ptr.vmem [resolvable:$true] %s2924_s7 }
 0x496   :  { %s4778_s8 = scalar_lea.vmem %s2925_s7, 32  ;;  %p4783_p9 = scmp.lt.s32.totalorder %s2925_s7, %s2925_s7 }
 0x497   :  { %p4779_p8 = scmp.ne.s32.totalorder %s2925_s7, %s4778_s8  ;;  %p4784_p10 = scmp.lt.s32.totalorder %s4778_s8, %s4778_s8 }
 0x499   :  { %p4785_p11 = por %p4784_p10, %p4783_p9 }
 0x49b   :  { %p4786_p12 = pnand %p4785_p11, %p4779_p8 }
 0x55e   :  { %v2912_v7 = vpop.f32.mrb[26].mxu1 }
 0x55f   :  { %v3898_v10 = vpop.f32.mrb[27].mxu1  ;;  %2917 = vst.msk [vmem:[#allocation2] sm:$0x3] %vm2916_vm6, %v2912_v7 }
 0x560   :  { %4789 = shalt.err (!%p4786_p12)
}
 0x561   :  { %s4790_s11 = scalar_lea.hbm %s7514_s4, 32 }
 0x562   :  { %p4791_p13 = scmp.ne.s32.totalorder %s7514_s4, %s4790_s11  ;;  %p4794_p0 = scmp.lt.u32.totalorder %s4790_s11, %s7514_s4 }
 0x564   :  { %p4796_p1 = pnand %p4794_p0, %p4791_p13 }
 0x566   :  { %4799 = shalt.err (!%p4796_p1)
}
 0x567   :  { %2927 = dma.vmem_to_hbm [thread:$0]  %s2925_s7, 32, %s7514_s4, [#allocation3]  }
 0x568   :  { %4800 = dma.done.wait [#allocation3], 32  }
 0x569   :  { %4801 = vsyncadd [#allocation3], 4294967264 }
 0x56a   :  { %4802 = dma.done.wait [#allocation5], 32  }
 0x56b   :  { %4803 = vsyncadd [#allocation5], 4294967264 }
 0x56c   :  { %2944 = vsyncpa [#allocation3], 1 }
 0x56d   :  { %2945 = vsyncpa [#allocation5], 1 }

</bundles_post_ra>
